<compile_context>
chip_gen: v6e
topology: v6e:2x2x1
jax: 0.10.0
libtpu: 0.0.40
codegen_flags: <defaults>
</compile_context>

<pallas_src>
import functools

import numpy as np
import jax
import jax.numpy as jnp
from jax.experimental import pallas as pl
from jax.experimental.pallas import tpu as pltpu


VMEM_LIMIT = 64 * 1024 * 1024      # explicit scoped-VMEM limit (<= physical on all gens)


# ----------------------------------------------------------------------------
# Small helpers
# ----------------------------------------------------------------------------
def _round_up(x, m):
    return ((x + m - 1) // m) * m


def _pad_axis(x, axis, target, value=0.0):
    if x.shape[axis] == target:
        return x
    cfg = [(0, 0)] * x.ndim
    cfg[axis] = (0, target - x.shape[axis])
    return jnp.pad(x, cfg, constant_values=value)


def _pick_tile(dim, preferred, granule=128):
    """Largest tile <= `preferred` that divides `dim` (multiple of `granule`);
    falls back to `preferred` (caller then zero-pads)."""
    if dim <= preferred:
        return dim
    for t in range(preferred, granule - 1, -granule):
        if dim % t == 0:
            return t
    return preferred


def bn_fold(gamma, beta, mean, var, eps=1e-5):
    """Inference-mode BatchNorm folded into per-channel scale/shift."""
    scale = gamma / jnp.sqrt(var + eps)
    shift = beta - mean * scale
    return scale, shift


def _fold_pad_bn(bn, n_pad):
    s, b = bn_fold(*bn)
    s = _pad_axis(s, 0, n_pad, 1.0).reshape(1, n_pad).astype(jnp.float32)
    b = _pad_axis(b, 0, n_pad, 0.0).reshape(1, n_pad).astype(jnp.float32)
    return s, b


def adaptive_pool_matrix_t(hin, win_valid, win_stride, hout, wout):
    """Exact PyTorch AdaptiveAvgPool2d bins as a (hout*wout, hin*win_stride)
    matrix.  Row-major input flattening uses stride `win_stride`; columns with
    w >= win_valid get weight 0 (discards wrap-around / padded conv outputs)."""
    P = np.zeros((hout * wout, hin * win_stride), np.float32)
    for oh in range(hout):
        hs, he = (oh * hin) // hout, -(-((oh + 1) * hin) // hout)
        for ow in range(wout):
            ws, we = (ow * win_valid) // wout, -(-((ow + 1) * win_valid) // wout)
            inv = 1.0 / float((he - hs) * (we - ws))
            for h in range(hs, he):
                for w in range(ws, we):
                    P[oh * wout + ow, h * win_stride + w] = inv
    return P


# ----------------------------------------------------------------------------
# Kernel 1: fused conv head
#   conv3x3(valid) + BN + LeakyReLU + conv1x1 + BN + LeakyReLU + AdaptiveAvgPool
#   grid = (batch, k-tiles over the kw-packed contraction dim 3*cin).
#   Conv accumulation lives in an f32 VMEM scratch; the epilogue (BN, 1x1 conv,
#   BN, pool) runs on the last k step.  All slices are sublane-aligned
#   (row stride wf_pad and sfull are multiples of 8).
# ----------------------------------------------------------------------------
def _conv_head_kernel(x_ref, w3_ref, w1_ref, pt_ref, s1_ref, b1_ref,
                      s2_ref, b2_ref, o_ref, acc_ref, *, wf_pad, sfull):
    kk = pl.program_id(1)

    @pl.when(kk == 0)
    def _init():
        acc_ref[...] = jnp.zeros_like(acc_ref)

    # 3 dots of K = (3*cin)/nk per kh; kw taps are packed into the channel dim.
    for kh in range(3):
        off = kh * wf_pad                       # static, multiple of 8
        a = x_ref[0, pl.ds(off, sfull), :]
        acc_ref[...] += jnp.dot(a, w3_ref[kh],
                                preferred_element_type=jnp.float32)

    @pl.when(kk == pl.num_programs(1) - 1)
    def _epilogue():
        y = acc_ref[...] * s1_ref[...] + b1_ref[...]
        y = jnp.where(y >= 0, y, 0.1 * y)                       # LeakyReLU(0.1)
        y = jnp.dot(y.astype(jnp.bfloat16), w1_ref[...],
                    preferred_element_type=jnp.float32)         # 1x1 conv
        y = y * s2_ref[...] + b2_ref[...]
        y = jnp.where(y >= 0, y, 0.1 * y)
        pooled = jnp.dot(pt_ref[...], y.astype(jnp.bfloat16),   # bf16 MXU pool
                         preferred_element_type=jnp.float32)
        o_ref[0] = pooled.astype(o_ref.dtype)


def conv_head(x_kw, w3, w1, pt, s1, b1, s2, b2, *, wf_pad, tkc_pref=1536):
    n, L, kpk = x_kw.shape
    _, kpk2, cp = w3.shape
    assert kpk == kpk2, (kpk, kpk2)
    npool, sfull = pt.shape
    # Geometry the shifted-window / zero-weighted-pool trick relies on.
    assert wf_pad % 8 == 0 and sfull % 8 == 0 and L >= 2 * wf_pad + sfull

    tkc = _pick_tile(kpk, tkc_pref, 128)
    if kpk % tkc:
        tkc = kpk                                # no clean divisor: single block
    nk = kpk // tkc

    kernel = functools.partial(_conv_head_kernel, wf_pad=wf_pad, sfull=sfull)
    return pl.pallas_call(
        kernel,
        out_shape=jax.ShapeDtypeStruct((n, npool, cp), jnp.bfloat16),
        grid=(n, nk),
        in_specs=[
            pl.BlockSpec((1, L, tkc), lambda i, k: (i, 0, k)),
            pl.BlockSpec((3, tkc, cp), lambda i, k: (0, k, 0)),
            pl.BlockSpec((cp, cp), lambda i, k: (0, 0)),
            pl.BlockSpec((npool, sfull), lambda i, k: (0, 0)),
            pl.BlockSpec((1, cp), lambda i, k: (0, 0)),
            pl.BlockSpec((1, cp), lambda i, k: (0, 0)),
            pl.BlockSpec((1, cp), lambda i, k: (0, 0)),
            pl.BlockSpec((1, cp), lambda i, k: (0, 0)),
        ],
        out_specs=pl.BlockSpec((1, npool, cp), lambda i, k: (i, 0, 0)),
        scratch_shapes=[pltpu.VMEM((sfull, cp), jnp.float32)],
        compiler_params=pltpu.CompilerParams(
            dimension_semantics=("parallel", "arbitrary"),
            vmem_limit_bytes=VMEM_LIMIT),
    )(x_kw, w3, w1, pt, s1, b1, s2, b2)


# ----------------------------------------------------------------------------
# Kernel 2: tiled fused matmul  out = act((A @ B) * scale + shift)
#   bf16 operands, f32 VMEM accumulator, reduction (K) axis last, N "parallel".
#   Tile sizes are divisors of the padded dims (no padded-MXU waste).
# ----------------------------------------------------------------------------
def _matmul_bn_act_kernel(a_ref, b_ref, s_ref, t_ref, o_ref, acc_ref, *, act):
    kk = pl.program_id(1)

    @pl.when(kk == 0)
    def _init():
        acc_ref[...] = jnp.zeros_like(acc_ref)

    acc_ref[...] += jnp.dot(a_ref[...], b_ref[...],
                            preferred_element_type=jnp.float32)

    @pl.when(kk == pl.num_programs(1) - 1)
    def _epilogue():
        y = acc_ref[...] * s_ref[...] + t_ref[...]
        if act == "leaky_relu":
            y = jnp.where(y >= 0, y, 0.1 * y)
        elif act == "sigmoid":
            y = jax.nn.sigmoid(y)
        o_ref[...] = y.astype(o_ref.dtype)


def fused_matmul(a, b, scale, shift, *, act="none", out_dtype=jnp.float32,
                 tn_pref=512, tk_pref=2048):
    m, k = a.shape
    k2, n = b.shape
    assert k == k2
    a = a.astype(jnp.bfloat16)
    b = b.astype(jnp.bfloat16)
    scale = scale.reshape(1, n).astype(jnp.float32)
    shift = shift.reshape(1, n).astype(jnp.float32)

    tk = _pick_tile(k, tk_pref, 128)
    tn = _pick_tile(n, tn_pref, 128)
    kp = _round_up(k, tk)
    npad = _round_up(n, tn)
    if kp != k:                          # zero-pad (fallback only): adds 0 to acc
        a = jnp.pad(a, ((0, 0), (0, kp - k)))
        b = jnp.pad(b, ((0, kp - k), (0, 0)))
    if npad != n:
        b = jnp.pad(b, ((0, 0), (0, npad - n)))
        scale = jnp.pad(scale, ((0, 0), (0, npad - n)), constant_values=1.0)
        shift = jnp.pad(shift, ((0, 0), (0, npad - n)))

    out = pl.pallas_call(
        functools.partial(_matmul_bn_act_kernel, act=act),
        out_shape=jax.ShapeDtypeStruct((m, npad), out_dtype),
        grid=(npad // tn, kp // tk),
        in_specs=[
            pl.BlockSpec((m, tk), lambda j, kk: (0, kk)),
            pl.BlockSpec((tk, tn), lambda j, kk: (kk, j)),
            pl.BlockSpec((1, tn), lambda j, kk: (0, j)),
            pl.BlockSpec((1, tn), lambda j, kk: (0, j)),
        ],
        out_specs=pl.BlockSpec((m, tn), lambda j, kk: (0, j)),
        scratch_shapes=[pltpu.VMEM((m, tn), jnp.float32)],
        compiler_params=pltpu.CompilerParams(
            dimension_semantics=("parallel", "arbitrary"),
            vmem_limit_bytes=VMEM_LIMIT),
    )(a, b, scale, shift)
    return out if npad == n else out[:, :n]


# ----------------------------------------------------------------------------
# Kernel 3: fused fc2 + BN + LeakyReLU + fc3 + BN + Sigmoid
#   K-tiled over fc2's input dim; the (M, H2) intermediate stays in VMEM.
# ----------------------------------------------------------------------------
def _fc_tail_kernel(a_ref, w2_ref, s4_ref, t4_ref, w3_ref, s5_ref, t5_ref,
                    o_ref, acc_ref):
    @pl.when(pl.program_id(0) == 0)
    def _init():
        acc_ref[...] = jnp.zeros_like(acc_ref)

    acc_ref[...] += jnp.dot(a_ref[...], w2_ref[...],
                            preferred_element_type=jnp.float32)

    @pl.when(pl.program_id(0) == pl.num_programs(0) - 1)
    def _epilogue():
        h = acc_ref[...] * s4_ref[...] + t4_ref[...]
        h = jnp.where(h >= 0, h, 0.1 * h)
        o = jnp.dot(h.astype(jnp.bfloat16), w3_ref[...],
                    preferred_element_type=jnp.float32)
        o = o * s5_ref[...] + t5_ref[...]
        o_ref[...] = jax.nn.sigmoid(o).astype(o_ref.dtype)


def fc_tail(a, w2, s4, t4, w3, s5, t5, *, tk_pref=1024):
    m, k = a.shape
    k2, n2 = w2.shape
    n2b, n3 = w3.shape
    assert k == k2 and n2 == n2b
    a = a.astype(jnp.bfloat16)
    w2 = w2.astype(jnp.bfloat16)
    w3 = w3.astype(jnp.bfloat16)
    tk = _pick_tile(k, tk_pref, 128)
    kp = _round_up(k, tk)
    if kp != k:
        a = jnp.pad(a, ((0, 0), (0, kp - k)))
        w2 = jnp.pad(w2, ((0, kp - k), (0, 0)))
    return pl.pallas_call(
        _fc_tail_kernel,
        out_shape=jax.ShapeDtypeStruct((m, n3), jnp.float32),
        grid=(kp // tk,),
        in_specs=[
            pl.BlockSpec((m, tk), lambda kk: (0, kk)),
            pl.BlockSpec((tk, n2), lambda kk: (kk, 0)),
            pl.BlockSpec((1, n2), lambda kk: (0, 0)),
            pl.BlockSpec((1, n2), lambda kk: (0, 0)),
            pl.BlockSpec((n2, n3), lambda kk: (0, 0)),
            pl.BlockSpec((1, n3), lambda kk: (0, 0)),
            pl.BlockSpec((1, n3), lambda kk: (0, 0)),
        ],
        out_specs=pl.BlockSpec((m, n3), lambda kk: (0, 0)),
        scratch_shapes=[pltpu.VMEM((m, n2), jnp.float32)],
        compiler_params=pltpu.CompilerParams(
            dimension_semantics=("arbitrary",),
            vmem_limit_bytes=VMEM_LIMIT),
    )(a, w2, s4, t4, w3, s5, t5)


# ----------------------------------------------------------------------------
# Offline parameter preparation: BN folding, bf16 casts, lane-dense padding,
# kw-packed conv3x3 weights (layout (3, 3*cin, cp)), fc1 row permutation
# (kernel emits (p, c) flatten order vs PyTorch's (c, p)).
# ----------------------------------------------------------------------------
def prepare_params(params, *, cin, cmid, hidden1, hidden2, out_dim,
                   ho, wo, wf, pool_hw=7):
    cp = _round_up(cmid, 128)
    h1p = _round_up(hidden1, 128)
    h2p = _round_up(hidden2, 128)
    outp = _round_up(out_dim, 128)
    npool = pool_hw * pool_hw
    wf_pad = _round_up(wf, 8)

    prep = {}
    # conv3_w: (3, 3, cin, cmid) -> kw taps packed into contraction: (3, 3*cin, cp)
    w3 = params["conv3_w"].reshape(3, 3 * cin, cmid)
    prep["w3"] = _pad_axis(w3, 2, cp).astype(jnp.bfloat16)
    prep["w1"] = _pad_axis(_pad_axis(params["conv1_w"], 0, cp), 1, cp
                           ).astype(jnp.bfloat16)
    prep["s1"], prep["b1"] = _fold_pad_bn(params["bn1"], cp)
    prep["s2"], prep["b2"] = _fold_pad_bn(params["bn2"], cp)

    # Pool matrix over the full (ho, wf_pad) row-major window; columns with
    # w >= wo (wrap-around / width padding) get weight 0, so the in-kernel
    # shifted-window conv is exact.  bf16: averaging weights (1, 1/2, 1/4) are
    # exactly representable.
    prep["pt"] = jnp.asarray(
        adaptive_pool_matrix_t(ho, wo, wf_pad, pool_hw, pool_hw)
    ).astype(jnp.bfloat16)                                      # (49, ho*wf_pad)

    # fc1: PyTorch flatten order is (c, p); kernel emits (p, c) with c padded.
    fc1 = params["fc1_w"].reshape(cmid, npool, hidden1)
    fc1 = jnp.transpose(fc1, (1, 0, 2))                         # (p, c, j)
    fc1 = _pad_axis(_pad_axis(fc1, 1, cp), 2, h1p)
    prep["fc1"] = fc1.reshape(npool * cp, h1p).astype(jnp.bfloat16)
    prep["s3"], prep["b3"] = _fold_pad_bn(params["bn3"], h1p)

    prep["fc2"] = _pad_axis(_pad_axis(params["fc2_w"], 0, h1p), 1, h2p
                            ).astype(jnp.bfloat16)
    prep["s4"], prep["b4"] = _fold_pad_bn(params["bn4"], h2p)
    prep["fc3"] = _pad_axis(_pad_axis(params["fc3_w"], 0, h2p), 1, outp
                            ).astype(jnp.bfloat16)
    prep["s5"], prep["b5"] = _fold_pad_bn(params["bn5"], outp)
    return prep


# ----------------------------------------------------------------------------
# YOLOv1 forward (final_conv + linear head), all hot ops in Pallas
# ----------------------------------------------------------------------------
def yolo_v1_forward(x, prep, *, grid_size, num_classes, num_bbox=2):
    n, cin, hf, wf = x.shape
    ho, wo = hf - 2, wf - 2
    wf_pad = _round_up(wf, 8)
    cp = prep["w1"].shape[0]
    npool = 49
    depth = num_bbox * 5 + num_classes
    out_dim = grid_size * grid_size * depth

    # The shifted-window + zero-weighted-pool trick is only valid for this
    # exact 3x3 / valid / stride-1 geometry: assert the prepared shapes match.
    assert prep["w3"].shape[1] == 3 * cin, (prep["w3"].shape, cin)
    assert prep["pt"].shape == (npool, ho * wf_pad), (prep["pt"].shape, ho, wf_pad)

    # NHWC, width zero-padded to a multiple of 8 (sublane-aligned row stride),
    # flattened row-major, then the 3 kw taps packed into the channel dim so
    # the kernel does 3 dots of K=3*cin at 8-aligned slice offsets.
    xh = jnp.transpose(x, (0, 2, 3, 1))                         # (n, hf, wf, cin)
    xh = jnp.pad(xh, ((0, 0), (0, 0), (0, wf_pad - wf), (0, 0)))
    L = hf * wf_pad
    xf = xh.reshape(n, L, cin)
    xf = jnp.pad(xf, ((0, 0), (0, 2), (0, 0)))                  # room for kw shifts
    x_kw = jnp.concatenate([xf[:, 0:L, :], xf[:, 1:L + 1, :], xf[:, 2:L + 2, :]],
                           axis=-1).astype(jnp.bfloat16)        # (n, L, 3*cin)

    pooled = conv_head(x_kw, prep["w3"], prep["w1"], prep["pt"],
                       prep["s1"], prep["b1"], prep["s2"], prep["b2"],
                       wf_pad=wf_pad)                           # (n, 49, cp) bf16
    flat = pooled.reshape(n, npool * cp)

    # Pad batch/M to >=8 sublanes: the FC stages are weight-streaming GEMVs, so
    # extra rows are nearly free and stores become unmasked 8x128 blocks.
    m_pad = _round_up(max(n, 8), 8)
    flat = _pad_axis(flat, 0, m_pad)

    h1 = fused_matmul(flat, prep["fc1"], prep["s3"], prep["b3"],
                      act="leaky_relu", out_dtype=jnp.bfloat16)
    out = fc_tail(h1, prep["fc2"], prep["s4"], prep["b4"],
                  prep["fc3"], prep["s5"], prep["b5"])          # (m_pad, outp) f32
    out = out[:n, :out_dim]
    return out.reshape(-1, grid_size, grid_size, depth)


# ----------------------------------------------------------------------------
# Pure-JAX f32 reference (same inference semantics, no Pallas)
# ----------------------------------------------------------------------------
def reference_forward(x, params, *, grid_size, num_classes, num_bbox=2):
    n, cin, hf, wf = x.shape
    ho, wo = hf - 2, wf - 2
    xh = jnp.transpose(x, (0, 2, 3, 1))
    patches = jnp.stack([xh[:, kh:kh + ho, kw:kw + wo, :]
                         for kh in range(3) for kw in range(3)], axis=3)
    a = patches.reshape(n * ho * wo, 9 * cin)
    w3 = params["conv3_w"].reshape(9 * cin, -1)
    cmid = w3.shape[1]

    def bn_act(y, bn, act):
        s, b = bn_fold(*bn)
        y = y * s + b
        if act == "leaky":
            return jnp.where(y >= 0, y, 0.1 * y)
        if act == "sigmoid":
            return jax.nn.sigmoid(y)
        return y

    y = bn_act(a @ w3, params["bn1"], "leaky")
    y = bn_act(y @ params["conv1_w"], params["bn2"], "leaky")
    pt = jnp.asarray(adaptive_pool_matrix_t(ho, wo, wo, 7, 7))   # (49, ho*wo)
    y = y.reshape(n, ho * wo, cmid)
    pooled = jnp.einsum("ps,nsc->ncp", pt, y)                    # (n, c, p)
    flat = pooled.reshape(n, cmid * 49)
    h = bn_act(flat @ params["fc1_w"], params["bn3"], "leaky")
    h = bn_act(h @ params["fc2_w"], params["bn4"], "leaky")
    h = bn_act(h @ params["fc3_w"], params["bn5"], "sigmoid")
    depth = num_bbox * 5 + num_classes
    return h.reshape(-1, grid_size, grid_size, depth)


# ----------------------------------------------------------------------------
# Deterministic parameter initialization (synthetic; no checkpoint)
# ----------------------------------------------------------------------------
def init_params(key, cin, cmid, hidden1, hidden2, out_dim):
    keys = iter(jax.random.split(key, 25))

    def w(shape, fan_in):
        return ((2.0 / fan_in) ** 0.5) * jax.random.normal(
            next(keys), shape, dtype=jnp.float32)

    def bn(m):
        gamma = 1.0 + 0.1 * jax.random.normal(next(keys), (m,), dtype=jnp.float32)
        beta = 0.1 * jax.random.normal(next(keys), (m,), dtype=jnp.float32)
        mean = 0.1 * jax.random.normal(next(keys), (m,), dtype=jnp.float32)
        var = jax.random.uniform(next(keys), (m,), dtype=jnp.float32,
                                 minval=0.5, maxval=1.5)
        return gamma, beta, mean, var

    flat = cmid * 49
    p = {}
    p["conv3_w"] = w((3, 3, cin, cmid), 9 * cin)
    p["bn1"] = bn(cmid)
    p["conv1_w"] = w((cmid, cmid), cmid)
    p["bn2"] = bn(cmid)
    p["fc1_w"] = w((flat, hidden1), flat)
    p["bn3"] = bn(hidden1)
    p["fc2_w"] = w((hidden1, hidden2), hidden1)
    p["bn4"] = bn(hidden2)
    p["fc3_w"] = w((hidden2, out_dim), hidden2)
    p["bn5"] = bn(out_dim)
    return p


# ----------------------------------------------------------------------------
if __name__ == "__main__":
    # Scaled-down shapes (real model: fc_in=2048, Cmid=1024, 14x14 features,
    # 50176 -> 12544 -> 3136 -> grid*grid*(2*5+num_classes)).
    BATCH = 2
    FC_IN = 32        # stands in for 2048
    FEAT_HW = 11      # stands in for 14 (conv3x3 -> 9x9, adaptive pool -> 7x7)
    C_MID = 64        # stands in for 1024
    HIDDEN1 = 784     # stands in for 12544
    HIDDEN2 = 196     # stands in for 3136
    GRID = 2          # stands in for 7
    CLASS_NAMES = {"person": 0, "car": 1, "dog": 2}
    NUM_CLASSES = len(CLASS_NAMES)
    NUM_BBOX = 2
    OUT_DIM = GRID * GRID * (NUM_BBOX * 5 + NUM_CLASSES)

    key = jax.random.PRNGKey(0)
    k_x, k_p = jax.random.split(key)
    x = jax.random.normal(k_x, (BATCH, FC_IN, FEAT_HW, FEAT_HW), dtype=jnp.float32)
    params = init_params(k_p, FC_IN, C_MID, HIDDEN1, HIDDEN2, OUT_DIM)
    prep = prepare_params(params, cin=FC_IN, cmid=C_MID, hidden1=HIDDEN1,
                          hidden2=HIDDEN2, out_dim=OUT_DIM,
                          ho=FEAT_HW - 2, wo=FEAT_HW - 2, wf=FEAT_HW)

    fwd = jax.jit(functools.partial(yolo_v1_forward, grid_size=GRID,
                                    num_classes=NUM_CLASSES, num_bbox=NUM_BBOX))
    out = jax.block_until_ready(fwd(x, prep))

    assert out.shape == (BATCH, GRID, GRID, NUM_BBOX * 5 + NUM_CLASSES), out.shape
    assert bool(jnp.all(jnp.isfinite(out)))
    assert bool(jnp.all((out >= 0.0) & (out <= 1.0)))     # sigmoid output range

    ref = reference_forward(x, params, grid_size=GRID, num_classes=NUM_CLASSES,
                            num_bbox=NUM_BBOX)
    max_err = float(jnp.max(jnp.abs(out - ref)))
    assert max_err < 5e-2, f"max abs err vs f32 reference: {max_err}"

    print("KERNEL_OK")
</pallas_src>

<mosaic_0001>
module attributes {stable_mosaic.version = 11 : i64} {
  func.func @_matmul_bn_act_kernel(%arg0: i32, %arg1: i32, %arg2: memref<8x896xbf16, #tpu.memory_space<vmem>>, %arg3: memref<896x128xbf16, #tpu.memory_space<vmem>>, %arg4: memref<1x128xf32, #tpu.memory_space<vmem>>, %arg5: memref<1x128xf32, #tpu.memory_space<vmem>>, %arg6: memref<8x128xbf16, #tpu.memory_space<vmem>>, %arg7: memref<8x128xf32, #tpu.memory_space<vmem>>) attributes {dimension_semantics = [#tpu.dimension_semantics<parallel>, #tpu.dimension_semantics<arbitrary>], iteration_bounds = array<i64: 7, 7>, scalar_prefetch = 0 : i64, scratch_operands = 1 : i64, tpu.core_type = #tpu.core_type<tc>, window_params = [{transform_indices = @transform_0, window_bounds = array<i64: 8, 896>}, {transform_indices = @transform_1, window_bounds = array<i64: 896, 128>}, {transform_indices = @transform_2, window_bounds = array<i64: 1, 128>}, {transform_indices = @transform_3, window_bounds = array<i64: 1, 128>}, {transform_indices = @transform_4, window_bounds = array<i64: 8, 128>}]} {
    %c0_i32 = arith.constant 0 : i32
    %0 = arith.cmpi eq, %arg1, %c0_i32 : i32
    %1 = arith.extui %0 : i1 to i32
    %c0_i32_0 = arith.constant 0 : i32
    %2 = arith.cmpi ne, %1, %c0_i32_0 : i32
    scf.if %2 {
      %cst_9 = arith.constant 0.000000e+00 : f32
      %12 = vector.broadcast %cst_9 : f32 to vector<8x128xf32>
      %c0_10 = arith.constant 0 : index
      %c0_11 = arith.constant 0 : index
      %13 = vector.load %arg7[%c0_10, %c0_11] : memref<8x128xf32, #tpu.memory_space<vmem>>, vector<8x128xf32>
      tpu.vector_store %arg7[%c0_10, %c0_11], %12 {strides = array<i32>} : memref<8x128xf32, #tpu.memory_space<vmem>>, vector<8x128xf32>,
    } else {
    }
    %c0 = arith.constant 0 : index
    %c0_1 = arith.constant 0 : index
    %3 = vector.load %arg7[%c0, %c0_1] : memref<8x128xf32, #tpu.memory_space<vmem>>, vector<8x128xf32>
    %c0_2 = arith.constant 0 : index
    %c0_3 = arith.constant 0 : index
    %4 = vector.load %arg2[%c0_2, %c0_3] : memref<8x896xbf16, #tpu.memory_space<vmem>>, vector<8x896xbf16>
    %c0_4 = arith.constant 0 : index
    %c0_5 = arith.constant 0 : index
    %5 = vector.load %arg3[%c0_4, %c0_5] : memref<896x128xbf16, #tpu.memory_space<vmem>>, vector<896x128xbf16>
    %cst = arith.constant dense<0.000000e+00> : vector<8x128xf32>
    %6 = tpu.matmul %4, %5, %cst {dimension_numbers = #tpu.dot_dimension_numbers<[1], [0], [0], [1], [0, 0, 1, 1], [], []>} : vector<8x896xbf16>, vector<896x128xbf16>, vector<8x128xf32> -> vector<8x128xf32>
    %7 = arith.addf %3, %6 : vector<8x128xf32>
    %c0_6 = arith.constant 0 : index
    %c0_7 = arith.constant 0 : index
    %8 = vector.load %arg7[%c0_6, %c0_7] : memref<8x128xf32, #tpu.memory_space<vmem>>, vector<8x128xf32>
    tpu.vector_store %arg7[%c0_6, %c0_7], %7 {strides = array<i32>} : memref<8x128xf32, #tpu.memory_space<vmem>>, vector<8x128xf32>,
    %c6_i32 = arith.constant 6 : i32
    %9 = arith.cmpi eq, %arg1, %c6_i32 : i32
    %10 = arith.extui %9 : i1 to i32
    %c0_i32_8 = arith.constant 0 : i32
    %11 = arith.cmpi ne, %10, %c0_i32_8 : i32
    scf.if %11 {
      %c0_9 = arith.constant 0 : index
      %c0_10 = arith.constant 0 : index
      %12 = vector.load %arg7[%c0_9, %c0_10] : memref<8x128xf32, #tpu.memory_space<vmem>>, vector<8x128xf32>
      %c0_11 = arith.constant 0 : index
      %c0_12 = arith.constant 0 : index
      %13 = vector.load %arg4[%c0_11, %c0_12] : memref<1x128xf32, #tpu.memory_space<vmem>>, vector<1x128xf32>
      %14 = vector.broadcast %13 : vector<1x128xf32> to vector<8x128xf32>
      %15 = arith.mulf %12, %14 : vector<8x128xf32>
      %c0_13 = arith.constant 0 : index
      %c0_14 = arith.constant 0 : index
      %16 = vector.load %arg5[%c0_13, %c0_14] : memref<1x128xf32, #tpu.memory_space<vmem>>, vector<1x128xf32>
      %17 = vector.broadcast %16 : vector<1x128xf32> to vector<8x128xf32>
      %18 = arith.addf %15, %17 : vector<8x128xf32>
      %cst_15 = arith.constant 0.000000e+00 : f32
      %19 = vector.broadcast %cst_15 : f32 to vector<8x128xf32>
      %20 = arith.cmpf oge, %18, %19 : vector<8x128xf32>
      %cst_16 = arith.constant 1.000000e-01 : f32
      %21 = vector.broadcast %cst_16 : f32 to vector<8x128xf32>
      %22 = arith.mulf %21, %18 : vector<8x128xf32>
      %23 = arith.select %20, %18, %22 : vector<8x128xi1>, vector<8x128xf32>
      %24 = arith.truncf %23 : vector<8x128xf32> to vector<8x128xbf16>
      %c0_17 = arith.constant 0 : index
      %c0_18 = arith.constant 0 : index
      %25 = vector.load %arg6[%c0_17, %c0_18] : memref<8x128xbf16, #tpu.memory_space<vmem>>, vector<8x128xbf16>
      tpu.vector_store %arg6[%c0_17, %c0_18], %24 {strides = array<i32>} : memref<8x128xbf16, #tpu.memory_space<vmem>>, vector<8x128xbf16>,
    } else {
    }
    return
  }
  func.func @transform_0(%arg0: i32, %arg1: i32) -> (i32, i32) {
    %c0_i32 = arith.constant 0 : i32
    %c0_i32_0 = arith.constant 0 : i32
    return %c0_i32, %arg1 : i32, i32
  }
  func.func @transform_1(%arg0: i32, %arg1: i32) -> (i32, i32) {
    %c0_i32 = arith.constant 0 : i32
    return %arg1, %arg0 : i32, i32
  }
  func.func @transform_2(%arg0: i32, %arg1: i32) -> (i32, i32) {
    %c0_i32 = arith.constant 0 : i32
    %c0_i32_0 = arith.constant 0 : i32
    return %c0_i32, %arg0 : i32, i32
  }
  func.func @transform_3(%arg0: i32, %arg1: i32) -> (i32, i32) {
    %c0_i32 = arith.constant 0 : i32
    %c0_i32_0 = arith.constant 0 : i32
    return %c0_i32, %arg0 : i32, i32
  }
  func.func @transform_4(%arg0: i32, %arg1: i32) -> (i32, i32) {
    %c0_i32 = arith.constant 0 : i32
    %c0_i32_0 = arith.constant 0 : i32
    return %c0_i32, %arg0 : i32, i32
  }
}

module attributes {stable_mosaic.version = 11 : i64} {
  func.func @_fc_tail_kernel(%arg0: i32, %arg1: memref<8x896xbf16, #tpu.memory_space<vmem>>, %arg2: memref<896x256xbf16, #tpu.memory_space<vmem>>, %arg3: memref<1x256xf32, #tpu.memory_space<vmem>>, %arg4: memref<1x256xf32, #tpu.memory_space<vmem>>, %arg5: memref<256x128xbf16, #tpu.memory_space<vmem>>, %arg6: memref<1x128xf32, #tpu.memory_space<vmem>>, %arg7: memref<1x128xf32, #tpu.memory_space<vmem>>, %arg8: memref<8x128xf32, #tpu.memory_space<vmem>>, %arg9: memref<8x256xf32, #tpu.memory_space<vmem>>) attributes {dimension_semantics = [#tpu.dimension_semantics<arbitrary>], iteration_bounds = array<i64: 1>, scalar_prefetch = 0 : i64, scratch_operands = 1 : i64, tpu.core_type = #tpu.core_type<tc>, window_params = [{transform_indices = @transform_0, window_bounds = array<i64: 8, 896>}, {transform_indices = @transform_1, window_bounds = array<i64: 896, 256>}, {pipeline_mode = #tpu.pipeline_mode<synchronous>, transform_indices = @transform_2, window_bounds = array<i64: 1, 256>}, {pipeline_mode = #tpu.pipeline_mode<synchronous>, transform_indices = @transform_3, window_bounds = array<i64: 1, 256>}, {pipeline_mode = #tpu.pipeline_mode<synchronous>, transform_indices = @transform_4, window_bounds = array<i64: 256, 128>}, {pipeline_mode = #tpu.pipeline_mode<synchronous>, transform_indices = @transform_5, window_bounds = array<i64: 1, 128>}, {pipeline_mode = #tpu.pipeline_mode<synchronous>, transform_indices = @transform_6, window_bounds = array<i64: 1, 128>}, {pipeline_mode = #tpu.pipeline_mode<synchronous>, transform_indices = @transform_7, window_bounds = array<i64: 8, 128>}]} {
    %c0_i32 = arith.constant 0 : i32
    %0 = arith.cmpi eq, %arg0, %c0_i32 : i32
    %1 = arith.extui %0 : i1 to i32
    %c0_i32_0 = arith.constant 0 : i32
    %2 = arith.cmpi ne, %1, %c0_i32_0 : i32
    scf.if %2 {
      %cst_10 = arith.constant 0.000000e+00 : f32
      %12 = vector.broadcast %cst_10 : f32 to vector<8x256xf32>
      %c0_11 = arith.constant 0 : index
      %c0_12 = arith.constant 0 : index
      %13 = vector.load %arg9[%c0_11, %c0_12] : memref<8x256xf32, #tpu.memory_space<vmem>>, vector<8x256xf32>
      tpu.vector_store %arg9[%c0_11, %c0_12], %12 {strides = array<i32>} : memref<8x256xf32, #tpu.memory_space<vmem>>, vector<8x256xf32>,
    } else {
    }
    %c0 = arith.constant 0 : index
    %c0_1 = arith.constant 0 : index
    %3 = vector.load %arg9[%c0, %c0_1] : memref<8x256xf32, #tpu.memory_space<vmem>>, vector<8x256xf32>
    %c0_2 = arith.constant 0 : index
    %c0_3 = arith.constant 0 : index
    %4 = vector.load %arg1[%c0_2, %c0_3] : memref<8x896xbf16, #tpu.memory_space<vmem>>, vector<8x896xbf16>
    %c0_4 = arith.constant 0 : index
    %c0_5 = arith.constant 0 : index
    %5 = vector.load %arg2[%c0_4, %c0_5] : memref<896x256xbf16, #tpu.memory_space<vmem>>, vector<896x256xbf16>
    %cst = arith.constant dense<0.000000e+00> : vector<8x256xf32>
    %6 = tpu.matmul %4, %5, %cst {dimension_numbers = #tpu.dot_dimension_numbers<[1], [0], [0], [1], [0, 0, 1, 1], [], []>} : vector<8x896xbf16>, vector<896x256xbf16>, vector<8x256xf32> -> vector<8x256xf32>
    %7 = arith.addf %3, %6 : vector<8x256xf32>
    %c0_6 = arith.constant 0 : index
    %c0_7 = arith.constant 0 : index
    %8 = vector.load %arg9[%c0_6, %c0_7] : memref<8x256xf32, #tpu.memory_space<vmem>>, vector<8x256xf32>
    tpu.vector_store %arg9[%c0_6, %c0_7], %7 {strides = array<i32>} : memref<8x256xf32, #tpu.memory_space<vmem>>, vector<8x256xf32>,
    %c0_i32_8 = arith.constant 0 : i32
    %9 = arith.cmpi eq, %arg0, %c0_i32_8 : i32
    %10 = arith.extui %9 : i1 to i32
    %c0_i32_9 = arith.constant 0 : i32
    %11 = arith.cmpi ne, %10, %c0_i32_9 : i32
    scf.if %11 {
      %c0_10 = arith.constant 0 : index
      %c0_11 = arith.constant 0 : index
      %12 = vector.load %arg9[%c0_10, %c0_11] : memref<8x256xf32, #tpu.memory_space<vmem>>, vector<8x256xf32>
      %c0_12 = arith.constant 0 : index
      %c0_13 = arith.constant 0 : index
      %13 = vector.load %arg3[%c0_12, %c0_13] : memref<1x256xf32, #tpu.memory_space<vmem>>, vector<1x256xf32>
      %14 = vector.broadcast %13 : vector<1x256xf32> to vector<8x256xf32>
      %15 = arith.mulf %12, %14 : vector<8x256xf32>
      %c0_14 = arith.constant 0 : index
      %c0_15 = arith.constant 0 : index
      %16 = vector.load %arg4[%c0_14, %c0_15] : memref<1x256xf32, #tpu.memory_space<vmem>>, vector<1x256xf32>
      %17 = vector.broadcast %16 : vector<1x256xf32> to vector<8x256xf32>
      %18 = arith.addf %15, %17 : vector<8x256xf32>
      %cst_16 = arith.constant 0.000000e+00 : f32
      %19 = vector.broadcast %cst_16 : f32 to vector<8x256xf32>
      %20 = arith.cmpf oge, %18, %19 : vector<8x256xf32>
      %cst_17 = arith.constant 1.000000e-01 : f32
      %21 = vector.broadcast %cst_17 : f32 to vector<8x256xf32>
      %22 = arith.mulf %21, %18 : vector<8x256xf32>
      %23 = arith.select %20, %18, %22 : vector<8x256xi1>, vector<8x256xf32>
      %24 = arith.truncf %23 : vector<8x256xf32> to vector<8x256xbf16>
      %c0_18 = arith.constant 0 : index
      %c0_19 = arith.constant 0 : index
      %25 = vector.load %arg5[%c0_18, %c0_19] : memref<256x128xbf16, #tpu.memory_space<vmem>>, vector<256x128xbf16>
      %cst_20 = arith.constant dense<0.000000e+00> : vector<8x128xf32>
      %26 = tpu.matmul %24, %25, %cst_20 {dimension_numbers = #tpu.dot_dimension_numbers<[1], [0], [0], [1], [0, 0, 1, 1], [], []>} : vector<8x256xbf16>, vector<256x128xbf16>, vector<8x128xf32> -> vector<8x128xf32>
      %c0_21 = arith.constant 0 : index
      %c0_22 = arith.constant 0 : index
      %27 = vector.load %arg6[%c0_21, %c0_22] : memref<1x128xf32, #tpu.memory_space<vmem>>, vector<1x128xf32>
      %28 = vector.broadcast %27 : vector<1x128xf32> to vector<8x128xf32>
      %29 = arith.mulf %26, %28 : vector<8x128xf32>
      %c0_23 = arith.constant 0 : index
      %c0_24 = arith.constant 0 : index
      %30 = vector.load %arg7[%c0_23, %c0_24] : memref<1x128xf32, #tpu.memory_space<vmem>>, vector<1x128xf32>
      %31 = vector.broadcast %30 : vector<1x128xf32> to vector<8x128xf32>
      %32 = arith.addf %29, %31 : vector<8x128xf32>
      %33 = arith.negf %32 : vector<8x128xf32>
      %34 = math.exp %33 : vector<8x128xf32>
      %cst_25 = arith.constant 1.000000e+00 : f32
      %35 = vector.broadcast %cst_25 : f32 to vector<8x128xf32>
      %36 = arith.addf %35, %34 : vector<8x128xf32>
      %37 = arith.divf %35, %36 : vector<8x128xf32>
      %c0_26 = arith.constant 0 : index
      %c0_27 = arith.constant 0 : index
      %38 = vector.load %arg8[%c0_26, %c0_27] : memref<8x128xf32, #tpu.memory_space<vmem>>, vector<8x128xf32>
      tpu.vector_store %arg8[%c0_26, %c0_27], %37 {strides = array<i32>} : memref<8x128xf32, #tpu.memory_space<vmem>>, vector<8x128xf32>,
    } else {
    }
    return
  }
  func.func @transform_0(%arg0: i32) -> (i32, i32) {
    %c0_i32 = arith.constant 0 : i32
    %c0_i32_0 = arith.constant 0 : i32
    return %c0_i32, %arg0 : i32, i32
  }
  func.func @transform_1(%arg0: i32) -> (i32, i32) {
    %c0_i32 = arith.constant 0 : i32
    %c0_i32_0 = arith.constant 0 : i32
    return %arg0, %c0_i32 : i32, i32
  }
  func.func @transform_2(%arg0: i32) -> (i32, i32) {
    %c0_i32 = arith.constant 0 : i32
    %c0_i32_0 = arith.constant 0 : i32
    %c0_i32_1 = arith.constant 0 : i32
    return %c0_i32, %c0_i32_0 : i32, i32
  }
  func.func @transform_3(%arg0: i32) -> (i32, i32) {
    %c0_i32 = arith.constant 0 : i32
    %c0_i32_0 = arith.constant 0 : i32
    %c0_i32_1 = arith.constant 0 : i32
    return %c0_i32, %c0_i32_0 : i32, i32
  }
  func.func @transform_4(%arg0: i32) -> (i32, i32) {
    %c0_i32 = arith.constant 0 : i32
    %c0_i32_0 = arith.constant 0 : i32
    %c0_i32_1 = arith.constant 0 : i32
    return %c0_i32, %c0_i32_0 : i32, i32
  }
  func.func @transform_5(%arg0: i32) -> (i32, i32) {
    %c0_i32 = arith.constant 0 : i32
    %c0_i32_0 = arith.constant 0 : i32
    %c0_i32_1 = arith.constant 0 : i32
    return %c0_i32, %c0_i32_0 : i32, i32
  }
  func.func @transform_6(%arg0: i32) -> (i32, i32) {
    %c0_i32 = arith.constant 0 : i32
    %c0_i32_0 = arith.constant 0 : i32
    %c0_i32_1 = arith.constant 0 : i32
    return %c0_i32, %c0_i32_0 : i32, i32
  }
  func.func @transform_7(%arg0: i32) -> (i32, i32) {
    %c0_i32 = arith.constant 0 : i32
    %c0_i32_0 = arith.constant 0 : i32
    %c0_i32_1 = arith.constant 0 : i32
    return %c0_i32, %c0_i32_0 : i32, i32
  }
}

module attributes {stable_mosaic.version = 11 : i64} {
  func.func @_conv_head_kernel(%arg0: i32, %arg1: i32, %arg2: memref<1x176x96xbf16, #tpu.memory_space<vmem>>, %arg3: memref<3x96x128xbf16, #tpu.memory_space<vmem>>, %arg4: memref<128x128xbf16, #tpu.memory_space<vmem>>, %arg5: memref<49x144xbf16, #tpu.memory_space<vmem>>, %arg6: memref<1x128xf32, #tpu.memory_space<vmem>>, %arg7: memref<1x128xf32, #tpu.memory_space<vmem>>, %arg8: memref<1x128xf32, #tpu.memory_space<vmem>>, %arg9: memref<1x128xf32, #tpu.memory_space<vmem>>, %arg10: memref<1x49x128xbf16, #tpu.memory_space<vmem>>, %arg11: memref<144x128xf32, #tpu.memory_space<vmem>>) attributes {dimension_semantics = [#tpu.dimension_semantics<parallel>, #tpu.dimension_semantics<arbitrary>], iteration_bounds = array<i64: 2, 1>, scalar_prefetch = 0 : i64, scratch_operands = 1 : i64, tpu.core_type = #tpu.core_type<tc>, window_params = [{transform_indices = @transform_0, window_bounds = array<i64: 1, 176, 96>}, {transform_indices = @transform_1, window_bounds = array<i64: 3, 96, 128>}, {pipeline_mode = #tpu.pipeline_mode<synchronous>, transform_indices = @transform_2, window_bounds = array<i64: 128, 128>}, {pipeline_mode = #tpu.pipeline_mode<synchronous>, transform_indices = @transform_3, window_bounds = array<i64: 49, 144>}, {pipeline_mode = #tpu.pipeline_mode<synchronous>, transform_indices = @transform_4, window_bounds = array<i64: 1, 128>}, {pipeline_mode = #tpu.pipeline_mode<synchronous>, transform_indices = @transform_5, window_bounds = array<i64: 1, 128>}, {pipeline_mode = #tpu.pipeline_mode<synchronous>, transform_indices = @transform_6, window_bounds = array<i64: 1, 128>}, {pipeline_mode = #tpu.pipeline_mode<synchronous>, transform_indices = @transform_7, window_bounds = array<i64: 1, 128>}, {transform_indices = @transform_8, window_bounds = array<i64: 1, 49, 128>}]} {
    %c0_i32 = arith.constant 0 : i32
    %0 = arith.cmpi eq, %arg1, %c0_i32 : i32
    %1 = arith.extui %0 : i1 to i32
    %c0_i32_0 = arith.constant 0 : i32
    %2 = arith.cmpi ne, %1, %c0_i32_0 : i32
    scf.if %2 {
      %cst_30 = arith.constant 0.000000e+00 : f32
      %30 = vector.broadcast %cst_30 : f32 to vector<144x128xf32>
      %c0_31 = arith.constant 0 : index
      %c0_32 = arith.constant 0 : index
      %31 = vector.load %arg11[%c0_31, %c0_32] : memref<144x128xf32, #tpu.memory_space<vmem>>, vector<144x128xf32>
      tpu.vector_store %arg11[%c0_31, %c0_32], %30 {strides = array<i32>} : memref<144x128xf32, #tpu.memory_space<vmem>>, vector<144x128xf32>,
    } else {
    }
    %c0 = arith.constant 0 : index
    %c0_1 = arith.constant 0 : index
    %c0_2 = arith.constant 0 : index
    %3 = vector.load %arg2[%c0, %c0_1, %c0_2] : memref<1x176x96xbf16, #tpu.memory_space<vmem>>, vector<1x144x96xbf16>
    %4 = vector.shape_cast %3 : vector<1x144x96xbf16> to vector<144x96xbf16>
    %c0_3 = arith.constant 0 : index
    %c0_4 = arith.constant 0 : index
    %5 = vector.load %arg11[%c0_3, %c0_4] : memref<144x128xf32, #tpu.memory_space<vmem>>, vector<144x128xf32>
    %c0_5 = arith.constant 0 : index
    %c0_6 = arith.constant 0 : index
    %c0_7 = arith.constant 0 : index
    %6 = vector.load %arg3[%c0_5, %c0_6, %c0_7] : memref<3x96x128xbf16, #tpu.memory_space<vmem>>, vector<1x96x128xbf16>
    %7 = vector.shape_cast %6 : vector<1x96x128xbf16> to vector<96x128xbf16>
    %cst = arith.constant dense<0.000000e+00> : vector<144x128xf32>
    %8 = tpu.matmul %4, %7, %cst {dimension_numbers = #tpu.dot_dimension_numbers<[1], [0], [0], [1], [0, 0, 1, 1], [], []>} : vector<144x96xbf16>, vector<96x128xbf16>, vector<144x128xf32> -> vector<144x128xf32>
    %9 = arith.addf %5, %8 : vector<144x128xf32>
    %c0_8 = arith.constant 0 : index
    %c0_9 = arith.constant 0 : index
    %10 = vector.load %arg11[%c0_8, %c0_9] : memref<144x128xf32, #tpu.memory_space<vmem>>, vector<144x128xf32>
    tpu.vector_store %arg11[%c0_8, %c0_9], %9 {strides = array<i32>} : memref<144x128xf32, #tpu.memory_space<vmem>>, vector<144x128xf32>,
    %c0_10 = arith.constant 0 : index
    %c16 = arith.constant 16 : index
    %c0_11 = arith.constant 0 : index
    %11 = vector.load %arg2[%c0_10, %c16, %c0_11] : memref<1x176x96xbf16, #tpu.memory_space<vmem>>, vector<1x144x96xbf16>
    %12 = vector.shape_cast %11 : vector<1x144x96xbf16> to vector<144x96xbf16>
    %c0_12 = arith.constant 0 : index
    %c0_13 = arith.constant 0 : index
    %13 = vector.load %arg11[%c0_12, %c0_13] : memref<144x128xf32, #tpu.memory_space<vmem>>, vector<144x128xf32>
    %c1 = arith.constant 1 : index
    %c0_14 = arith.constant 0 : index
    %c0_15 = arith.constant 0 : index
    %14 = vector.load %arg3[%c1, %c0_14, %c0_15] : memref<3x96x128xbf16, #tpu.memory_space<vmem>>, vector<1x96x128xbf16>
    %15 = vector.shape_cast %14 : vector<1x96x128xbf16> to vector<96x128xbf16>
    %cst_16 = arith.constant dense<0.000000e+00> : vector<144x128xf32>
    %16 = tpu.matmul %12, %15, %cst_16 {dimension_numbers = #tpu.dot_dimension_numbers<[1], [0], [0], [1], [0, 0, 1, 1], [], []>} : vector<144x96xbf16>, vector<96x128xbf16>, vector<144x128xf32> -> vector<144x128xf32>
    %17 = arith.addf %13, %16 : vector<144x128xf32>
    %c0_17 = arith.constant 0 : index
    %c0_18 = arith.constant 0 : index
    %18 = vector.load %arg11[%c0_17, %c0_18] : memref<144x128xf32, #tpu.memory_space<vmem>>, vector<144x128xf32>
    tpu.vector_store %arg11[%c0_17, %c0_18], %17 {strides = array<i32>} : memref<144x128xf32, #tpu.memory_space<vmem>>, vector<144x128xf32>,
    %c0_19 = arith.constant 0 : index
    %c32 = arith.constant 32 : index
    %c0_20 = arith.constant 0 : index
    %19 = vector.load %arg2[%c0_19, %c32, %c0_20] : memref<1x176x96xbf16, #tpu.memory_space<vmem>>, vector<1x144x96xbf16>
    %20 = vector.shape_cast %19 : vector<1x144x96xbf16> to vector<144x96xbf16>
    %c0_21 = arith.constant 0 : index
    %c0_22 = arith.constant 0 : index
    %21 = vector.load %arg11[%c0_21, %c0_22] : memref<144x128xf32, #tpu.memory_space<vmem>>, vector<144x128xf32>
    %c2 = arith.constant 2 : index
    %c0_23 = arith.constant 0 : index
    %c0_24 = arith.constant 0 : index
    %22 = vector.load %arg3[%c2, %c0_23, %c0_24] : memref<3x96x128xbf16, #tpu.memory_space<vmem>>, vector<1x96x128xbf16>
    %23 = vector.shape_cast %22 : vector<1x96x128xbf16> to vector<96x128xbf16>
    %cst_25 = arith.constant dense<0.000000e+00> : vector<144x128xf32>
    %24 = tpu.matmul %20, %23, %cst_25 {dimension_numbers = #tpu.dot_dimension_numbers<[1], [0], [0], [1], [0, 0, 1, 1], [], []>} : vector<144x96xbf16>, vector<96x128xbf16>, vector<144x128xf32> -> vector<144x128xf32>
    %25 = arith.addf %21, %24 : vector<144x128xf32>
    %c0_26 = arith.constant 0 : index
    %c0_27 = arith.constant 0 : index
    %26 = vector.load %arg11[%c0_26, %c0_27] : memref<144x128xf32, #tpu.memory_space<vmem>>, vector<144x128xf32>
    tpu.vector_store %arg11[%c0_26, %c0_27], %25 {strides = array<i32>} : memref<144x128xf32, #tpu.memory_space<vmem>>, vector<144x128xf32>,
    %c0_i32_28 = arith.constant 0 : i32
    %27 = arith.cmpi eq, %arg1, %c0_i32_28 : i32
    %28 = arith.extui %27 : i1 to i32
    %c0_i32_29 = arith.constant 0 : i32
    %29 = arith.cmpi ne, %28, %c0_i32_29 : i32
    scf.if %29 {
      %c0_30 = arith.constant 0 : index
      %c0_31 = arith.constant 0 : index
      %30 = vector.load %arg11[%c0_30, %c0_31] : memref<144x128xf32, #tpu.memory_space<vmem>>, vector<144x128xf32>
      %c0_32 = arith.constant 0 : index
      %c0_33 = arith.constant 0 : index
      %31 = vector.load %arg6[%c0_32, %c0_33] : memref<1x128xf32, #tpu.memory_space<vmem>>, vector<1x128xf32>
      %32 = vector.broadcast %31 : vector<1x128xf32> to vector<144x128xf32>
      %33 = arith.mulf %30, %32 : vector<144x128xf32>
      %c0_34 = arith.constant 0 : index
      %c0_35 = arith.constant 0 : index
      %34 = vector.load %arg7[%c0_34, %c0_35] : memref<1x128xf32, #tpu.memory_space<vmem>>, vector<1x128xf32>
      %35 = vector.broadcast %34 : vector<1x128xf32> to vector<144x128xf32>
      %36 = arith.addf %33, %35 : vector<144x128xf32>
      %cst_36 = arith.constant 0.000000e+00 : f32
      %37 = vector.broadcast %cst_36 : f32 to vector<144x128xf32>
      %38 = arith.cmpf oge, %36, %37 : vector<144x128xf32>
      %cst_37 = arith.constant 1.000000e-01 : f32
      %39 = vector.broadcast %cst_37 : f32 to vector<144x128xf32>
      %40 = arith.mulf %39, %36 : vector<144x128xf32>
      %41 = arith.select %38, %36, %40 : vector<144x128xi1>, vector<144x128xf32>
      %42 = arith.truncf %41 : vector<144x128xf32> to vector<144x128xbf16>
      %c0_38 = arith.constant 0 : index
      %c0_39 = arith.constant 0 : index
      %43 = vector.load %arg4[%c0_38, %c0_39] : memref<128x128xbf16, #tpu.memory_space<vmem>>, vector<128x128xbf16>
      %cst_40 = arith.constant dense<0.000000e+00> : vector<144x128xf32>
      %44 = tpu.matmul %42, %43, %cst_40 {dimension_numbers = #tpu.dot_dimension_numbers<[1], [0], [0], [1], [0, 0, 1, 1], [], []>} : vector<144x128xbf16>, vector<128x128xbf16>, vector<144x128xf32> -> vector<144x128xf32>
      %c0_41 = arith.constant 0 : index
      %c0_42 = arith.constant 0 : index
      %45 = vector.load %arg8[%c0_41, %c0_42] : memref<1x128xf32, #tpu.memory_space<vmem>>, vector<1x128xf32>
      %46 = vector.broadcast %45 : vector<1x128xf32> to vector<144x128xf32>
      %47 = arith.mulf %44, %46 : vector<144x128xf32>
      %c0_43 = arith.constant 0 : index
      %c0_44 = arith.constant 0 : index
      %48 = vector.load %arg9[%c0_43, %c0_44] : memref<1x128xf32, #tpu.memory_space<vmem>>, vector<1x128xf32>
      %49 = vector.broadcast %48 : vector<1x128xf32> to vector<144x128xf32>
      %50 = arith.addf %47, %49 : vector<144x128xf32>
      %cst_45 = arith.constant 0.000000e+00 : f32
      %51 = vector.broadcast %cst_45 : f32 to vector<144x128xf32>
      %52 = arith.cmpf oge, %50, %51 : vector<144x128xf32>
      %cst_46 = arith.constant 1.000000e-01 : f32
      %53 = vector.broadcast %cst_46 : f32 to vector<144x128xf32>
      %54 = arith.mulf %53, %50 : vector<144x128xf32>
      %55 = arith.select %52, %50, %54 : vector<144x128xi1>, vector<144x128xf32>
      %c0_47 = arith.constant 0 : index
      %c0_48 = arith.constant 0 : index
      %56 = vector.load %arg5[%c0_47, %c0_48] : memref<49x144xbf16, #tpu.memory_space<vmem>>, vector<49x144xbf16>
      %57 = arith.truncf %55 : vector<144x128xf32> to vector<144x128xbf16>
      %cst_49 = arith.constant dense<0.000000e+00> : vector<49x128xf32>
      %58 = tpu.matmul %56, %57, %cst_49 {dimension_numbers = #tpu.dot_dimension_numbers<[1], [0], [0], [1], [0, 0, 1, 1], [], []>} : vector<49x144xbf16>, vector<144x128xbf16>, vector<49x128xf32> -> vector<49x128xf32>
      %59 = arith.truncf %58 : vector<49x128xf32> to vector<49x128xbf16>
      %c0_50 = arith.constant 0 : index
      %c0_51 = arith.constant 0 : index
      %c0_52 = arith.constant 0 : index
      %60 = vector.load %arg10[%c0_50, %c0_51, %c0_52] : memref<1x49x128xbf16, #tpu.memory_space<vmem>>, vector<1x49x128xbf16>
      %61 = vector.shape_cast %60 : vector<1x49x128xbf16> to vector<49x128xbf16>
      %62 = vector.shape_cast %59 : vector<49x128xbf16> to vector<1x49x128xbf16>
      tpu.vector_store %arg10[%c0_50, %c0_51, %c0_52], %62 {strides = array<i32>} : memref<1x49x128xbf16, #tpu.memory_space<vmem>>, vector<1x49x128xbf16>,
    } else {
    }
    return
  }
  func.func @transform_0(%arg0: i32, %arg1: i32) -> (i32, i32, i32) {
    %c0_i32 = arith.constant 0 : i32
    %c0_i32_0 = arith.constant 0 : i32
    return %arg0, %c0_i32, %arg1 : i32, i32, i32
  }
  func.func @transform_1(%arg0: i32, %arg1: i32) -> (i32, i32, i32) {
    %c0_i32 = arith.constant 0 : i32
    %c0_i32_0 = arith.constant 0 : i32
    %c0_i32_1 = arith.constant 0 : i32
    return %c0_i32, %arg1, %c0_i32_0 : i32, i32, i32
  }
  func.func @transform_2(%arg0: i32, %arg1: i32) -> (i32, i32) {
    %c0_i32 = arith.constant 0 : i32
    %c0_i32_0 = arith.constant 0 : i32
    %c0_i32_1 = arith.constant 0 : i32
    return %c0_i32, %c0_i32_0 : i32, i32
  }
  func.func @transform_3(%arg0: i32, %arg1: i32) -> (i32, i32) {
    %c0_i32 = arith.constant 0 : i32
    %c0_i32_0 = arith.constant 0 : i32
    %c0_i32_1 = arith.constant 0 : i32
    return %c0_i32, %c0_i32_0 : i32, i32
  }
  func.func @transform_4(%arg0: i32, %arg1: i32) -> (i32, i32) {
    %c0_i32 = arith.constant 0 : i32
    %c0_i32_0 = arith.constant 0 : i32
    %c0_i32_1 = arith.constant 0 : i32
    return %c0_i32, %c0_i32_0 : i32, i32
  }
  func.func @transform_5(%arg0: i32, %arg1: i32) -> (i32, i32) {
    %c0_i32 = arith.constant 0 : i32
    %c0_i32_0 = arith.constant 0 : i32
    %c0_i32_1 = arith.constant 0 : i32
    return %c0_i32, %c0_i32_0 : i32, i32
  }
  func.func @transform_6(%arg0: i32, %arg1: i32) -> (i32, i32) {
    %c0_i32 = arith.constant 0 : i32
    %c0_i32_0 = arith.constant 0 : i32
    %c0_i32_1 = arith.constant 0 : i32
    return %c0_i32, %c0_i32_0 : i32, i32
  }
  func.func @transform_7(%arg0: i32, %arg1: i32) -> (i32, i32) {
    %c0_i32 = arith.constant 0 : i32
    %c0_i32_0 = arith.constant 0 : i32
    %c0_i32_1 = arith.constant 0 : i32
    return %c0_i32, %c0_i32_0 : i32, i32
  }
  func.func @transform_8(%arg0: i32, %arg1: i32) -> (i32, i32, i32) {
    %c0_i32 = arith.constant 0 : i32
    %c0_i32_0 = arith.constant 0 : i32
    %c0_i32_1 = arith.constant 0 : i32
    return %arg0, %c0_i32, %c0_i32_0 : i32, i32, i32
  }
}

</mosaic_0001>

<bundles_post_ra>
// kernel: yolo_v1_forward.5
= control target key start
LH: loop header
LB: loop body
LE: loop exit
PB: predicated region body
PF: predicated region fallthrough
CT: control target
= control target key end

     0   :  { %s1954_s1 = inlined_call_operand.vmem [shape: bf16[896,256], index: 1, kind: input, shape index: {}]   ;;  %s1955_s0 = inlined_call_operand.vmem [shape: bf16[8,896], index: 0, kind: input, shape index: {}]   ;;  %s1956_s4 = inlined_call_operand.vmem [shape: bf16[256,128], index: 4, kind: input, shape index: {}]   ;;  %s1957_s2 = inlined_call_operand.vmem [shape: f32[1,256], index: 2, kind: input, shape index: {}]   ;;  %s1958_s3 = inlined_call_operand.vmem [shape: f32[1,256], index: 3, kind: input, shape index: {}]   ;;  %s1959_s5 = inlined_call_operand.vmem [shape: f32[1,128], index: 5, kind: input, shape index: {}]   ;;  %s1960_s6 = inlined_call_operand.vmem [shape: f32[1,128], index: 6, kind: input, shape index: {}]   ;;  %s1961_s7 = inlined_call_operand.vmem [shape: f32[8,128], index: 7, kind: output, shape index: {}]  }
   0x1   :  { %v1301_v0 = vld [vmem:[%s1954_s1 + $0x74] ss:$8 sps:$4 sm:$0xff]   ;;  %v1305_v2 = vld [vmem:[%s1954_s1 + $0x70] ss:$8 sps:$4 sm:$0xff]   ;;  %v1307_v4 = vld [vmem:[%s1954_s1 + $0x64] ss:$8 sps:$4 sm:$0xff]  }
   0x2   :  { %v1303_v1 = vld [vmem:[%s1954_s1 + $0x174] ss:$8 sps:$4 sm:$0xff]   ;;  %736 = vmatprep.subr.bf16.mxu0 %v1301_v0  ;;  %v1306_v3 = vld [vmem:[%s1954_s1 + $0x170] ss:$8 sps:$4 sm:$0xff]   ;;  %v1309_v5 = vld [vmem:[%s1954_s1 + $0x164] ss:$8 sps:$4 sm:$0xff]  }
   0x3   :  { %777 = vmatprep.subr.bf16.mxu1 %v1303_v1  ;;  %737 = vmatpush1.bf16.msra.mxu0 %v1305_v2  ;;  %v1311_v6 = vld [vmem:[%s1954_s1 + $0x60] ss:$8 sps:$4 sm:$0xff]   ;;  %v1313_v8 = vld [vmem:[%s1954_s1 + $0x54] ss:$8 sps:$4 sm:$0xff]   ;;  %v1317_v10 = vld [vmem:[%s1954_s1 + $0x50] ss:$8 sps:$4 sm:$0xff]  }
   0x4   :  { %778 = vmatpush1.bf16.msra.mxu1 %v1306_v3  ;;  %738 = vmatprep.subr.bf16.mxu0 %v1307_v4  ;;  %v1312_v7 = vld [vmem:[%s1954_s1 + $0x160] ss:$8 sps:$4 sm:$0xff]   ;;  %v1315_v9 = vld [vmem:[%s1954_s1 + $0x154] ss:$8 sps:$4 sm:$0xff]   ;;  %v1318_v11 = vld [vmem:[%s1954_s1 + $0x150] ss:$8 sps:$4 sm:$0xff]  }
   0x5   :  { %779 = vmatprep.subr.bf16.mxu1 %v1309_v5  ;;  %v1319_v12 = vld [vmem:[%s1954_s1 + $0x44] ss:$8 sps:$4 sm:$0xff]   ;;  %v1323_v14 = vld [vmem:[%s1954_s1 + $0x40] ss:$8 sps:$4 sm:$0xff]   ;;  %v1325_v16 = vld [vmem:[%s1954_s1 + $0x34] ss:$8 sps:$4 sm:$0xff]  }
   0x6   :  { %v1321_v13 = vld [vmem:[%s1954_s1 + $0x144] ss:$8 sps:$4 sm:$0xff]   ;;  %v1324_v15 = vld [vmem:[%s1954_s1 + $0x140] ss:$8 sps:$4 sm:$0xff]   ;;  %v1327_v17 = vld [vmem:[%s1954_s1 + $0x134] ss:$8 sps:$4 sm:$0xff]  }
   0x7   :  { %739 = vmatpush1.bf16.msra.mxu0 %v1311_v6  ;;  %v1329_v18 = vld [vmem:[%s1954_s1 + $0x30] ss:$8 sps:$4 sm:$0xff]   ;;  %v1331_v20 = vld [vmem:[%s1954_s1 + $0x24] ss:$8 sps:$4 sm:$0xff]   ;;  %v1335_v22 = vld [vmem:[%s1954_s1 + $0x20] ss:$8 sps:$4 sm:$0xff]  }
   0x8   :  { %780 = vmatpush1.bf16.msra.mxu1 %v1312_v7  ;;  %740 = vmatprep.subr.bf16.mxu0 %v1313_v8  ;;  %v1330_v19 = vld [vmem:[%s1954_s1 + $0x130] ss:$8 sps:$4 sm:$0xff]   ;;  %v1333_v21 = vld [vmem:[%s1954_s1 + $0x124] ss:$8 sps:$4 sm:$0xff]   ;;  %v1336_v23 = vld [vmem:[%s1954_s1 + $0x120] ss:$8 sps:$4 sm:$0xff]  }
   0x9   :  { %781 = vmatprep.subr.bf16.mxu1 %v1315_v9  ;;  %v1337_v24 = vld [vmem:[%s1954_s1 + $0x14] ss:$8 sps:$4 sm:$0xff]   ;;  %v1341_v26 = vld [vmem:[%s1954_s1 + $0x10] ss:$8 sps:$4 sm:$0xff]   ;;  %v1343_v28 = vld [vmem:[%s1954_s1 + $0x4] ss:$8 sps:$4 sm:$0xff]  }
   0xa   :  { %v1339_v25 = vld [vmem:[%s1954_s1 + $0x114] ss:$8 sps:$4 sm:$0xff]   ;;  %v1342_v27 = vld [vmem:[%s1954_s1 + $0x110] ss:$8 sps:$4 sm:$0xff]   ;;  %v1345_v29 = vld [vmem:[%s1954_s1 + $0x104] ss:$8 sps:$4 sm:$0xff]  }
   0xb   :  { %741 = vmatpush1.bf16.msra.mxu0 %v1317_v10  ;;  %v1347_v30 = vld [vmem:[%s1954_s1] ss:$8 sps:$4 sm:$0xff]   ;;  %v1349_v32 = vld [vmem:[%s1954_s1 + $0xf4] ss:$8 sps:$4 sm:$0xff]   ;;  %v1353_v34 = vld [vmem:[%s1954_s1 + $0xf0] ss:$8 sps:$4 sm:$0xff]  }
   0xc   :  { %782 = vmatpush1.bf16.msra.mxu1 %v1318_v11  ;;  %742 = vmatprep.subr.bf16.mxu0 %v1319_v12  ;;  %v1348_v31 = vld [vmem:[%s1954_s1 + $0x100] ss:$8 sps:$4 sm:$0xff]   ;;  %v1351_v33 = vld [vmem:[%s1954_s1 + $0x1f4] ss:$8 sps:$4 sm:$0xff]   ;;  %v1354_v35 = vld [vmem:[%s1954_s1 + $0x1f0] ss:$8 sps:$4 sm:$0xff]  }
   0xd   :  { %783 = vmatprep.subr.bf16.mxu1 %v1321_v13  ;;  %v1355_v36 = vld [vmem:[%s1954_s1 + $0xe4] ss:$8 sps:$4 sm:$0xff]   ;;  %v1359_v38 = vld [vmem:[%s1954_s1 + $0xe0] ss:$8 sps:$4 sm:$0xff]   ;;  %v1361_v40 = vld [vmem:[%s1954_s1 + $0xd4] ss:$8 sps:$4 sm:$0xff]  }
   0xe   :  { %v1357_v37 = vld [vmem:[%s1954_s1 + $0x1e4] ss:$8 sps:$4 sm:$0xff]   ;;  %v1360_v39 = vld [vmem:[%s1954_s1 + $0x1e0] ss:$8 sps:$4 sm:$0xff]   ;;  %v1363_v41 = vld [vmem:[%s1954_s1 + $0x1d4] ss:$8 sps:$4 sm:$0xff]  }
   0xf   :  { %743 = vmatpush1.bf16.msra.mxu0 %v1323_v14  ;;  %v1365_v42 = vld [vmem:[%s1954_s1 + $0xd0] ss:$8 sps:$4 sm:$0xff]   ;;  %v1367_v44 = vld [vmem:[%s1954_s1 + $0xc4] ss:$8 sps:$4 sm:$0xff]   ;;  %v1371_v49 = vld [vmem:[%s1954_s1 + $0xc0] ss:$8 sps:$4 sm:$0xff]  }
  0x10   :  { %784 = vmatpush1.bf16.msra.mxu1 %v1324_v15  ;;  %744 = vmatprep.subr.bf16.mxu0 %v1325_v16  ;;  %v1366_v43 = vld [vmem:[%s1954_s1 + $0x1d0] ss:$8 sps:$4 sm:$0xff]   ;;  %v1369_v45 = vld [vmem:[%s1954_s1 + $0x1c4] ss:$8 sps:$4 sm:$0xff]   ;;  %v1372_v50 = vld [vmem:[%s1954_s1 + $0x1c0] ss:$8 sps:$4 sm:$0xff]  }
  0x11   :  { %785 = vmatprep.subr.bf16.mxu1 %v1327_v17  ;;  %v35_v46 = vld [vmem:[%s1955_s0] sm:$0xff]  ;;  %v36_v48 = vld [vmem:[%s1955_s0 + $0x8] sm:$0xff]  ;;  %v1373_v52 = vld [vmem:[%s1954_s1 + $0xb4] ss:$8 sps:$4 sm:$0xff]   ;;  %v1496_v16 = vmov 0  }
  0x12   :  { %v1141_v47 = vcombine.high %v35_v46, %v35_v46  ;;  %v1143_v51 = vcombine.high %v36_v48, %v36_v48  ;;  %v1375_v53 = vld [vmem:[%s1954_s1 + $0x1b4] ss:$8 sps:$4 sm:$0xff]   ;;  %v1377_v54 = vld [vmem:[%s1954_s1 + $0xb0] ss:$8 sps:$4 sm:$0xff]   ;;  %v1379_v56 = vld [vmem:[%s1954_s1 + $0xa4] ss:$8 sps:$4 sm:$0xff]   ;;  %v1140_v6 = vcombine.low %v35_v46, %v35_v46  ;;  %v1142_v7 = vcombine.low %v36_v48, %v36_v48 }
  0x13   :  { %745 = vmatpush1.bf16.msra.mxu0 %v1329_v18  ;;  %v1378_v55 = vld [vmem:[%s1954_s1 + $0x1b0] ss:$8 sps:$4 sm:$0xff]   ;;  %v1381_v57 = vld [vmem:[%s1954_s1 + $0x1a4] ss:$8 sps:$4 sm:$0xff]   ;;  %v1383_v58 = vld [vmem:[%s1954_s1 + $0xa0] ss:$8 sps:$4 sm:$0xff]  }
  0x14   :  { %786 = vmatpush1.bf16.msra.mxu1 %v1330_v19  ;;  %746 = vmatprep.subr.bf16.mxu0 %v1331_v20  ;;  %v1384_v59 = vld [vmem:[%s1954_s1 + $0x1a0] ss:$8 sps:$4 sm:$0xff]   ;;  %v1385_v60 = vld [vmem:[%s1954_s1 + $0x94] ss:$8 sps:$4 sm:$0xff]   ;;  %v1389_v62 = vld [vmem:[%s1954_s1 + $0x90] ss:$8 sps:$4 sm:$0xff]  }
  0x15   :  { %787 = vmatprep.subr.bf16.mxu1 %v1333_v21  ;;  %768 = vmatprep.mubr.bf16.mxu0 %v1141_v47  ;;  %v1387_v61 = vld [vmem:[%s1954_s1 + $0x194] ss:$8 sps:$4 sm:$0xff]   ;;  %v1390_v63 = vld [vmem:[%s1954_s1 + $0x190] ss:$8 sps:$4 sm:$0xff]   ;;  %v1391_v0 = vld [vmem:[%s1954_s1 + $0x84] ss:$8 sps:$4 sm:$0xff]  }
  0x16   :  { %809 = vmatprep.mubr.bf16.mxu1 %v1143_v51  ;;  %v1393_v1 = vld [vmem:[%s1954_s1 + $0x184] ss:$8 sps:$4 sm:$0xff]   ;;  %v1395_v2 = vld [vmem:[%s1954_s1 + $0x80] ss:$8 sps:$4 sm:$0xff]   ;;  %v1403_v4 = vld [vmem:[%s1954_s1 + $0x274] ss:$8 sps:$4 sm:$0xff]  }
  0x17   :  { %747 = vmatpush1.bf16.msra.mxu0 %v1335_v22  ;;  %v1396_v3 = vld [vmem:[%s1954_s1 + $0x180] ss:$8 sps:$4 sm:$0xff]   ;;  %v1427_v5 = vld [vmem:[%s1954_s1 + $0x374] ss:$8 sps:$4 sm:$0xff]   ;;  %v1401_v8 = vld [vmem:[%s1954_s1 + $0x270] ss:$8 sps:$4 sm:$0xff]  }
  0x18   :  { %788 = vmatpush1.bf16.msra.mxu1 %v1336_v23  ;;  %748 = vmatprep.subr.bf16.mxu0 %v1337_v24  ;;  %v1425_v9 = vld [vmem:[%s1954_s1 + $0x370] ss:$8 sps:$4 sm:$0xff]   ;;  %v1406_v10 = vld [vmem:[%s1954_s1 + $0x264] ss:$8 sps:$4 sm:$0xff]   ;;  %v1404_v12 = vld [vmem:[%s1954_s1 + $0x260] ss:$8 sps:$4 sm:$0xff]  }
  0x19   :  { %789 = vmatprep.subr.bf16.mxu1 %v1339_v25  ;;  %v1433_v11 = vld [vmem:[%s1954_s1 + $0x364] ss:$8 sps:$4 sm:$0xff]   ;;  %v1431_v13 = vld [vmem:[%s1954_s1 + $0x360] ss:$8 sps:$4 sm:$0xff]   ;;  %v1409_v14 = vld [vmem:[%s1954_s1 + $0x254] ss:$8 sps:$4 sm:$0xff]  }
  0x1a   :  { %v1439_v15 = vld [vmem:[%s1954_s1 + $0x354] ss:$8 sps:$4 sm:$0xff]   ;;  %v1407_v17 = vld [vmem:[%s1954_s1 + $0x250] ss:$8 sps:$4 sm:$0xff]   ;;  %v1412_v19 = vld [vmem:[%s1954_s1 + $0x244] ss:$8 sps:$4 sm:$0xff]  }
  0x1b   :  { %749 = vmatpush1.bf16.msra.mxu0 %v1341_v26  ;;  %v1437_v18 = vld [vmem:[%s1954_s1 + $0x350] ss:$8 sps:$4 sm:$0xff]   ;;  %v1445_v20 = vld [vmem:[%s1954_s1 + $0x344] ss:$8 sps:$4 sm:$0xff]   ;;  %v1410_v21 = vld [vmem:[%s1954_s1 + $0x240] ss:$8 sps:$4 sm:$0xff]  }
  0x1c   :  { %790 = vmatpush1.bf16.msra.mxu1 %v1342_v27  ;;  %750 = vmatprep.subr.bf16.mxu0 %v1343_v28  ;;  %v1443_v22 = vld [vmem:[%s1954_s1 + $0x340] ss:$8 sps:$4 sm:$0xff]   ;;  %v1786_v23 = vld [vmem:[%s1955_s0 + $0x10] sm:$0xff]  ;;  %v1448_v48 = vld [vmem:[%s1954_s1 + $0x2c4] ss:$8 sps:$4 sm:$0xff]  }
  0x1d   :  { %791 = vmatprep.subr.bf16.mxu1 %v1345_v29  ;;  %v1415_v24 = vld [vmem:[%s1954_s1 + $0x234] ss:$8 sps:$4 sm:$0xff]   ;;  %v1145_v26 = vcombine.high %v1786_v23, %v1786_v23  ;;  %v1413_v27 = vld [vmem:[%s1954_s1 + $0x230] ss:$8 sps:$4 sm:$0xff]   ;;  %v1418_v29 = vld [vmem:[%s1954_s1 + $0x224] ss:$8 sps:$4 sm:$0xff]  }
  0x1e   :  { %v1451_v25 = vld [vmem:[%s1954_s1 + $0x334] ss:$8 sps:$4 sm:$0xff]   ;;  %v1449_v28 = vld [vmem:[%s1954_s1 + $0x330] ss:$8 sps:$4 sm:$0xff]  }
  0x1f   :  { %751 = vmatpush1.bf16.msra.mxu0 %v1347_v30  ;;  %v1457_v30 = vld [vmem:[%s1954_s1 + $0x324] ss:$8 sps:$4 sm:$0xff]   ;;  %v1442_v46 = vld [vmem:[%s1954_s1 + $0x2d4] ss:$8 sps:$4 sm:$0xff]   ;;  %v1440_v47 = vld [vmem:[%s1954_s1 + $0x2d0] ss:$8 sps:$4 sm:$0xff]  }
  0x20   :  { %792 = vmatpush1.bf16.msra.mxu1 %v1348_v31  ;;  %752 = vmatprep.subr.bf16.mxu0 %v1349_v32  ;;  %v1416_v31 = vld [vmem:[%s1954_s1 + $0x220] ss:$8 sps:$4 sm:$0xff]   ;;  %v1452_v51 = vld [vmem:[%s1954_s1 + $0x2b0] ss:$8 sps:$4 sm:$0xff]  }
  0x21   :  { %793 = vmatprep.subr.bf16.mxu1 %v1351_v33  ;;  %v1455_v32 = vld [vmem:[%s1954_s1 + $0x320] ss:$8 sps:$4 sm:$0xff]   ;;  %v1421_v33 = vld [vmem:[%s1954_s1 + $0x214] ss:$8 sps:$4 sm:$0xff]  }
  0x23   :  { %753 = vmatpush2.bf16.msra.mxu0 %v1353_v34  ;;  %v1463_v34 = vld [vmem:[%s1954_s1 + $0x314] ss:$8 sps:$4 sm:$0xff]  }
  0x24   :  { %794 = vmatpush2.bf16.msra.mxu1 %v1354_v35  ;;  %754 = vmatprep.subr.bf16.mxu0 %v1355_v36  ;;  %v1419_v35 = vld [vmem:[%s1954_s1 + $0x210] ss:$8 sps:$4 sm:$0xff]  }
  0x25   :  { %795 = vmatprep.subr.bf16.mxu1 %v1357_v37  ;;  %v1461_v36 = vld [vmem:[%s1954_s1 + $0x310] ss:$8 sps:$4 sm:$0xff]   ;;  %v1424_v37 = vld [vmem:[%s1954_s1 + $0x204] ss:$8 sps:$4 sm:$0xff]  }
  0x27   :  { %755 = vmatpush2.bf16.msra.mxu0 %v1359_v38  ;;  %v1469_v38 = vld [vmem:[%s1954_s1 + $0x304] ss:$8 sps:$4 sm:$0xff]  }
  0x28   :  { %796 = vmatpush2.bf16.msra.mxu1 %v1360_v39  ;;  %756 = vmatprep.subr.bf16.mxu0 %v1361_v40  ;;  %v1422_v39 = vld [vmem:[%s1954_s1 + $0x200] ss:$8 sps:$4 sm:$0xff]  }
  0x29   :  { %797 = vmatprep.subr.bf16.mxu1 %v1363_v41  ;;  %v1467_v40 = vld [vmem:[%s1954_s1 + $0x300] ss:$8 sps:$4 sm:$0xff]   ;;  %v1430_v41 = vld [vmem:[%s1954_s1 + $0x2f4] ss:$8 sps:$4 sm:$0xff]  }
  0x2b   :  { %757 = vmatpush2.bf16.msra.mxu0 %v1365_v42  ;;  %v1473_v42 = vld [vmem:[%s1955_s0 + $0x18] ss:$0 sps:$4 sm:$0xff]  }
  0x2c   :  { %798 = vmatpush2.bf16.msra.mxu1 %v1366_v43  ;;  %758 = vmatprep.subr.bf16.mxu0 %v1367_v44  ;;  %v1428_v43 = vld [vmem:[%s1954_s1 + $0x2f0] ss:$8 sps:$4 sm:$0xff]   ;;  %v1436_v44 = vld [vmem:[%s1954_s1 + $0x2e4] ss:$8 sps:$4 sm:$0xff]  }
  0x2d   :  { %799 = vmatprep.subr.bf16.mxu1 %v1369_v45  ;;  %v1434_v45 = vld [vmem:[%s1954_s1 + $0x2e0] ss:$8 sps:$4 sm:$0xff]  }
  0x2f   :  { %759 = vmatpush2.bf16.msra.mxu0 %v1371_v49  ;;  %v1446_v49 = vld [vmem:[%s1954_s1 + $0x2c0] ss:$8 sps:$4 sm:$0xff]  }
  0x30   :  { %800 = vmatpush2.bf16.msra.mxu1 %v1372_v50  ;;  %760 = vmatprep.subr.bf16.mxu0 %v1373_v52  ;;  %v1454_v50 = vld [vmem:[%s1954_s1 + $0x2b4] ss:$8 sps:$4 sm:$0xff]   ;;  %v1460_v52 = vld [vmem:[%s1954_s1 + $0x2a4] ss:$8 sps:$4 sm:$0xff]  }
  0x31   :  { %801 = vmatprep.subr.bf16.mxu1 %v1375_v53  ;;  %v1458_v53 = vld [vmem:[%s1954_s1 + $0x2a0] ss:$8 sps:$4 sm:$0xff]  }
  0x33   :  { %761 = vmatpush2.bf16.msra.mxu0 %v1377_v54  ;;  %v1466_v54 = vld [vmem:[%s1954_s1 + $0x294] ss:$8 sps:$4 sm:$0xff]  }
  0x34   :  { %802 = vmatpush2.bf16.msra.mxu1 %v1378_v55  ;;  %762 = vmatprep.subr.bf16.mxu0 %v1379_v56  ;;  %v1464_v55 = vld [vmem:[%s1954_s1 + $0x290] ss:$8 sps:$4 sm:$0xff]   ;;  %v1472_v56 = vld [vmem:[%s1954_s1 + $0x284] ss:$8 sps:$4 sm:$0xff]  }
  0x35   :  { %803 = vmatprep.subr.bf16.mxu1 %v1381_v57  ;;  %v1470_v57 = vld [vmem:[%s1954_s1 + $0x280] ss:$8 sps:$4 sm:$0xff]  }
  0x37   :  { %763 = vmatpush2.bf16.msra.mxu0 %v1383_v58  ;;  %v1144_v58 = vcombine.low %v1786_v23, %v1786_v23 }
  0x38   :  { %804 = vmatpush2.bf16.msra.mxu1 %v1384_v59  ;;  %764 = vmatprep.subr.bf16.mxu0 %v1385_v60  ;;  %v1476_v59 = vld [vmem:[%s1956_s4 + $0x78] sm:$0xff]  }
  0x39   :  { %805 = vmatprep.subr.bf16.mxu1 %v1387_v61  ;;  %v1477_v60 = vld [vmem:[%s1956_s4 + $0x38] sm:$0xff]   ;;  %v1478_v61 = vld [vmem:[%s1956_s4 + $0x70] sm:$0xff]  }
  0x3b   :  { %765 = vmatpush2.bf16.msra.mxu0 %v1389_v62  ;;  %v1479_v62 = vld [vmem:[%s1956_s4 + $0x30] sm:$0xff]  }
  0x3c   :  { %806 = vmatpush2.bf16.msra.mxu1 %v1390_v63  ;;  %766 = vmatprep.subr.bf16.mxu0 %v1391_v0  ;;  %v1480_v63 = vld [vmem:[%s1956_s4 + $0x68] sm:$0xff]  }
  0x3d   :  { %807 = vmatprep.subr.bf16.mxu1 %v1393_v1  ;;  %v1481_v0 = vld [vmem:[%s1956_s4 + $0x28] sm:$0xff]   ;;  %v1482_v1 = vld [vmem:[%s1956_s4 + $0x60] sm:$0xff]  }
  0x3f   :  { %767 = vmatpush2.bf16.msra.mxu0 %v1395_v2  ;;  %v1483_v2 = vld [vmem:[%s1956_s4 + $0x20] sm:$0xff]  }
  0x40   :  { %808 = vmatpush2.bf16.msra.mxu1 %v1396_v3  ;;  %818 = vmatprep.subr.bf16.mxu0 %v1403_v4  ;;  %v1484_v3 = vld [vmem:[%s1956_s4 + $0x58] sm:$0xff]  }
  0x41   :  { %859 = vmatprep.subr.bf16.mxu1 %v1427_v5  ;;  %v1485_v4 = vld [vmem:[%s1956_s4 + $0x18] sm:$0xff]   ;;  %v1486_v5 = vld [vmem:[%s1956_s4 + $0x50] sm:$0xff]  }
  0x42   :  { %769 = vmatmul.mubr.bf16.vlgmr.msra.gmra.mxu0 %v1140_v6  ;;  %v1487_v6 = vld [vmem:[%s1956_s4 + $0x10] sm:$0xff]  }
  0x43   :  { %810 = vmatmul.mubr.bf16.vlgmr.msra.gmra.mxu1 %v1142_v7  ;;  %819 = vmatpush1.bf16.msra.mxu0 %v1401_v8  ;;  %v1488_v7 = vld [vmem:[%s1956_s4 + $0x48] sm:$0xff]  }
  0x44   :  { %860 = vmatpush1.bf16.msra.mxu1 %v1425_v9  ;;  %820 = vmatprep.subr.bf16.mxu0 %v1406_v10  ;;  %v1489_v8 = vld [vmem:[%s1956_s4 + $0x8] sm:$0xff]   ;;  %v1490_v9 = vld [vmem:[%s1956_s4 + $0x40] sm:$0xff]  }
  0x45   :  { %861 = vmatprep.subr.bf16.mxu1 %v1433_v11  ;;  %891 = vmatprep.mubr.bf16.mxu1 %v1496_v16  ;;  %v1491_v10 = vld [vmem:[%s1956_s4] sm:$0xff]  }
  0x46   :  { %850 = vmatprep.mubr.bf16.mxu0 %v1145_v26 }
  0x47   :  { %821 = vmatpush1.bf16.msra.mxu0 %v1404_v12 }
  0x48   :  { %862 = vmatpush1.bf16.msra.mxu1 %v1431_v13  ;;  %822 = vmatprep.subr.bf16.mxu0 %v1409_v14 }
  0x49   :  { %863 = vmatprep.subr.bf16.mxu1 %v1439_v15 }
  0x4b   :  { %823 = vmatpush1.bf16.msra.mxu0 %v1407_v17 }
  0x4c   :  { %864 = vmatpush1.bf16.msra.mxu1 %v1437_v18  ;;  %824 = vmatprep.subr.bf16.mxu0 %v1412_v19 }
  0x4d   :  { %865 = vmatprep.subr.bf16.mxu1 %v1445_v20 }
  0x4f   :  { %825 = vmatpush1.bf16.msra.mxu0 %v1410_v21 }
  0x50   :  { %866 = vmatpush1.bf16.msra.mxu1 %v1443_v22  ;;  %826 = vmatprep.subr.bf16.mxu0 %v1415_v24  ;;  %v911_v24 = vlaneseq }
  0x51   :  { %867 = vmatprep.subr.bf16.mxu1 %v1451_v25 }
  0x52   :  { %v912_v25 = vshrl.u32 %v911_v24, 7 }
  0x53   :  { %827 = vmatpush1.bf16.msra.mxu0 %v1413_v27  ;;  %v909_v27 = vld [vmem:[%s1957_s2] sm:$0x3] }
  0x54   :  { %868 = vmatpush1.bf16.msra.mxu1 %v1449_v28  ;;  %828 = vmatprep.subr.bf16.mxu0 %v1418_v29  ;;  %v913_v26 = vsub.s32 0, %v912_v25  ;;  %v917_v28 = vsub.s32 1, %v912_v25 }
  0x55   :  { %869 = vmatprep.subr.bf16.mxu1 %v1457_v30  ;;  %v923_v30 = vld [vmem:[%s1958_s3] sm:$0x3] }
  0x57   :  { %829 = vmatpush1.bf16.msra.mxu0 %v1416_v31 }
  0x58   :  { %870 = vmatpush1.bf16.msra.mxu1 %v1455_v32  ;;  %830 = vmatprep.subr.bf16.mxu0 %v1421_v33  ;;  %v914_v33 = vrot.slane %v909_v27, %v913_v26 }
  0x59   :  { %871 = vmatprep.subr.bf16.mxu1 %v1463_v34 }
  0x5b   :  { %831 = vmatpush1.bf16.msra.mxu0 %v1419_v35 }
  0x5c   :  { %872 = vmatpush1.bf16.msra.mxu1 %v1461_v36  ;;  %832 = vmatprep.subr.bf16.mxu0 %v1424_v37  ;;  %v928_v36 = vrot.slane %v923_v30, %v913_v26 }
  0x5d   :  { %873 = vmatprep.subr.bf16.mxu1 %v1469_v38  ;;  %v918_v38 = vrot.slane %v909_v27, %v917_v28 }
  0x5f   :  { %833 = vmatpush1.bf16.msra.mxu0 %v1422_v39 }
  0x60   :  { %874 = vmatpush1.bf16.msra.mxu1 %v1467_v40  ;;  %834 = vmatprep.subr.bf16.mxu0 %v1430_v41 }
  0x61   :  { %1278 = vmatprep.subr.bf16.mxu1 %v1476_v59 }
  0x63   :  { %892 = vmatmul.mubr.bf16.vlgmr.msra.gmra.mxu1 %v1473_v42  ;;  %835 = vmatpush2.bf16.msra.mxu0 %v1428_v43  ;;  %v932_v42 = vrot.slane %v923_v30, %v917_v28 }
  0x64   :  { %836 = vmatprep.subr.bf16.mxu0 %v1436_v44  ;;  %1279 = vmatpush3.bf16.msra.mxu1 %v1477_v60 }
  0x65   :  { %1280 = vmatprep.subr.bf16.mxu1 %v1478_v61 }
  0x67   :  { %837 = vmatpush2.bf16.msra.mxu0 %v1434_v45 }
  0x68   :  { %838 = vmatprep.subr.bf16.mxu0 %v1442_v46  ;;  %1281 = vmatpush3.bf16.msra.mxu1 %v1479_v62 }
  0x69   :  { %1282 = vmatprep.subr.bf16.mxu1 %v1480_v63 }
  0x6b   :  { %839 = vmatpush2.bf16.msra.mxu0 %v1440_v47 }
  0x6c   :  { %840 = vmatprep.subr.bf16.mxu0 %v1448_v48  ;;  %1283 = vmatpush3.bf16.msra.mxu1 %v1481_v0 }
  0x6d   :  { %1284 = vmatprep.subr.bf16.mxu1 %v1482_v1 }
  0x6f   :  { %841 = vmatpush2.bf16.msra.mxu0 %v1446_v49 }
  0x70   :  { %842 = vmatprep.subr.bf16.mxu0 %v1454_v50  ;;  %1285 = vmatpush3.bf16.msra.mxu1 %v1483_v2 }
  0x71   :  { %1286 = vmatprep.subr.bf16.mxu1 %v1484_v3 }
  0x73   :  { %843 = vmatpush2.bf16.msra.mxu0 %v1452_v51 }
  0x74   :  { %844 = vmatprep.subr.bf16.mxu0 %v1460_v52  ;;  %1287 = vmatpush3.bf16.msra.mxu1 %v1485_v4 }
  0x75   :  { %1288 = vmatprep.subr.bf16.mxu1 %v1486_v5 }
  0x77   :  { %845 = vmatpush2.bf16.msra.mxu0 %v1458_v53 }
  0x78   :  { %846 = vmatprep.subr.bf16.mxu0 %v1466_v54  ;;  %1289 = vmatpush3.bf16.msra.mxu1 %v1487_v6 }
  0x79   :  { %1290 = vmatprep.subr.bf16.mxu1 %v1488_v7 }
  0x7b   :  { %847 = vmatpush2.bf16.msra.mxu0 %v1464_v55  ;;  %v1275_v55 = vld [vmem:[%s1959_s5] ss:$0 sm:$0xff] }
  0x7c   :  { %848 = vmatprep.subr.bf16.mxu0 %v1472_v56  ;;  %1291 = vmatpush3.bf16.msra.mxu1 %v1489_v8 }
  0x7d   :  { %1292 = vmatprep.subr.bf16.mxu1 %v1490_v9 }
  0x7f   :  { %849 = vmatpush2.bf16.msra.mxu0 %v1470_v57  ;;  %v1276_v57 = vld [vmem:[%s1960_s6] ss:$0 sm:$0xff] }
  0x80   :  { %1293 = vmatpush3.bf16.msra.mxu1 %v1491_v10 }
  0x82   :  { %851 = vmatmul.mubr.bf16.vlgmr.msra.gmra.mxu0 %v1144_v58 }
 0x102   :  { %v770_v11 = vpop.f32.mrf.mxu0 }
 0x103   :  { %v811_v12 = vpop.f32.mrf.mxu1 }
 0x104   :  { %v812_v13 = vadd.f32 %v811_v12, %v770_v11  ;;  %v772_v14 = vpop.f32.mrf.mxu0 }
 0x105   :  { %v813_v15 = vpop.f32.mrf.mxu1 }
 0x106   :  { %v774_v16 = vpop.f32.mrf.mxu0  ;;  %v814_v31 = vadd.f32 %v813_v15, %v772_v14 }
 0x107   :  { %v815_v17 = vpop.f32.mrf.mxu1 }
 0x108   :  { %v775_v18 = vpop.f32.mrf.mxu0 }
 0x109   :  { %v816_v19 = vpop.f32.mrf.mxu1 }
 0x123   :  { %v893_v20 = vpop.f32.mrf.mxu1 }
 0x125   :  { %v895_v21 = vpop.f32.mrf.mxu1 }
 0x127   :  { %v897_v22 = vpop.f32.mrf.mxu1 }
 0x129   :  { %v898_v23 = vpop.f32.mrf.mxu1 }
 0x142   :  { %v852_v29 = vpop.f32.mrf.mxu0 }
 0x143   :  { %v853_v32 = vadd.f32 %v852_v29, %v812_v13 }
 0x144   :  { %v854_v34 = vpop.f32.mrf.mxu0 }
 0x145   :  { %v894_v35 = vadd.f32 %v893_v20, %v853_v32  ;;  %v855_v37 = vadd.f32 %v854_v34, %v814_v31 }
 0x146   :  { %v856_v39 = vpop.f32.mrf.mxu0 }
 0x147   :  { %v921_v40 = vmul.f32 %v914_v33, %v894_v35  ;;  %v896_v41 = vadd.f32 %v895_v21, %v855_v37 }
 0x148   :  { %v857_v43 = vpop.f32.mrf.mxu0 }
 0x149   :  { %v935_v44 = vadd.f32 %v928_v36, %v921_v40  ;;  %v922_v45 = vmul.f32 %v918_v38, %v896_v41 }
 0x14b   :  { %v939_v46 = vmul.f32 0.1, %v935_v44  ;;  %v936_v47 = vadd.f32 %v932_v42, %v922_v45  ;;  %vm937_vm0 = vcmp.ge.f32.partialorder %v935_v44, 0.0 }
 0x14d   :  { %vm938_vm1 = vcmp.ge.f32.partialorder %v936_v47, 0.0  ;;  %v940_v48 = vmul.f32 0.1, %v936_v47  ;;  %v941_v49 = vsel %vm937_vm0, %v935_v44, %v939_v46 }
 0x14e   :  { %v943_v52 = vpack.c.bf16 %v941_v49, %v941_v49 }
 0x14f   :  { %v942_v50 = vsel %vm938_vm1, %v936_v47, %v940_v48 }
 0x150   :  { %v944_v51 = vpack.c.bf16 %v942_v50, %v942_v50 }
 0x152   :  { %1105 = vmatprep.mubr.bf16.mxu1 %v944_v51 }
 0x153   :  { %1106 = vmatmul.mubr.bf16.vlgmr.msra.gmra.mxu1 %v943_v52 }
 0x213   :  { %v1294_v53 = vpop.f32.mrf.mxu1 }
 0x215   :  { %v1295_v54 = vpop.f32.mrf.mxu1 }
 0x216   :  { %v1296_v56 = vadd.f32 %v1295_v54, %v1294_v53 }
 0x217   :  { %v1297_v58 = vpop.f32.mrf.mxu1 }
 0x218   :  { %v1120_v59 = vmul.f32 %v1296_v56, %v1275_v55 }
 0x219   :  { %v1298_v60 = vpop.f32.mrf.mxu1 }
 0x21a   :  { %v1128_v61 = vadd.f32 %v1276_v57, %v1120_v59 }
 0x21c   :  { %v1277_v62 = vmul.f32 -1.442695, %v1128_v61 }
 0x21e   :  { %1492 = vpow2.f32 %v1277_v62 }
 0x22b   :  { %v1493_v63 = vpop.eup %1492 }
 0x22c   :  { %v1132_v0 = vadd.f32 1.0, %v1493_v63 }
 0x22e   :  { %1494 = vrcp.f32 %v1132_v0 }
 0x23b   :  { %v1495_v1 = vpop.eup %1494 }
 0x23c   :  { %1135 = vst [vmem:[%s1961_s7] sm:$0xff] %v1495_v1 }

// kernel: yolo_v1_forward.4
= control target key start
LH: loop header
LB: loop body
LE: loop exit
PB: predicated region body
PF: predicated region fallthrough
CT: control target
= control target key end

     0   :  { %s1990_s0 = inlined_call_operand.vmem [shape: bf16[8,6272], index: 0, kind: input, shape index: {}]   ;;  %s1991_s1 = inlined_call_operand.hbm [shape: bf16[6272,896], index: 1, kind: input, shape index: {}]   ;;  %s1992_s2 = inlined_call_operand.hbm [shape: f32[1,896], index: 2, kind: input, shape index: {}]   ;;  %s1993_s3 = inlined_call_operand.hbm [shape: f32[1,896], index: 3, kind: input, shape index: {}]   ;;  %s1994_s4 = inlined_call_operand.vmem [shape: bf16[8,896], index: 4, kind: output, shape index: {}]  }
   0x1   :  { %2001 = sst [smem:[#allocation16_spill]] %s1990_s0 }
   0x2   :  { %2002 = sst [smem:[#allocation17_spill]] %s1992_s2 }
   0x3   :  { %2003 = sst [smem:[#allocation18_spill]] %s1993_s3 }
   0x4   :  { %2004 = sst [smem:[#allocation19_spill]] %s1994_s4 }
   0x5   :  { %9 = vsyncpa [#allocation4], 0 }
   0x6   :  { %11 = vsyncpa [#allocation4 + $0x1], 0 }
   0x7   :  { %12 = vsyncpa [#allocation6], 0 }
   0x8   :  { %14 = vsyncpa [#allocation6 + $0x1], 0  ;;  %s1685_s15 = smov 0   ;;  %s1687_s16 = smov 0  }
   0x9   :  { %s1689_s17 = smov 0   ;;  %s1691_s18 = smov 0  }
   0xa   :  { %s1693_s19 = smov 0   ;;  %s1695_s20 = smov 0  }
   0xb   :  { %s1697_s21 = smov 0   ;;  %s1699_s22 = smov 0  }
   0xc   :  { %s1701_s23 = smov 0   ;;  %s1703_s24 = smov 0  }
   0xd   :  { %s1705_s25 = smov 0  }
   0xe LB: > { %2005 = sst [smem:[#allocation10_spill]] %s1637_s22  ;;  %s1995_s26 = sadd.s32 4294967295, %s1649_s25   ;;  %s1649_s25 = sphi %s1705_s25, %s20_s25   ;;  %s1645_s24 = sphi %s1703_s24, %s2039_s24   ;;  %s1641_s23 = sphi %s1701_s23, %s2029_s23   ;;  %s1637_s22 = sphi %s1699_s22, %s2038_s22   ;;  %s1633_s21 = sphi %s1697_s21, %s2037_s21   ;;  %s1629_s20 = sphi %s1695_s20, %s2036_s20   ;;  %s1625_s19 = sphi %s1693_s19, %s2035_s19   ;;  %s1621_s18 = sphi %s1691_s18, %s2034_s18   ;;  %s1617_s17 = sphi %s1689_s17, %s2033_s17   ;;  %s1613_s16 = sphi %s1687_s16, %s2032_s16   ;;  %s1609_s15 = sphi %s1685_s15, %s2031_s15  }
   0xf   : > { %2006 = sst [smem:[#allocation11_spill]] %s1641_s23  ;;  %s29_s27 = sadd.s32 1, %s1641_s23 }
  0x10   : > { %p30_p0 = scmp.ge.s32.totalorder %s29_s27, 7  ;;  %s32_s28 = sadd.s32 1, %s1645_s24 }
  0x11   : > { %s67_s29 = sadd.s32 1, %s1629_s20  ;;  %p74_p1 = scmp.ne.s32.totalorder %s1629_s20, %s1625_s19 }
  0x12   : > { %s2041_s27 = smov (%p30_p0, %s29_s27), 0  ;;  %s2043_s28 = smov (!%p30_p0, %s32_s28), %s1645_s24 }
  0x13   : > { %2007 = sst [smem:[#allocation12_spill]] %s2041_s27  ;;  %s62_s30 = ssub.s32 %s1641_s23, %s2041_s27 }
  0x14   : > { %p75_p2 = scmp.eq.s32.totalorder %s1649_s25, 0  ;;  %p34_p3 = scmp.ge.s32.totalorder %s2043_s28, 7 }
  0x15   : > { %p80_p4 = scmp.ne.s32.totalorder %s1625_s19, %s1621_s18  ;;  %p1759_p6 = scmp.eq.s32.totalorder %s1995_s26, 0 }
  0x16   : > { %p1753_p5 = por %p75_p2, %p74_p1  ;;  %s2045_s28 = smov (%p34_p3, %s2043_s28), 0 }
  0x17   : > { %2010 = sst [smem:[#allocation13_spill]] %s2045_s28  ;;  %p1767_p7 = por %p1759_p6, %p80_p4 }
  0x18   : > { %s93_s8 = sadd.s32 1, %s1617_s17  ;;  %s63_s9 = ssub.s32 %s1645_s24, %s2045_s28 }
  0x19   : > { %p100_p8 = scmp.ne.s32.totalorder %s1617_s17, %s1613_s16  ;;  %s64_s10 = sor.u32 %s63_s9, %s62_s30 }
  0x1a   : > { %p91_p9 = scmp.eq.s32.totalorder %s63_s9, 0  ;;  %p65_p10 = scmp.eq.s32.totalorder %s64_s10, 0 }
  0x1b   : > { %p1778_p11 = por %p100_p8, %p75_p2  ;;  %p106_p12 = scmp.ne.s32.totalorder %s1613_s16, %s1609_s15 }
  0x1c   : > { %s1783_s12 = scalar_select %p91_p9, %s1617_s17, %s93_s8  }
  0x1d   : > { %s1786_s13 = scalar_select %p65_p10, %s1629_s20, %s67_s29  }
  0x1e   : > { %2013 = sst [smem:[#allocation14_spill]] %s1783_s12  ;;  %p1312_p13 = scmp.lt.s32.totalorder %s1649_s25, 49 }
  0x1f   : > { %2014 = sst [smem:[#allocation15_spill]] %s1786_s13  ;;  %p1793_p0 = por %p106_p12, %p1759_p6 }
  0x20   : > { %s214_s18 = sand.u32 1, %s1649_s25   ;;  %p1800_p1 = pnand %p1312_p13, %p1753_p5 }
  0x21   : > { %s1998_s9 = sand.u32 1, %s1617_s17   ;;  %s1124_s10 = sshll.u32 %s1645_s24, 4 }
  0x22   : > { %s2017_s2 = sld [smem:[#allocation17_spill]]  ;;  %s217_s15 = scalar_lea.vmem [#allocation5], %s1998_s9 }
  0x23   : > { %s224_s28 = sshll.u32 %s217_s15, 4  ;;  %p1813_p2 = pnand %p1312_p13, %p1778_p11  ;;  %s225_s28 = int_to_ptr.vmem [resolvable:$true] %s224_s28 }
  0x24   : > { %s2019_s3 = sld [smem:[#allocation18_spill]]  ;;  %p1126_p3 = scmp.ge.s32.totalorder %s1649_s25, 1 }
  0x25   : > { %s1823_s12 = scalar_lea.sflag [#allocation6], %s214_s18  ;;  %p1473_p4 = pneg %p1813_p2 }
  0x26   : > { %s1484_s26 = scalar_lea.vmem %s225_s28, 16  ;;  %s1651_s11 = smov [#allocation5]  }
  0x27   : > { %p1485_p5 = scmp.ne.s32.totalorder %s225_s28, %s1484_s26  ;;  %s1489_s8 = sshll.u32 %s1651_s11, 4  ;;  %s1490_s8 = int_to_ptr.vmem [resolvable:$false] %s1489_s8 }
  0x28   : > { %s222_s29 = scalar_lea.hbm %s2017_s2, %s1124_s10  ;;  %s1491_s15 = scalar_lea.vmem %s1490_s8, 32 }
  0x29   : > { %p1487_p6 = pnand %p1485_p5, %p1473_p4  ;;  %p1492_p9 = scmp.lt.s32.totalorder %s225_s28, %s1490_s8 }
  0x2a   : > { %s1820_s13 = scalar_lea.hbm %s2019_s3, %s1124_s10  ;;  %p1493_p10 = scmp.lt.s32.totalorder %s1491_s15, %s1484_s26 }
  0x2b   : > { %p1488_p8 = pneg %p1487_p6 }
  0x2c   : > { %p1494_p11 = por %p1493_p10, %p1492_p9 }
  0x2e   : > { %p1495_p12 = pnand %p1494_p11, %p1488_p8 }
  0x30   : > { %1498 = shalt.err (!%p1495_p12)
}
  0x31   : > { %1308 = dma.hbm_to_vmem [thread:$0]  (!%p1813_p2), %s222_s29, 16, %s225_s28, %s1823_s12  }
  0x32   : > { %p246_p13 = scmp.lt.s32.totalorder %s1649_s25, 50  ;;  %s191_s18 = sand.u32 1, %s1629_s20  }
  0x33   : > { %s1313_s10 = smul.u32 784, %s1641_s23  ;;  %s2021_s0 = sand.u32 1, %s1617_s17  }
  0x34   : > { %p1836_p5 = pnand %p1126_p3, %p246_p13  ;;  %s1293_s5 = smul.u32 448, %s191_s18 }
  0x35   : > { %s201_s26 = sadd.s32 %s1645_s24, %s1313_s10  ;;  %s234_s28 = scalar_lea.vmem [#allocation7], %s2021_s0 }
  0x36   : > { %s1123_s11 = sshll.u32 %s201_s26, 6  ;;  %s195_s2 = scalar_lea.vmem [#allocation3], %s1293_s5 }
  0x37   : > { %s203_s9 = scalar_lea.hbm %s1991_s1, %s1123_s11  ;;  %s204_s3 = sshll.u32 %s195_s2, 4  ;;  %s205_s3 = int_to_ptr.vmem [resolvable:$true] %s204_s3 }
  0x38   : > { %s241_s29 = sshll.u32 %s234_s28, 4  ;;  %s192_s4 = scalar_lea.sflag [#allocation4], %s191_s18  ;;  %s242_s29 = int_to_ptr.vmem [resolvable:$true] %s241_s29 }
  0x39   : > { %p1501_p3 = pneg %p1800_p1  ;;  %s1512_s22 = scalar_lea.vmem %s205_s3, 7168 }
  0x3a   : > { %p1513_p6 = scmp.ne.s32.totalorder %s205_s3, %s1512_s22  ;;  %s1652_s23 = smov [#allocation3]  }
  0x3b   : > { %s1517_s10 = sshll.u32 %s1652_s23, 4  ;;  %s1518_s10 = int_to_ptr.vmem [resolvable:$false] %s1517_s10 }
  0x3c   : > { %p1515_p8 = pnand %p1513_p6, %p1501_p3  ;;  %s1519_s26 = scalar_lea.vmem %s1518_s10, 14336 }
  0x3d   : > { %p1520_p10 = scmp.lt.s32.totalorder %s205_s3, %s1518_s10  ;;  %p1521_p11 = scmp.lt.s32.totalorder %s1519_s26, %s1512_s22 }
  0x3e   : > { %p1516_p9 = pneg %p1515_p8 }
  0x3f   : > { %p1522_p12 = por %p1521_p11, %p1520_p10 }
  0x41   : > { %p1523_p13 = pnand %p1522_p12, %p1516_p9 }
  0x43   : > { %1526 = shalt.err (!%p1523_p13)
}
  0x44   : > { %s1653_s2 = smov 448   ;;  %s1654_s0 = smov 64  }
  0x45   : > { %s1655_s18 = smov 4   ;;  %s1540_s5 = scalar_lea.vmem %s242_s29, 16 }
  0x46   : > { %1305 = dma.hbm_to_vmem [thread:$0]  (!%p1800_p1), %s203_s9, 7168, %s205_s3, %s192_s4, %s1653_s2, %s1654_s0, %s1655_s18  }
  0x47   : > { %p1541_p3 = scmp.ne.s32.totalorder %s242_s29, %s1540_s5  ;;  %s1656_s23 = smov [#allocation7]  }
  0x48   : > { %s1545_s11 = sshll.u32 %s1656_s23, 4  ;;  %s1546_s11 = int_to_ptr.vmem [resolvable:$false] %s1545_s11 }
  0x49   : > { %p1543_p6 = pnand %p1541_p3, %p1473_p4  ;;  %s1547_s22 = scalar_lea.vmem %s1546_s11, 32 }
  0x4a   : > { %p1548_p9 = scmp.lt.s32.totalorder %s242_s29, %s1546_s11  ;;  %p1549_p10 = scmp.lt.s32.totalorder %s1547_s22, %s1540_s5 }
  0x4b   : > { %p1544_p8 = pneg %p1543_p6 }
  0x4c   : > { %p1550_p11 = por %p1549_p10, %p1548_p9 }
  0x4e   : > { %p1551_p12 = pnand %p1550_p11, %p1544_p8 }
  0x50   : > { %1554 = shalt.err (!%p1551_p12)
}
  0x51   : > { %1311 = dma.hbm_to_vmem [thread:$0]  (!%p1813_p2), %s1820_s13, 16, %s242_s29, %s1823_s12  }
  0x52   : > { %250 = sbr.rel (%p1836_p5) target bundleno = 392 (0x188), region = 36  ;;  %s252_s3 = sand.u32 (!%p1836_p5), 1, %s1625_s19  }
  0x53   : > { %s1295_s4 = smul.u32 (!%p1836_p5), 448, %s252_s3  ;;  %s253_s30 = scalar_lea.sflag (!%p1836_p5), [#allocation4], %s252_s3 }
  0x55   : > { %s1862_s9 = scalar_lea.vmem (!%p1836_p5), [#allocation3], %s1295_s4 }
  0x57   : > { %1600 = dma.done.wait (%p1767_p7), %s253_s30, 7168  }
  0x58   : > { %1602 = vsyncadd (%p1767_p7), %s253_s30, 4294960128  ;;  %s2022_s6 = sadd.s32 4294967295, %s1649_s25   ;;  %s263_s13 = sand.u32 1, %s1613_s16  }
  0x59   : > { %s261_s12 = sand.u32 1, %s2022_s6   ;;  %s1871_s8 = scalar_lea.vmem [#allocation5], %s263_s13 }
  0x5a   : > { %s262_s27 = scalar_lea.sflag [#allocation6], %s261_s12 }
  0x5b   : > { %1604 = dma.done.wait (%p1793_p0), %s262_s27, 32  }
  0x5c   : > { %1606 = vsyncadd (%p1793_p0), %s262_s27, 4294967264  ;;  %s2023_s15 = sld [smem:[#allocation10_spill]]  ;;  %s309_s28 = smul.u32 7, %s1633_s21 }
  0x5d   : > { %s2024_s2 = sld [smem:[#allocation19_spill]]  ;;  %s1890_s11 = scalar_lea.vmem [#allocation7], %s263_s13 }
  0x5e   : > { %p310_p7 = scmp.lt.s32.totalorder %s309_s28, 48  ;;  %s2025_s23 = sld [smem:[#allocation16_spill]] }
  0x5f   : > { %p1129_p0 = scmp.ne.s32.totalorder %s1633_s21, 0 }
  0x60   : > { %s2049_s28 = smov (!%p310_p7, %s309_s28), 48 }
  0x61   : > { %s1127_s29 = sshll.u32 %s2049_s28, 2 }
  0x62   : > { %p316_p1 = scmp.lt.s32.totalorder %s2023_s15, 6  ;;  %324 = sbr.rel (%p1129_p0) target bundleno = 105 (0x69), region = 52 }
  0x64   : > { %s2047_s15 = smov (!%p316_p1, %s2023_s15), 6  ;;  %s1888_s14 = scalar_lea.vmem %s2025_s23, %s1127_s29 }
  0x65   : > { %s1128_s7 = sshll.u32 %s2047_s15, 2 }
  0x66   : > { %s1883_s0 = scalar_lea.vmem %s2024_s2, %s1128_s7 }
  0x67   : > { %v1657_v0 = vmov 0.0  }
  0x68   : > { %325 = vst [vmem:[#allocation2] sm:$0xff] %v1657_v0 }
  0x69 PF: > { %v1408_v1 = vld [vmem:[%s1862_s9 + $0x78] sm:$0xff]   ;;  %v1412_v5 = vld [vmem:[%s1862_s9 + $0x70] sm:$0xff]   ;;  %v1416_v9 = vld [vmem:[%s1862_s9 + $0x68] sm:$0xff]   ;;  %v1658_v40 = vmov 0.0   ;;  %vm1659_vm0 = vmmov 0   ;;  %p1193_p2 = scmp.ne.s32.totalorder %s1633_s21, 6 }
  0x6a   : > { %v1409_v2 = vld [vmem:[%s1862_s9 + $0xf8] sm:$0xff]   ;;  %1198 = vmatprep.subr.bf16.mxu0 %v1408_v1  ;;  %v1413_v6 = vld [vmem:[%s1862_s9 + $0xf0] sm:$0xff]   ;;  %v1417_v10 = vld [vmem:[%s1862_s9 + $0xe8] sm:$0xff]  }
  0x6b   : > { %v1410_v3 = vld [vmem:[%s1862_s9 + $0x38] sm:$0xff]   ;;  %1220 = vmatprep.subr.bf16.mxu1 %v1409_v2  ;;  %v1414_v7 = vld [vmem:[%s1862_s9 + $0x30] sm:$0xff]   ;;  %v1418_v11 = vld [vmem:[%s1862_s9 + $0x28] sm:$0xff]  }
  0x6c   : > { %v1411_v4 = vld [vmem:[%s1862_s9 + $0xb8] sm:$0xff]   ;;  %1199 = vmatpush3.bf16.msra.mxu0 %v1410_v3  ;;  %v1415_v8 = vld [vmem:[%s1862_s9 + $0xb0] sm:$0xff]   ;;  %v1419_v12 = vld [vmem:[%s1862_s9 + $0xa8] sm:$0xff]  }
  0x6d   : > { %1221 = vmatpush3.bf16.msra.mxu1 %v1411_v4  ;;  %1200 = vmatprep.subr.bf16.mxu0 %v1412_v5  ;;  %v1420_v13 = vld [vmem:[%s1862_s9 + $0x60] sm:$0xff]   ;;  %v1424_v17 = vld [vmem:[%s1862_s9 + $0x58] sm:$0xff]   ;;  %v1428_v21 = vld [vmem:[%s1862_s9 + $0x50] sm:$0xff]  }
  0x6e   : > { %1222 = vmatprep.subr.bf16.mxu1 %v1413_v6  ;;  %v1421_v14 = vld [vmem:[%s1862_s9 + $0xe0] sm:$0xff]   ;;  %v1425_v18 = vld [vmem:[%s1862_s9 + $0xd8] sm:$0xff]   ;;  %v1429_v22 = vld [vmem:[%s1862_s9 + $0xd0] sm:$0xff]  }
  0x6f   : > { %v1422_v15 = vld [vmem:[%s1862_s9 + $0x20] sm:$0xff]   ;;  %v1426_v19 = vld [vmem:[%s1862_s9 + $0x18] sm:$0xff]   ;;  %v1430_v23 = vld [vmem:[%s1862_s9 + $0x10] sm:$0xff]  }
  0x70   : > { %1201 = vmatpush3.bf16.msra.mxu0 %v1414_v7  ;;  %v1423_v16 = vld [vmem:[%s1862_s9 + $0xa0] sm:$0xff]   ;;  %v1427_v20 = vld [vmem:[%s1862_s9 + $0x98] sm:$0xff]   ;;  %v1431_v24 = vld [vmem:[%s1862_s9 + $0x90] sm:$0xff]  }
  0x71   : > { %1223 = vmatpush3.bf16.msra.mxu1 %v1415_v8  ;;  %1202 = vmatprep.subr.bf16.mxu0 %v1416_v9  ;;  %v1432_v25 = vld [vmem:[%s1862_s9 + $0x48] sm:$0xff]   ;;  %v1436_v29 = vld [vmem:[%s1862_s9 + $0x40] sm:$0xff]   ;;  %v327_v33 = vld [vmem:[%s1888_s14] sm:$0xff] }
  0x72   : > { %1224 = vmatprep.subr.bf16.mxu1 %v1417_v10  ;;  %v1433_v26 = vld [vmem:[%s1862_s9 + $0xc8] sm:$0xff]   ;;  %v1437_v30 = vld [vmem:[%s1862_s9 + $0xc0] sm:$0xff]   ;;  %v1130_v35 = vcombine.low %v327_v33, %v327_v33  ;;  %v1131_v36 = vcombine.high %v327_v33, %v327_v33  ;;  %v1444_v39 = vld [vmem:[%s1862_s9 + $0x178] sm:$0xff]  }
  0x73   : > { %v1434_v27 = vld [vmem:[%s1862_s9 + $0x8] sm:$0xff]   ;;  %v1438_v31 = vld [vmem:[%s1862_s9] sm:$0xff]   ;;  %v1445_v41 = vld [vmem:[%s1862_s9 + $0x138] sm:$0xff]  }
  0x74   : > { %1203 = vmatpush3.bf16.msra.mxu0 %v1418_v11  ;;  %v1435_v28 = vld [vmem:[%s1862_s9 + $0x88] sm:$0xff]   ;;  %v1439_v32 = vld [vmem:[%s1862_s9 + $0x80] sm:$0xff]   ;;  %836 = vmatprep.mubr.bf16.mxu0 %v1131_v36  ;;  %v1446_v42 = vld [vmem:[%s1862_s9 + $0x1b8] sm:$0xff]  }
  0x75   : > { %1225 = vmatpush3.bf16.msra.mxu1 %v1419_v12  ;;  %1204 = vmatprep.subr.bf16.mxu0 %v1420_v13  ;;  %v328_v34 = vld [vmem:[%s1888_s14 + $0x8] sm:$0xff]  ;;  %v1447_v43 = vld [vmem:[%s1862_s9 + $0x170] sm:$0xff]   ;;  %v1450_v46 = vld [vmem:[%s1862_s9 + $0x168] sm:$0xff]  }
  0x76   : > { %1226 = vmatprep.subr.bf16.mxu1 %v1421_v14  ;;  %v1132_v37 = vcombine.low %v328_v34, %v328_v34  ;;  %v1133_v38 = vcombine.high %v328_v34, %v328_v34  ;;  %v1448_v44 = vld [vmem:[%s1862_s9 + $0x130] sm:$0xff]   ;;  %v1452_v47 = vld [vmem:[%s1862_s9 + $0x1a8] sm:$0xff]   ;;  %v1453_v49 = vld [vmem:[%s1862_s9 + $0x160] sm:$0xff]  }
  0x77   : > { %v1449_v45 = vld [vmem:[%s1862_s9 + $0x1b0] sm:$0xff]   ;;  %v1451_v48 = vld [vmem:[%s1862_s9 + $0x128] sm:$0xff]   ;;  %v1455_v50 = vld [vmem:[%s1862_s9 + $0x1a0] sm:$0xff]  }
  0x78   : > { %1205 = vmatpush3.bf16.msra.mxu0 %v1422_v15  ;;  %876 = vmatprep.mubr.bf16.mxu1 %v1133_v38  ;;  %v1454_v51 = vld [vmem:[%s1862_s9 + $0x120] sm:$0xff]   ;;  %v1456_v52 = vld [vmem:[%s1862_s9 + $0x158] sm:$0xff]   ;;  %v1459_v55 = vld [vmem:[%s1862_s9 + $0x150] sm:$0xff]  }
  0x79   : > { %1227 = vmatpush3.bf16.msra.mxu1 %v1423_v16  ;;  %1206 = vmatprep.subr.bf16.mxu0 %v1424_v17  ;;  %v1458_v53 = vld [vmem:[%s1862_s9 + $0x198] sm:$0xff]   ;;  %v1461_v56 = vld [vmem:[%s1862_s9 + $0x190] sm:$0xff]   ;;  %v1462_v58 = vld [vmem:[%s1862_s9 + $0x148] sm:$0xff]  }
  0x7a   : > { %1228 = vmatprep.subr.bf16.mxu1 %v1425_v18  ;;  %v1457_v54 = vld [vmem:[%s1862_s9 + $0x118] sm:$0xff]   ;;  %v1460_v57 = vld [vmem:[%s1862_s9 + $0x110] sm:$0xff]   ;;  %v329_v59 = vld [vmem:[%s1888_s14 + $0x10] sm:$0xff] }
  0x7b   : > { %v1464_v60 = vld [vmem:[%s1862_s9 + $0x188] sm:$0xff]   ;;  %v1135_v61 = vcombine.high %v329_v59, %v329_v59  ;;  %v1465_v63 = vld [vmem:[%s1862_s9 + $0x140] sm:$0xff]   ;;  %v1470_v2 = vld [vmem:[%s1888_s14 + $0x18] ss:$0 sps:$4 sm:$0xff]   ;;  %v1134_v3 = vcombine.low %v329_v59, %v329_v59 }
  0x7c   : > { %1207 = vmatpush3.bf16.msra.mxu0 %v1426_v19  ;;  %v1463_v62 = vld [vmem:[%s1862_s9 + $0x108] sm:$0xff]   ;;  %v1467_v0 = vld [vmem:[%s1862_s9 + $0x180] sm:$0xff]  }
  0x7d   : > { %1229 = vmatpush3.bf16.msra.mxu1 %v1427_v20  ;;  %1208 = vmatprep.subr.bf16.mxu0 %v1428_v21  ;;  %v1466_v1 = vld [vmem:[%s1862_s9 + $0x100] sm:$0xff]  }
  0x7e   : > { %1230 = vmatprep.subr.bf16.mxu1 %v1429_v22 }
  0x80   : > { %1209 = vmatpush3.bf16.msra.mxu0 %v1430_v23 }
  0x81   : > { %1231 = vmatpush3.bf16.msra.mxu1 %v1431_v24  ;;  %1210 = vmatprep.subr.bf16.mxu0 %v1432_v25  ;;  %v326_v24 = vld [vmem:[#allocation2] sm:$0xff] }
  0x82   : > { %1232 = vmatprep.subr.bf16.mxu1 %v1433_v26 }
  0x84   : > { %1211 = vmatpush3.bf16.msra.mxu0 %v1434_v27 }
  0x85   : > { %1233 = vmatpush3.bf16.msra.mxu1 %v1435_v28  ;;  %1212 = vmatprep.subr.bf16.mxu0 %v1436_v29 }
  0x86   : > { %1234 = vmatprep.subr.bf16.mxu1 %v1437_v30 }
  0x88   : > { %1213 = vmatpush3.bf16.msra.mxu0 %v1438_v31 }
  0x89   : > { %1235 = vmatpush3.bf16.msra.mxu1 %v1439_v32  ;;  %1242 = vmatprep.subr.bf16.mxu0 %v1444_v39 }
  0x8a   : > { %1273 = vmatprep.subr.bf16.mxu1 %v1658_v40 }
  0x8b   : > { %837 = vmatmul.mubr.bf16.vlgmr.msra.gmra.mxu0 %v1130_v35 }
  0x8c   : > { %877 = vmatmul.mubr.bf16.vlgmr.msra.gmra.mxu1 %v1132_v37  ;;  %1243 = vmatpush3.bf16.msra.mxu0 %v1445_v41 }
  0x8d   : > { %1274 = vmatpush3.bf16.msra.mxu1 %v1446_v42  ;;  %1244 = vmatprep.subr.bf16.mxu0 %v1447_v43 }
  0x8e   : > { %1275 = vmatprep.subr.bf16.mxu1 %v1658_v40  ;;  %1289 = vmatprep.mubr.msk.bf16.mxu1 %vm1659_vm0, %v1658_v40 }
  0x8f   : > { %916 = vmatprep.mubr.bf16.mxu0 %v1135_v61 }
  0x90   : > { %1245 = vmatpush3.bf16.msra.mxu0 %v1448_v44 }
  0x91   : > { %1276 = vmatpush3.bf16.msra.mxu1 %v1449_v45  ;;  %1246 = vmatprep.subr.bf16.mxu0 %v1450_v46 }
  0x92   : > { %1277 = vmatprep.subr.bf16.mxu1 %v1658_v40 }
  0x94   : > { %1247 = vmatpush3.bf16.msra.mxu0 %v1451_v48 }
  0x95   : > { %1278 = vmatpush3.bf16.msra.mxu1 %v1452_v47  ;;  %1248 = vmatprep.subr.bf16.mxu0 %v1453_v49 }
  0x96   : > { %1279 = vmatprep.subr.bf16.mxu1 %v1658_v40 }
  0x98   : > { %1249 = vmatpush3.bf16.msra.mxu0 %v1454_v51 }
  0x99   : > { %1280 = vmatpush3.bf16.msra.mxu1 %v1455_v50  ;;  %1250 = vmatprep.subr.bf16.mxu0 %v1456_v52 }
  0x9a   : > { %1281 = vmatprep.subr.bf16.mxu1 %v1658_v40 }
  0x9c   : > { %1251 = vmatpush3.bf16.msra.mxu0 %v1457_v54 }
  0x9d   : > { %1282 = vmatpush3.bf16.msra.mxu1 %v1458_v53  ;;  %1252 = vmatprep.subr.bf16.mxu0 %v1459_v55 }
  0x9e   : > { %1283 = vmatprep.subr.bf16.mxu1 %v1658_v40 }
  0xa0   : > { %1253 = vmatpush3.bf16.msra.mxu0 %v1460_v57 }
  0xa1   : > { %1284 = vmatpush3.bf16.msra.mxu1 %v1461_v56  ;;  %1254 = vmatprep.subr.bf16.mxu0 %v1462_v58 }
  0xa2   : > { %1285 = vmatprep.subr.bf16.mxu1 %v1658_v40 }
  0xa4   : > { %1255 = vmatpush3.bf16.msra.mxu0 %v1463_v62 }
  0xa5   : > { %1286 = vmatpush3.bf16.msra.mxu1 %v1464_v60  ;;  %1256 = vmatprep.subr.bf16.mxu0 %v1465_v63 }
  0xa6   : > { %1287 = vmatprep.subr.bf16.mxu1 %v1658_v40 }
  0xa8   : > { %1257 = vmatpush3.bf16.msra.mxu0 %v1466_v1 }
  0xa9   : > { %1288 = vmatpush3.bf16.msra.mxu1 %v1467_v0 }
  0xab   : > { %917 = vmatmul.mubr.bf16.vlgmr.msra.gmra.mxu0 %v1134_v3 }
  0xac   : > { %1290 = vmatmul.mubr.bf16.vlgmr.msra.gmra.mxu1 %v1470_v2 }
 0x14b   : > { %v1214_v4 = vpop.f32.mrf.mxu0 }
 0x14c   : > { %v1236_v5 = vpop.f32.mrf.mxu1 }
 0x14d   : > { %v1215_v6 = vpop.f32.mrf.mxu0 }
 0x14e   : > { %v1237_v7 = vpop.f32.mrf.mxu1  ;;  %v1216_v12 = vadd.f32 %v1215_v6, %v1214_v4 }
 0x14f   : > { %v1217_v8 = vpop.f32.mrf.mxu0  ;;  %v1238_v13 = vadd.f32 %v1237_v7, %v1236_v5 }
 0x150   : > { %v1239_v9 = vpop.f32.mrf.mxu1 }
 0x151   : > { %v1218_v10 = vpop.f32.mrf.mxu0  ;;  %v879_v18 = vadd.f32 %v1238_v13, %v1216_v12 }
 0x152   : > { %v1240_v11 = vpop.f32.mrf.mxu1 }
 0x16b   : > { %v1258_v15 = vpop.f32.mrf.mxu0 }
 0x16c   : > { %v958_v14 = vpop.f32.mrf.mxu1 }
 0x16d   : > { %v1259_v17 = vpop.f32.mrf.mxu0 }
 0x16e   : > { %v1291_v16 = vpop.f32.mrf.mxu1  ;;  %v1260_v19 = vadd.f32 %v1259_v17, %v1258_v15 }
 0x16f   : > { %v1261_v21 = vpop.f32.mrf.mxu0 }
 0x170   : > { %v961_v20 = vpop.f32.mrf.mxu1  ;;  %v919_v22 = vadd.f32 %v1260_v19, %v879_v18 }
 0x171   : > { %v1262_v25 = vpop.f32.mrf.mxu0 }
 0x172   : > { %v1292_v23 = vpop.f32.mrf.mxu1  ;;  %v959_v26 = vadd.f32 %v958_v14, %v919_v22  ;;  %969 = sbr.rel (%p1193_p2) target bundleno = 392 (0x188), region = 56 }
 0x174   : > { %v964_v27 = vadd.f32 %v959_v26, %v326_v24 }
 0x176   : > { %965 = vst [vmem:[#allocation2] sm:$0xff] %v964_v27 }
 0x177   : > { %v1194_v29 = vld [vmem:[%s1871_s8] ss:$0 sm:$0xff] }
 0x178   : > { %v1195_v30 = vld [vmem:[%s1890_s11] ss:$0 sm:$0xff] }
 0x17d   : > { %v970_v28 = vld [vmem:[#allocation2] sm:$0xff] }
 0x17e   : > { %v978_v31 = vmul.f32 %v1194_v29, %v970_v28 }
 0x180   : > { %v986_v32 = vadd.f32 %v1195_v30, %v978_v31 }
 0x182   : > { %vm987_vm1 = vcmp.ge.f32.partialorder %v986_v32, 0.0  ;;  %v988_v33 = vmul.f32 0.1, %v986_v32 }
 0x184   : > { %v989_v34 = vsel %vm987_vm1, %v986_v32, %v988_v33 }
 0x185   : > { %v990_v35 = vpack.c.bf16 %v989_v34, %v989_v34 }
 0x187   : > { %991 = vst [vmem:[%s1883_s0] sm:$0xf] %v990_v35 }
 0x188 PF: > { %s20_s25 = sadd.s32 1, %s1649_s25   ;;  %s2026_s21 = sld [smem:[#allocation14_spill]] }
 0x189   : > { %p17_p4 = scmp.ge.s32.totalorder %s20_s25, 51   ;;  %s2027_s22 = sld [smem:[#allocation15_spill]] }
 0x18a   : > { %s2028_s3 = sld [smem:[#allocation11_spill]]  ;;  %s2031_s15 = smov %s1613_s16 }
 0x18b   : > { %s2029_s23 = sld [smem:[#allocation12_spill]]  ;;  %s2032_s16 = smov %s1617_s17 }
 0x18c   : > { %s2030_s4 = sld [smem:[#allocation13_spill]]  ;;  %s2034_s18 = smov %s1625_s19 }
 0x18d   : > { %s2035_s19 = smov %s1629_s20 }
 0x18e   : > { %s2033_s17 = smov %s2026_s21  ;;  %19 = sbr.rel (!%p17_p4) target bundleno = 14 (0xe), region = 111 }
 0x18f   : > { %s2036_s20 = smov %s2027_s22  ;;  %s2038_s22 = smov %s1645_s24 }
 0x190   : > { %s2037_s21 = smov %s2028_s3 }
 0x192   : > { %s2039_s24 = smov %s2030_s4 }
 0x193   :  { %1011 = vsyncpa [#allocation4], 1 }
 0x194   :  { %1013 = vsyncpa [#allocation4 + $0x1], 1 }
 0x195   :  { %1014 = vsyncpa [#allocation6], 1 }
 0x196   :  { %1016 = vsyncpa [#allocation6 + $0x1], 1 }

// kernel: yolo_v1_forward.3
= control target key start
LH: loop header
LB: loop body
LE: loop exit
PB: predicated region body
PF: predicated region fallthrough
CT: control target
= control target key end

     0   :  { %13 = vsyncpa [#allocation4], 0  ;;  %s3411_s0 = inlined_call_operand.vmem [shape: bf16[2,176,96], index: 0, kind: input, shape index: {}]   ;;  %s3412_s1 = inlined_call_operand.hbm [shape: bf16[3,96,128], index: 1, kind: input, shape index: {}]   ;;  %s3413_s2 = inlined_call_operand.hbm [shape: bf16[128,128], index: 2, kind: input, shape index: {}]   ;;  %s3414_s3 = inlined_call_operand.hbm [shape: bf16[49,144], index: 3, kind: input, shape index: {}]   ;;  %s3415_s4 = inlined_call_operand.hbm [shape: f32[1,128], index: 4, kind: input, shape index: {}]   ;;  %s3416_s5 = inlined_call_operand.hbm [shape: f32[1,128], index: 5, kind: input, shape index: {}]   ;;  %s3417_s6 = inlined_call_operand.hbm [shape: f32[1,128], index: 6, kind: input, shape index: {}]   ;;  %s3418_s7 = inlined_call_operand.hbm [shape: f32[1,128], index: 7, kind: input, shape index: {}]   ;;  %s3419_s8 = inlined_call_operand.vmem [shape: bf16[2,49,128], index: 8, kind: output, shape index: {}]  }
   0x1   :  { %14 = vsyncpa [#allocation6], 0 }
   0x2   :  { %15 = vsyncpa [#allocation9], 0 }
   0x3   :  { %16 = vsyncpa [#allocation12], 0  ;;  %s2939_s27 = smov 0   ;;  %s2941_s28 = smov 0  }
   0x4   :  { %s2943_s29 = smov 0  }
   0x5 LB: > { %s2064_s30 = sadd.s32 4294967295, %s2878_s29   ;;  %p2066_p0 = scmp.ge.s32.totalorder %s2878_s29, 1  ;;  %s2878_s29 = sphi %s2943_s29, %s22_s29   ;;  %s2874_s28 = sphi %s2941_s28, %s3430_s28   ;;  %s2870_s27 = sphi %s2939_s27, %s3429_s27  }
   0x6   : > { %p245_p1 = scmp.lt.s32.totalorder %s2878_s29, 3  ;;  %p2957_p2 = scmp.eq.s32.totalorder %s2064_s30, 0 }
   0x7   : > { %s2880_s11 = smov [#allocation5]   ;;  %s2881_s13 = smov [#allocation8]  }
   0x8   : > { %s3423_s9 = scalar_select %p2957_p2, 1, 0 }
   0x9   : > { %p2961_p3 = pnand %p2066_p0, %p245_p1  ;;  %s273_s12 = sshll.u32 %s2880_s11, 4  ;;  %s274_s12 = int_to_ptr.vmem [resolvable:$true] %s273_s12 }
   0xa   : > { %s300_s14 = sshll.u32 %s2881_s13, 4  ;;  %s2882_s16 = smov [#allocation11]   ;;  %s301_s14 = int_to_ptr.vmem [resolvable:$true] %s300_s14 }
   0xb   : > { %s3424_s10 = scalar_select %p2961_p3, 1, 0 }
   0xc   : > { %p2520_p4 = pneg %p2961_p3  ;;  %s322_s17 = sshll.u32 %s2882_s16, 4  ;;  %s2973_s17 = int_to_ptr.vmem [resolvable:$true] %s322_s17 }
   0xd   : > { %s2669_s19 = scalar_lea.vmem %s274_s12, 1024  ;;  %p2677_p10 = scmp.lt.s32.totalorder %s274_s12, %s274_s12 }
   0xe   : > { %p2969_p5 = pnand %p2957_p2, %p2520_p4  ;;  %p2670_p7 = scmp.ne.s32.totalorder %s274_s12, %s2669_s19 }
   0xf   : > { %p2678_p11 = scmp.lt.s32.totalorder %s2669_s19, %s2669_s19 }
  0x10   : > { %p2977_p6 = pneg %p2969_p5 }
  0x11   : > { %p2679_p12 = por %p2678_p11, %p2677_p10 }
  0x12   : > { %p2672_p8 = pnand %p2670_p7, %p2977_p6 }
  0x14   : > { %p2673_p9 = pneg %p2672_p8 }
  0x16   : > { %p2680_p13 = pnand %p2679_p12, %p2673_p9 }
  0x18   : > { %2683 = shalt.err (!%p2680_p13)
}
  0x19   : > { %s2883_s20 = smov 64   ;;  %s2884_s21 = smov 4  }
  0x1a   : > { %2526 = dma.hbm_to_vmem [thread:$0]  (!%p2969_p5), %s3413_s2, 1024, %s274_s12, [#allocation6], %s2883_s20, %s2883_s20, %s2884_s21  }
  0x1b   : > { %s2695_s24 = scalar_lea.vmem %s301_s14, 16  ;;  %s2702_s25 = scalar_lea.vmem %s301_s14, 32 }
  0x1c   : > { %p2696_p0 = scmp.ne.s32.totalorder %s301_s14, %s2695_s24  ;;  %p2703_p7 = scmp.lt.s32.totalorder %s301_s14, %s301_s14 }
  0x1d   : > { %p2704_p8 = scmp.lt.s32.totalorder %s2702_s25, %s2695_s24 }
  0x1e   : > { %p2698_p1 = pnand %p2696_p0, %p2977_p6 }
  0x1f   : > { %p2705_p9 = por %p2704_p8, %p2703_p7 }
  0x20   : > { %p2699_p4 = pneg %p2698_p1 }
  0x22   : > { %p2706_p10 = pnand %p2705_p9, %p2699_p4 }
  0x24   : > { %2709 = shalt.err (!%p2706_p10)
}
  0x25   : > { %2532 = dma.hbm_to_vmem [thread:$0]  (!%p2969_p5), %s3415_s4, 16, %s301_s14, [#allocation9]  }
  0x26   : > { %s2721_s11 = scalar_lea.vmem %s2973_s17, 16  ;;  %s2728_s12 = scalar_lea.vmem %s2973_s17, 32 }
  0x27   : > { %p2722_p11 = scmp.ne.s32.totalorder %s2973_s17, %s2721_s11  ;;  %p2729_p0 = scmp.lt.s32.totalorder %s2973_s17, %s2973_s17 }
  0x28   : > { %p2730_p1 = scmp.lt.s32.totalorder %s2728_s12, %s2721_s11 }
  0x29   : > { %p2724_p12 = pnand %p2722_p11, %p2977_p6 }
  0x2a   : > { %p2731_p4 = por %p2730_p1, %p2729_p0 }
  0x2b   : > { %p2725_p13 = pneg %p2724_p12 }
  0x2d   : > { %p2732_p7 = pnand %p2731_p4, %p2725_p13 }
  0x2f   : > { %2735 = shalt.err (!%p2732_p7)
}
  0x30   : > { %2538 = dma.hbm_to_vmem [thread:$0]  (!%p2969_p5), %s3417_s6, 16, %s2973_s17, [#allocation12]  }
  0x31   : > { %s34_s14 = sadd.s32 1, %s2874_s28  ;;  %s2885_s19 = smov [#allocation3]  }
  0x32   : > { %p36_p8 = scmp.ge.s32.totalorder %s34_s14, 2  ;;  %s260_s22 = sshll.u32 %s2885_s19, 4  ;;  %s261_s22 = int_to_ptr.vmem [resolvable:$true] %s260_s22 }
  0x33   : > { %s2747_s23 = scalar_lea.vmem %s261_s22, 2304  ;;  %p2755_p12 = scmp.lt.s32.totalorder %s261_s22, %s261_s22 }
  0x34   : > { %s3432_s14 = smov (%p36_p8, %s34_s14), 0  ;;  %p2748_p9 = scmp.ne.s32.totalorder %s261_s22, %s2747_s23 }
  0x35   : > { %p2756_p13 = scmp.lt.s32.totalorder %s2747_s23, %s2747_s23 }
  0x36   : > { %p2750_p10 = pnand %p2748_p9, %p2977_p6 }
  0x37   : > { %p2757_p0 = por %p2756_p13, %p2755_p12 }
  0x38   : > { %p2751_p11 = pneg %p2750_p10 }
  0x3a   : > { %p2758_p1 = pnand %p2757_p0, %p2751_p11 }
  0x3c   : > { %2761 = shalt.err (!%p2758_p1)
}
  0x3d   : > { %2523 = dma.hbm_to_vmem [thread:$0]  (!%p2969_p5), %s3412_s1, 2304, %s261_s22, [#allocation4], %s2883_s20, %s2883_s20, %s2884_s21  }
  0x3e   : > { %s2886_s25 = smov [#allocation7]  }
  0x3f   : > { %s286_s26 = sshll.u32 %s2886_s25, 4  ;;  %s287_s26 = int_to_ptr.vmem [resolvable:$true] %s286_s26 }
  0x40   : > { %s2773_s30 = scalar_lea.vmem %s287_s26, 896  ;;  %p2781_p9 = scmp.lt.s32.totalorder %s287_s26, %s287_s26 }
  0x41   : > { %p2774_p4 = scmp.ne.s32.totalorder %s287_s26, %s2773_s30  ;;  %p2782_p10 = scmp.lt.s32.totalorder %s2773_s30, %s2773_s30 }
  0x43   : > { %p2776_p7 = pnand %p2774_p4, %p2977_p6  ;;  %p2783_p11 = por %p2782_p10, %p2781_p9 }
  0x45   : > { %p2777_p8 = pneg %p2776_p7 }
  0x47   : > { %p2784_p12 = pnand %p2783_p11, %p2777_p8 }
  0x49   : > { %2787 = shalt.err (!%p2784_p12)
}
  0x4a   : > { %s2887_s11 = smov 128   ;;  %s2888_s12 = smov 8  }
  0x4b   : > { %2529 = dma.hbm_to_vmem [thread:$0]  (!%p2969_p5), %s3414_s3, 896, %s287_s26, [#allocation6], %s2887_s11, %s2887_s11, %s2888_s12  }
  0x4c   : > { %s2889_s21 = smov [#allocation10]   ;;  %s2890_s19 = smov [#allocation13]  }
  0x4d   : > { %s311_s16 = sshll.u32 %s2889_s21, 4  ;;  %s333_s22 = sshll.u32 %s2890_s19, 4  ;;  %s312_s16 = int_to_ptr.vmem [resolvable:$true] %s311_s16  ;;  %s334_s22 = int_to_ptr.vmem [resolvable:$true] %s333_s22 }
  0x4e   : > { %s2799_s23 = scalar_lea.vmem %s312_s16, 16  ;;  %s2806_s17 = scalar_lea.vmem %s312_s16, 32 }
  0x4f   : > { %p2800_p13 = scmp.ne.s32.totalorder %s312_s16, %s2799_s23  ;;  %p2807_p4 = scmp.lt.s32.totalorder %s312_s16, %s312_s16 }
  0x50   : > { %p2808_p7 = scmp.lt.s32.totalorder %s2806_s17, %s2799_s23 }
  0x51   : > { %p2802_p0 = pnand %p2800_p13, %p2977_p6 }
  0x52   : > { %p2809_p8 = por %p2808_p7, %p2807_p4 }
  0x53   : > { %p2803_p1 = pneg %p2802_p0 }
  0x55   : > { %p2810_p9 = pnand %p2809_p8, %p2803_p1 }
  0x57   : > { %2813 = shalt.err (!%p2810_p9)
}
  0x58   : > { %2535 = dma.hbm_to_vmem [thread:$0]  (!%p2969_p5), %s3416_s5, 16, %s312_s16, [#allocation9]  }
  0x59   : > { %s2825_s26 = scalar_lea.vmem %s334_s22, 16  ;;  %s2832_s30 = scalar_lea.vmem %s334_s22, 32 }
  0x5a   : > { %p2826_p10 = scmp.ne.s32.totalorder %s334_s22, %s2825_s26  ;;  %p2833_p13 = scmp.lt.s32.totalorder %s334_s22, %s334_s22 }
  0x5b   : > { %p2834_p0 = scmp.lt.s32.totalorder %s2832_s30, %s2825_s26 }
  0x5c   : > { %p2828_p11 = pnand %p2826_p10, %p2977_p6 }
  0x5d   : > { %p2835_p2 = por %p2834_p0, %p2833_p13 }
  0x5e   : > { %p2829_p12 = pneg %p2828_p11 }
  0x60   : > { %p2836_p3 = pnand %p2835_p2, %p2829_p12 }
  0x62   : > { %2839 = shalt.err (!%p2836_p3)
}
  0x63   : > { %2541 = dma.hbm_to_vmem [thread:$0]  (!%p2969_p5), %s3418_s7, 16, %s334_s22, [#allocation12]  }
  0x64   : > { %p3427_p1 = scmp.ne.s32.totalorder %s3424_s10, 0 }
  0x65   : > { %p3428_p4 = scmp.ne.s32.totalorder (!%p3427_p1), %s3423_s9, 0 }
  0x66   : > { %357 = sbr.rel (%p3427_p1) target bundleno = 925 (0x39d), region = 52 }
  0x6b   : > { %2853 = dma.done.wait (%p3428_p4), [#allocation4], 2304  }
  0x6c   : > { %2855 = vsyncadd (%p3428_p4), [#allocation4], 4294964992 }
  0x6d   : > { %2857 = dma.done.wait (%p3428_p4), [#allocation6], 1920  }
  0x6e   : > { %2859 = vsyncadd (%p3428_p4), [#allocation6], 4294965376 }
  0x6f   : > { %2861 = dma.done.wait (%p3428_p4), [#allocation9], 32  }
  0x70   : > { %2863 = vsyncadd (%p3428_p4), [#allocation9], 4294967264 }
  0x71   : > { %2865 = dma.done.wait (%p3428_p4), [#allocation12], 32  }
  0x72   : > { %2867 = vsyncadd (%p3428_p4), [#allocation12], 4294967264  ;;  %v2891_v0 = vmov 0.0   ;;  %vm2892_vm0 = vmmov 0   ;;  %p418_p2 = scmp.lt.s32.totalorder %s2870_s27, 1  ;;  %v2594_v1 = vld [vmem:[#allocation3 + $0x28] sm:$0xff]  }
  0x73   : > { %2276 = vmatprep.subr.bf16.mxu0 %v2891_v0  ;;  %2324 = vmatprep.subr.bf16.mxu1 %v2891_v0  ;;  %v2595_v2 = vld [vmem:[#allocation3 + $0x58] sm:$0xff]   ;;  %v2596_v3 = vld [vmem:[#allocation3 + $0x20] sm:$0xff]   ;;  %v2597_v4 = vld [vmem:[#allocation3 + $0x50] sm:$0xff]   ;;  %vm584_vm1 = vcmask 785408  }
  0x74   : > { %2288 = vmatprep.mubr.msk.bf16.mxu0 %vm2892_vm0, %v2891_v0  ;;  %2336 = vmatprep.mubr.msk.bf16.mxu1 %vm2892_vm0, %v2891_v0  ;;  %s3434_s27 = smov (!%p418_p2, %s2870_s27), 1  ;;  %v2598_v5 = vld [vmem:[#allocation3 + $0x18] sm:$0xff]   ;;  %v2599_v6 = vld [vmem:[#allocation3 + $0x48] sm:$0xff]   ;;  %v2600_v7 = vld [vmem:[#allocation3 + $0x10] sm:$0xff]  }
  0x75   : > { %2277 = vmatpush3.bf16.msra.mxu0 %v2594_v1  ;;  %2325 = vmatpush3.bf16.msra.mxu1 %v2595_v2  ;;  %s2490_s9 = smul.u32 88, %s3434_s27  ;;  %v2601_v8 = vld [vmem:[#allocation3 + $0x40] sm:$0xff]   ;;  %v2602_v9 = vld [vmem:[#allocation3 + $0x8] sm:$0xff]   ;;  %v2603_v10 = vld [vmem:[#allocation3 + $0x38] sm:$0xff]  }
  0x76   : > { %2278 = vmatprep.subr.bf16.mxu0 %v2891_v0  ;;  %2326 = vmatprep.subr.bf16.mxu1 %v2891_v0  ;;  %v2604_v11 = vld [vmem:[#allocation3] sm:$0xff]   ;;  %v2605_v12 = vld [vmem:[#allocation3 + $0x30] sm:$0xff]   ;;  %v2616_v15 = vld [vmem:[#allocation3 + $0x88] sm:$0xff]   ;;  %s2491_s13 = smul.u32 28, %s3434_s27 }
  0x77   : > { %s3082_s18 = scalar_lea.vmem %s3411_s0, %s2490_s9  ;;  %v2621_v16 = vld [vmem:[#allocation3 + $0x80] sm:$0xff]   ;;  %v2624_v19 = vld [vmem:[#allocation3 + $0x78] sm:$0xff]   ;;  %v2625_v20 = vld [vmem:[#allocation3 + $0x70] sm:$0xff]  }
  0x78   : > { %v2606_v13 = vld [vmem:[%s3082_s18] sm:$0xff]   ;;  %v2607_v14 = vld [vmem:[%s3082_s18 + $0x8] sm:$0xff]   ;;  %v2609_v18 = vld [vmem:[%s3082_s18 + $0x10] sm:$0xff]   ;;  %s431_s16 = scalar_lea.vmem %s3419_s8, %s2491_s13 }
  0x79   : > { %2279 = vmatpush3.bf16.msra.mxu0 %v2596_v3  ;;  %2327 = vmatpush3.bf16.msra.mxu1 %v2597_v4  ;;  %v2608_v17 = vld [vmem:[%s3082_s18 + $0x8] sm:$0xff]   ;;  %v2610_v21 = vld [vmem:[%s3082_s18 + $0x10] sm:$0xff]   ;;  %v2611_v22 = vld [vmem:[%s3082_s18 + $0x18] sm:$0xff]  }
  0x7a   : > { %2280 = vmatprep.subr.bf16.mxu0 %v2891_v0  ;;  %2328 = vmatprep.subr.bf16.mxu1 %v2891_v0  ;;  %v2628_v23 = vld [vmem:[#allocation3 + $0x68] sm:$0xff]   ;;  %v2612_v24 = vld [vmem:[%s3082_s18 + $0x18] sm:$0xff]   ;;  %v2629_v25 = vld [vmem:[#allocation3 + $0x60] sm:$0xff]  }
  0x7b   : > { %v2613_v26 = vld [vmem:[%s3082_s18 + $0x20] sm:$0xff]   ;;  %v2615_v28 = vld [vmem:[%s3082_s18 + $0x28] sm:$0xff]   ;;  %v2618_v30 = vld [vmem:[%s3082_s18 + $0x30] sm:$0xff]  }
  0x7c   : > { %v2614_v27 = vld [vmem:[%s3082_s18 + $0x20] sm:$0xff]   ;;  %v2617_v29 = vld [vmem:[%s3082_s18 + $0x28] sm:$0xff]   ;;  %v2619_v31 = vld [vmem:[%s3082_s18 + $0x30] sm:$0xff]  }
  0x7d   : > { %2281 = vmatpush3.bf16.msra.mxu0 %v2598_v5  ;;  %2329 = vmatpush3.bf16.msra.mxu1 %v2599_v6  ;;  %v2620_v32 = vld [vmem:[%s3082_s18 + $0x38] sm:$0xff]   ;;  %v2623_v34 = vld [vmem:[%s3082_s18 + $0x40] sm:$0xff]   ;;  %v2627_v36 = vld [vmem:[%s3082_s18 + $0x48] sm:$0xff]  }
  0x7e   : > { %2282 = vmatprep.subr.bf16.mxu0 %v2891_v0  ;;  %2330 = vmatprep.subr.bf16.mxu1 %v2891_v0  ;;  %v2622_v33 = vld [vmem:[%s3082_s18 + $0x38] sm:$0xff]   ;;  %v2626_v35 = vld [vmem:[%s3082_s18 + $0x40] sm:$0xff]   ;;  %v2630_v37 = vld [vmem:[%s3082_s18 + $0x10] sm:$0xff]  }
  0x7f   : > { %v2631_v38 = vld [vmem:[%s3082_s18 + $0x18] sm:$0xff]   ;;  %v2632_v39 = vld [vmem:[%s3082_s18 + $0x20] sm:$0xff]   ;;  %v2633_v40 = vld [vmem:[%s3082_s18 + $0x28] sm:$0xff]  }
  0x80   : > { %v2634_v41 = vld [vmem:[%s3082_s18 + $0x30] sm:$0xff]   ;;  %v2635_v42 = vld [vmem:[%s3082_s18 + $0x38] sm:$0xff]   ;;  %v2636_v43 = vld [vmem:[%s3082_s18 + $0x40] sm:$0xff]  }
  0x81   : > { %2283 = vmatpush3.bf16.msra.mxu0 %v2600_v7  ;;  %2331 = vmatpush3.bf16.msra.mxu1 %v2601_v8  ;;  %v2639_v44 = vld [vmem:[#allocation5 + $0x38] sm:$0xff]   ;;  %v2640_v46 = vld [vmem:[#allocation5 + $0x30] sm:$0xff]   ;;  %v2641_v47 = vld [vmem:[#allocation5 + $0x28] sm:$0xff]  }
  0x82   : > { %2284 = vmatprep.subr.bf16.mxu0 %v2891_v0  ;;  %2332 = vmatprep.subr.bf16.mxu1 %v2891_v0  ;;  %v2637_v45 = vld [vmem:[%s3082_s18 + $0x48] sm:$0xff]   ;;  %v2638_v48 = vld [vmem:[%s3082_s18 + $0x50] sm:$0xff]   ;;  %v2644_v51 = vld [vmem:[#allocation5 + $0x10] sm:$0xff]  }
  0x83   : > { %v2642_v49 = vld [vmem:[#allocation5 + $0x20] sm:$0xff]   ;;  %v2643_v50 = vld [vmem:[#allocation5 + $0x18] sm:$0xff]   ;;  %v2645_v52 = vld [vmem:[#allocation5 + $0x8] sm:$0xff]  }
  0x84   : > { %v2646_v53 = vld [vmem:[#allocation5] sm:$0xff]  }
  0x85   : > { %2285 = vmatpush3.bf16.msra.mxu0 %v2602_v9  ;;  %2333 = vmatpush3.bf16.msra.mxu1 %v2603_v10 }
  0x86   : > { %2286 = vmatprep.subr.bf16.mxu0 %v2891_v0  ;;  %2334 = vmatprep.subr.bf16.mxu1 %v2891_v0 }
  0x89   : > { %2287 = vmatpush3.bf16.msra.mxu0 %v2604_v11  ;;  %2335 = vmatpush3.bf16.msra.mxu1 %v2605_v12 }
  0x8a   : > { %2372 = vmatprep.subr.bf16.mxu0 %v2891_v0  ;;  %2420 = vmatprep.subr.bf16.mxu1 %v2891_v0 }
  0x8c   : > { %2289 = vmatmul.mubr.msk.bf16.vlgmr.msra.gmra.mxu0 %vm584_vm1, %v2606_v13  ;;  %2337 = vmatmul.mubr.msk.bf16.vlgmr.msra.gmra.mxu1 %vm584_vm1, %v2607_v14 }
  0x8d   : > { %2292 = vmatprep.mubr.msk.bf16.mxu0 %vm2892_vm0, %v2891_v0  ;;  %2340 = vmatprep.mubr.msk.bf16.mxu1 %vm2892_vm0, %v2891_v0 }
  0x8e   : > { %2373 = vmatpush3.bf16.msra.mxu0 %v2616_v15  ;;  %2421 = vmatpush3.bf16.msra.mxu1 %v2639_v44 }
  0x8f   : > { %2374 = vmatprep.subr.bf16.mxu0 %v2891_v0  ;;  %2422 = vmatprep.subr.bf16.mxu1 %v2891_v0 }
  0x92   : > { %2375 = vmatpush3.bf16.msra.mxu0 %v2621_v16  ;;  %2423 = vmatpush3.bf16.msra.mxu1 %v2640_v46 }
  0x93   : > { %2376 = vmatprep.subr.bf16.mxu0 %v2891_v0  ;;  %2424 = vmatprep.subr.bf16.mxu1 %v2891_v0 }
  0x94   : > { %2293 = vmatmul.mubr.msk.bf16.gmra.mxu0 %vm584_vm1, %v2608_v17  ;;  %2341 = vmatmul.mubr.msk.bf16.gmra.mxu1 %vm584_vm1, %v2609_v18 }
  0x95   : > { %2296 = vmatprep.mubr.msk.bf16.mxu0 %vm2892_vm0, %v2891_v0  ;;  %2344 = vmatprep.mubr.msk.bf16.mxu1 %vm2892_vm0, %v2891_v0 }
  0x96   : > { %2377 = vmatpush3.bf16.msra.mxu0 %v2624_v19  ;;  %2425 = vmatpush3.bf16.msra.mxu1 %v2641_v47 }
  0x97   : > { %2378 = vmatprep.subr.bf16.mxu0 %v2891_v0  ;;  %2426 = vmatprep.subr.bf16.mxu1 %v2891_v0 }
  0x9a   : > { %2379 = vmatpush3.bf16.msra.mxu0 %v2625_v20  ;;  %2427 = vmatpush3.bf16.msra.mxu1 %v2642_v49 }
  0x9b   : > { %2380 = vmatprep.subr.bf16.mxu0 %v2891_v0  ;;  %2428 = vmatprep.subr.bf16.mxu1 %v2891_v0 }
  0x9c   : > { %2297 = vmatmul.mubr.msk.bf16.gmra.mxu0 %vm584_vm1, %v2610_v21  ;;  %2345 = vmatmul.mubr.msk.bf16.gmra.mxu1 %vm584_vm1, %v2611_v22 }
  0x9d   : > { %2300 = vmatprep.mubr.msk.bf16.mxu0 %vm2892_vm0, %v2891_v0  ;;  %2348 = vmatprep.mubr.msk.bf16.mxu1 %vm2892_vm0, %v2891_v0 }
  0x9e   : > { %2381 = vmatpush3.bf16.msra.mxu0 %v2628_v23  ;;  %2429 = vmatpush3.bf16.msra.mxu1 %v2643_v50 }
  0x9f   : > { %2382 = vmatprep.subr.bf16.mxu0 %v2891_v0  ;;  %2430 = vmatprep.subr.bf16.mxu1 %v2891_v0 }
  0xa2   : > { %2383 = vmatpush3.bf16.msra.mxu0 %v2629_v25  ;;  %2431 = vmatpush3.bf16.msra.mxu1 %v2644_v51 }
  0xa3   : > { %2432 = vmatprep.subr.bf16.mxu1 %v2891_v0 }
  0xa4   : > { %2301 = vmatmul.mubr.msk.bf16.gmra.mxu0 %vm584_vm1, %v2612_v24  ;;  %2349 = vmatmul.mubr.msk.bf16.gmra.mxu1 %vm584_vm1, %v2613_v26 }
  0xa5   : > { %2304 = vmatprep.mubr.msk.bf16.mxu0 %vm2892_vm0, %v2891_v0  ;;  %2352 = vmatprep.mubr.msk.bf16.mxu1 %vm2892_vm0, %v2891_v0 }
  0xa6   : > { %2433 = vmatpush3.bf16.msra.mxu1 %v2645_v52 }
  0xa7   : > { %2434 = vmatprep.subr.bf16.mxu1 %v2891_v0 }
  0xaa   : > { %2435 = vmatpush3.bf16.msra.mxu1 %v2646_v53 }
  0xac   : > { %2305 = vmatmul.mubr.msk.bf16.gmra.mxu0 %vm584_vm1, %v2614_v27  ;;  %2353 = vmatmul.mubr.msk.bf16.gmra.mxu1 %vm584_vm1, %v2615_v28 }
  0xad   : > { %2308 = vmatprep.mubr.msk.bf16.mxu0 %vm2892_vm0, %v2891_v0  ;;  %2356 = vmatprep.mubr.msk.bf16.mxu1 %vm2892_vm0, %v2891_v0 }
  0xb4   : > { %2309 = vmatmul.mubr.msk.bf16.gmra.mxu0 %vm584_vm1, %v2617_v29  ;;  %2357 = vmatmul.mubr.msk.bf16.gmra.mxu1 %vm584_vm1, %v2618_v30 }
  0xb5   : > { %2312 = vmatprep.mubr.msk.bf16.mxu0 %vm2892_vm0, %v2891_v0  ;;  %2360 = vmatprep.mubr.msk.bf16.mxu1 %vm2892_vm0, %v2891_v0 }
  0xbc   : > { %2313 = vmatmul.mubr.msk.bf16.gmra.mxu0 %vm584_vm1, %v2619_v31  ;;  %2361 = vmatmul.mubr.msk.bf16.gmra.mxu1 %vm584_vm1, %v2620_v32 }
  0xbd   : > { %2316 = vmatprep.mubr.msk.bf16.mxu0 %vm2892_vm0, %v2891_v0  ;;  %2364 = vmatprep.mubr.msk.bf16.mxu1 %vm2892_vm0, %v2891_v0 }
  0xc4   : > { %2317 = vmatmul.mubr.msk.bf16.gmra.mxu0 %vm584_vm1, %v2622_v33  ;;  %2365 = vmatmul.mubr.msk.bf16.gmra.mxu1 %vm584_vm1, %v2623_v34 }
  0xc5   : > { %2320 = vmatprep.mubr.msk.bf16.mxu0 %vm2892_vm0, %v2891_v0  ;;  %2368 = vmatprep.mubr.msk.bf16.mxu1 %vm2892_vm0, %v2891_v0 }
  0xcc   : > { %2321 = vmatmul.mubr.msk.bf16.gmra.mxu0 %vm584_vm1, %v2626_v35  ;;  %2369 = vmatmul.mubr.msk.bf16.gmra.mxu1 %vm584_vm1, %v2627_v36 }
  0xcd   : > { %2384 = vmatprep.mubr.msk.bf16.mxu0 %vm2892_vm0, %v2891_v0  ;;  %2436 = vmatprep.mubr.msk.bf16.mxu1 %vm2892_vm0, %v2891_v0 }
  0xd4   : > { %2385 = vmatmul.mubr.msk.bf16.vlgmr.msra.gmra.mxu0 %vm584_vm1, %v2630_v37 }
  0xd5   : > { %2388 = vmatprep.mubr.msk.bf16.mxu0 %vm2892_vm0, %v2891_v0 }
  0xdc   : > { %2389 = vmatmul.mubr.msk.bf16.gmra.mxu0 %vm584_vm1, %v2631_v38 }
  0xdd   : > { %2392 = vmatprep.mubr.msk.bf16.mxu0 %vm2892_vm0, %v2891_v0 }
  0xe4   : > { %2393 = vmatmul.mubr.msk.bf16.gmra.mxu0 %vm584_vm1, %v2632_v39 }
  0xe5   : > { %2396 = vmatprep.mubr.msk.bf16.mxu0 %vm2892_vm0, %v2891_v0 }
  0xec   : > { %2397 = vmatmul.mubr.msk.bf16.gmra.mxu0 %vm584_vm1, %v2633_v40 }
  0xed   : > { %2400 = vmatprep.mubr.msk.bf16.mxu0 %vm2892_vm0, %v2891_v0 }
  0xf4   : > { %2401 = vmatmul.mubr.msk.bf16.gmra.mxu0 %vm584_vm1, %v2634_v41 }
  0xf5   : > { %2404 = vmatprep.mubr.msk.bf16.mxu0 %vm2892_vm0, %v2891_v0 }
  0xfc   : > { %2405 = vmatmul.mubr.msk.bf16.gmra.mxu0 %vm584_vm1, %v2635_v42 }
  0xfd   : > { %2408 = vmatprep.mubr.msk.bf16.mxu0 %vm2892_vm0, %v2891_v0 }
 0x104   : > { %2409 = vmatmul.mubr.msk.bf16.gmra.mxu0 %vm584_vm1, %v2636_v43 }
 0x105   : > { %2412 = vmatprep.mubr.msk.bf16.mxu0 %vm2892_vm0, %v2891_v0 }
 0x10c   : > { %2413 = vmatmul.mubr.msk.bf16.gmra.mxu0 %vm584_vm1, %v2637_v45 }
 0x10d   : > { %2416 = vmatprep.mubr.msk.bf16.mxu0 %vm2892_vm0, %v2891_v0 }
 0x114   : > { %2417 = vmatmul.mubr.msk.bf16.gmra.mxu0 %vm584_vm1, %v2638_v48 }
 0x14c   : > { %v646_v54 = vpop.f32.mrf.mxu0  ;;  %v944_v55 = vpop.f32.mrf.mxu1 }
 0x14d   : > { %v3209_v56 = vadd.f32 %v944_v55, %v646_v54 }
 0x14e   : > { %v2290_v57 = vpop.f32.mrf.mxu0  ;;  %v2338_v58 = vpop.f32.mrf.mxu1 }
 0x150   : > { %v649_v59 = vpop.f32.mrf.mxu0  ;;  %v947_v60 = vpop.f32.mrf.mxu1 }
 0x151   : > { %v3211_v61 = vadd.f32 %v947_v60, %v649_v59 }
 0x152   : > { %v2291_v62 = vpop.f32.mrf.mxu0  ;;  %v2339_v63 = vpop.f32.mrf.mxu1 }
 0x154   : > { %v654_v1 = vpop.f32.mrf.mxu0  ;;  %v952_v2 = vpop.f32.mrf.mxu1 }
 0x155   : > { %v3213_v3 = vadd.f32 %v952_v2, %v654_v1 }
 0x156   : > { %v2294_v4 = vpop.f32.mrf.mxu0  ;;  %v2342_v5 = vpop.f32.mrf.mxu1 }
 0x158   : > { %v657_v6 = vpop.f32.mrf.mxu0  ;;  %v955_v7 = vpop.f32.mrf.mxu1 }
 0x159   : > { %v3215_v8 = vadd.f32 %v955_v7, %v657_v6 }
 0x15a   : > { %v2295_v9 = vpop.f32.mrf.mxu0  ;;  %v2343_v10 = vpop.f32.mrf.mxu1 }
 0x15c   : > { %v662_v11 = vpop.f32.mrf.mxu0  ;;  %v960_v12 = vpop.f32.mrf.mxu1 }
 0x15d   : > { %v3217_v13 = vadd.f32 %v960_v12, %v662_v11 }
 0x15e   : > { %v2298_v14 = vpop.f32.mrf.mxu0  ;;  %v2346_v15 = vpop.f32.mrf.mxu1 }
 0x160   : > { %v665_v16 = vpop.f32.mrf.mxu0  ;;  %v963_v17 = vpop.f32.mrf.mxu1 }
 0x161   : > { %v3219_v18 = vadd.f32 %v963_v17, %v665_v16 }
 0x162   : > { %v2299_v19 = vpop.f32.mrf.mxu0  ;;  %v2347_v20 = vpop.f32.mrf.mxu1 }
 0x164   : > { %v670_v21 = vpop.f32.mrf.mxu0  ;;  %v968_v22 = vpop.f32.mrf.mxu1 }
 0x165   : > { %v3221_v23 = vadd.f32 %v968_v22, %v670_v21 }
 0x166   : > { %v2302_v24 = vpop.f32.mrf.mxu0  ;;  %v2350_v25 = vpop.f32.mrf.mxu1 }
 0x168   : > { %v673_v26 = vpop.f32.mrf.mxu0  ;;  %v971_v27 = vpop.f32.mrf.mxu1 }
 0x169   : > { %v3223_v28 = vadd.f32 %v971_v27, %v673_v26  ;;  %v3245_v26 = vld [vmem:[#allocation8] ss:$0 sm:$0xff] }
 0x16a   : > { %v2303_v29 = vpop.f32.mrf.mxu0  ;;  %v2351_v30 = vpop.f32.mrf.mxu1 }
 0x16b   : > { %v3248_v29 = vld [vmem:[#allocation10] ss:$0 sm:$0xff] }
 0x16c   : > { %v678_v31 = vpop.f32.mrf.mxu0  ;;  %v976_v32 = vpop.f32.mrf.mxu1 }
 0x16d   : > { %v3225_v33 = vadd.f32 %v976_v32, %v678_v31 }
 0x16e   : > { %v2306_v34 = vpop.f32.mrf.mxu0  ;;  %v2354_v35 = vpop.f32.mrf.mxu1 }
 0x170   : > { %v681_v36 = vpop.f32.mrf.mxu0  ;;  %v979_v37 = vpop.f32.mrf.mxu1 }
 0x171   : > { %v3227_v38 = vadd.f32 %v979_v37, %v681_v36 }
 0x172   : > { %v2307_v39 = vpop.f32.mrf.mxu0  ;;  %v2355_v40 = vpop.f32.mrf.mxu1 }
 0x174   : > { %v686_v41 = vpop.f32.mrf.mxu0  ;;  %v984_v42 = vpop.f32.mrf.mxu1 }
 0x175   : > { %v3229_v43 = vadd.f32 %v984_v42, %v686_v41 }
 0x176   : > { %v2310_v44 = vpop.f32.mrf.mxu0  ;;  %v2358_v45 = vpop.f32.mrf.mxu1 }
 0x178   : > { %v689_v46 = vpop.f32.mrf.mxu0  ;;  %v987_v47 = vpop.f32.mrf.mxu1 }
 0x179   : > { %v3231_v48 = vadd.f32 %v987_v47, %v689_v46 }
 0x17a   : > { %v2311_v49 = vpop.f32.mrf.mxu0  ;;  %v2359_v50 = vpop.f32.mrf.mxu1 }
 0x17c   : > { %v694_v51 = vpop.f32.mrf.mxu0  ;;  %v992_v52 = vpop.f32.mrf.mxu1 }
 0x17d   : > { %v3233_v53 = vadd.f32 %v992_v52, %v694_v51 }
 0x17e   : > { %v2314_v54 = vpop.f32.mrf.mxu0  ;;  %v2362_v55 = vpop.f32.mrf.mxu1 }
 0x180   : > { %v697_v57 = vpop.f32.mrf.mxu0  ;;  %v995_v58 = vpop.f32.mrf.mxu1 }
 0x181   : > { %v3235_v59 = vadd.f32 %v995_v58, %v697_v57 }
 0x182   : > { %v2315_v60 = vpop.f32.mrf.mxu0  ;;  %v2363_v62 = vpop.f32.mrf.mxu1 }
 0x184   : > { %v702_v63 = vpop.f32.mrf.mxu0  ;;  %v1000_v1 = vpop.f32.mrf.mxu1 }
 0x185   : > { %v3237_v2 = vadd.f32 %v1000_v1, %v702_v63 }
 0x186   : > { %v2318_v4 = vpop.f32.mrf.mxu0  ;;  %v2366_v5 = vpop.f32.mrf.mxu1 }
 0x188   : > { %v705_v6 = vpop.f32.mrf.mxu0  ;;  %v1003_v7 = vpop.f32.mrf.mxu1 }
 0x189   : > { %v3239_v9 = vadd.f32 %v1003_v7, %v705_v6 }
 0x18a   : > { %v2319_v10 = vpop.f32.mrf.mxu0  ;;  %v2367_v11 = vpop.f32.mrf.mxu1 }
 0x18c   : > { %v710_v12 = vpop.f32.mrf.mxu0  ;;  %v1008_v14 = vpop.f32.mrf.mxu1 }
 0x18d   : > { %v3241_v15 = vadd.f32 %v1008_v14, %v710_v12 }
 0x18e   : > { %v2322_v16 = vpop.f32.mrf.mxu0  ;;  %v2370_v17 = vpop.f32.mrf.mxu1 }
 0x190   : > { %v713_v19 = vpop.f32.mrf.mxu0  ;;  %v1011_v20 = vpop.f32.mrf.mxu1 }
 0x191   : > { %v3243_v21 = vadd.f32 %v1011_v20, %v713_v19 }
 0x192   : > { %v2323_v22 = vpop.f32.mrf.mxu0  ;;  %v2371_v24 = vpop.f32.mrf.mxu1 }
 0x194   : > { %v1242_v25 = vpop.f32.mrf.mxu0 }
 0x195   : > { %v1313_v27 = vadd.f32 %v1242_v25, %v3209_v56 }
 0x196   : > { %v2386_v30 = vpop.f32.mrf.mxu0 }
 0x197   : > { %v1377_v31 = vmul.f32 %v3245_v26, %v1313_v27 }
 0x198   : > { %v1245_v32 = vpop.f32.mrf.mxu0 }
 0x199   : > { %v1402_v34 = vadd.f32 %v3248_v29, %v1377_v31  ;;  %v1314_v35 = vadd.f32 %v1245_v32, %v3211_v61 }
 0x19a   : > { %v2387_v36 = vpop.f32.mrf.mxu0 }
 0x19b   : > { %v1378_v37 = vmul.f32 %v3245_v26, %v1314_v35  ;;  %v1438_v40 = vmul.f32 0.1, %v1402_v34  ;;  %vm1420_vm2 = vcmp.ge.f32.partialorder %v1402_v34, 0.0 }
 0x19c   : > { %v1250_v39 = vpop.f32.mrf.mxu0 }
 0x19d   : > { %v1403_v41 = vadd.f32 %v3248_v29, %v1378_v37  ;;  %v1315_v42 = vadd.f32 %v1250_v39, %v3213_v3  ;;  %v1456_v47 = vsel %vm1420_vm2, %v1402_v34, %v1438_v40 }
 0x19e   : > { %v2390_v56 = vpop.f32.mrf.mxu0 }
 0x19f   : > { %vm1421_vm3 = vcmp.ge.f32.partialorder %v1403_v41, 0.0  ;;  %v1439_v44 = vmul.f32 0.1, %v1403_v41  ;;  %v1379_v45 = vmul.f32 %v3245_v26, %v1315_v42 }
 0x1a0   : > { %v1253_v46 = vpop.f32.mrf.mxu0 }
 0x1a1   : > { %v1457_v49 = vsel %vm1421_vm3, %v1403_v41, %v1439_v44  ;;  %v1404_v61 = vadd.f32 %v3248_v29, %v1379_v45  ;;  %v1316_v50 = vadd.f32 %v1253_v46, %v3215_v8 }
 0x1a2   : > { %v1474_v51 = vpack.c.bf16 %v1457_v49, %v1456_v47  ;;  %v2391_v52 = vpop.f32.mrf.mxu0 }
 0x1a3   : > { %v1380_v54 = vmul.f32 %v3245_v26, %v1316_v50  ;;  %v1440_v3 = vmul.f32 0.1, %v1404_v61  ;;  %vm1422_vm4 = vcmp.ge.f32.partialorder %v1404_v61, 0.0 }
 0x1a4   : > { %v1258_v55 = vpop.f32.mrf.mxu0  ;;  %2437 = vmatmul.mubr.bf16.vlgmr.msra.gmra.mxu1 %v1474_v51 }
 0x1a5   : > { %v1405_v57 = vadd.f32 %v3248_v29, %v1380_v54  ;;  %v1317_v58 = vadd.f32 %v1258_v55, %v3217_v13  ;;  %2440 = vmatprep.mubr.msk.bf16.mxu1 %vm2892_vm0, %v2891_v0  ;;  %v1458_v5 = vsel %vm1422_vm4, %v1404_v61, %v1440_v3 }
 0x1a6   : > { %v2394_v60 = vpop.f32.mrf.mxu0 }
 0x1a7   : > { %v1441_v62 = vmul.f32 0.1, %v1405_v57  ;;  %v1381_v63 = vmul.f32 %v3245_v26, %v1317_v58  ;;  %vm1423_vm5 = vcmp.ge.f32.partialorder %v1405_v57, 0.0 }
 0x1a8   : > { %v1261_v8 = vpop.f32.mrf.mxu0 }
 0x1a9   : > { %v1406_v1 = vadd.f32 %v3248_v29, %v1381_v63  ;;  %v1318_v4 = vadd.f32 %v1261_v8, %v3219_v18  ;;  %v1459_v6 = vsel %vm1423_vm5, %v1405_v57, %v1441_v62  ;;  %vm1805_vm5 = vcmask 130048  }
 0x1aa   : > { %v2395_v7 = vpop.f32.mrf.mxu0  ;;  %v1475_v10 = vpack.c.bf16 %v1459_v6, %v1458_v5 }
 0x1ab   : > { %v1382_v13 = vmul.f32 %v3245_v26, %v1318_v4  ;;  %v1442_v12 = vmul.f32 0.1, %v1406_v1  ;;  %vm1424_vm6 = vcmp.ge.f32.partialorder %v1406_v1, 0.0 }
 0x1ac   : > { %v1266_v11 = vpop.f32.mrf.mxu0  ;;  %2441 = vmatmul.mubr.bf16.gmra.mxu1 %v1475_v10 }
 0x1ad   : > { %v1407_v14 = vadd.f32 %v3248_v29, %v1382_v13  ;;  %v1319_v16 = vadd.f32 %v1266_v11, %v3221_v23  ;;  %2444 = vmatprep.mubr.msk.bf16.mxu1 %vm2892_vm0, %v2891_v0  ;;  %v1460_v25 = vsel %vm1424_vm6, %v1406_v1, %v1442_v12 }
 0x1ae   : > { %v2398_v17 = vpop.f32.mrf.mxu0 }
 0x1af   : > { %v1443_v19 = vmul.f32 0.1, %v1407_v14  ;;  %v1383_v18 = vmul.f32 %v3245_v26, %v1319_v16  ;;  %vm1425_vm7 = vcmp.ge.f32.partialorder %v1407_v14, 0.0 }
 0x1b0   : > { %v1269_v20 = vpop.f32.mrf.mxu0 }
 0x1b1   : > { %v1408_v22 = vadd.f32 %v3248_v29, %v1383_v18  ;;  %v1320_v24 = vadd.f32 %v1269_v20, %v3223_v28  ;;  %v1461_v27 = vsel %vm1425_vm7, %v1407_v14, %v1443_v19 }
 0x1b2   : > { %v2399_v30 = vpop.f32.mrf.mxu0  ;;  %v1476_v31 = vpack.c.bf16 %v1461_v27, %v1460_v25 }
 0x1b3   : > { %v1384_v23 = vmul.f32 %v3245_v26, %v1320_v24  ;;  %v1444_v34 = vmul.f32 0.1, %v1408_v22  ;;  %vm1426_vm8 = vcmp.ge.f32.partialorder %v1408_v22, 0.0 }
 0x1b4   : > { %v1274_v32 = vpop.f32.mrf.mxu0  ;;  %2445 = vmatmul.mubr.bf16.gmra.mxu1 %v1476_v31 }
 0x1b5   : > { %v1409_v35 = vadd.f32 %v3248_v29, %v1384_v23  ;;  %v1321_v36 = vadd.f32 %v1274_v32, %v3225_v33  ;;  %2448 = vmatprep.mubr.msk.bf16.mxu1 %vm2892_vm0, %v2891_v0  ;;  %v1462_v56 = vsel %vm1426_vm8, %v1408_v22, %v1444_v34 }
 0x1b6   : > { %v2402_v37 = vpop.f32.mrf.mxu0 }
 0x1b7   : > { %v1445_v39 = vmul.f32 0.1, %v1409_v35  ;;  %v1385_v28 = vmul.f32 %v3245_v26, %v1321_v36  ;;  %vm1427_vm9 = vcmp.ge.f32.partialorder %v1409_v35, 0.0 }
 0x1b8   : > { %v1277_v40 = vpop.f32.mrf.mxu0 }
 0x1b9   : > { %v1410_v41 = vadd.f32 %v3248_v29, %v1385_v28  ;;  %v1322_v42 = vadd.f32 %v1277_v40, %v3227_v38  ;;  %v1463_v44 = vsel %vm1427_vm9, %v1409_v35, %v1445_v39 }
 0x1ba   : > { %v2403_v45 = vpop.f32.mrf.mxu0  ;;  %v1477_v46 = vpack.c.bf16 %v1463_v44, %v1462_v56 }
 0x1bb   : > { %v1386_v33 = vmul.f32 %v3245_v26, %v1322_v42  ;;  %v1446_v49 = vmul.f32 0.1, %v1410_v41  ;;  %vm1428_vm10 = vcmp.ge.f32.partialorder %v1410_v41, 0.0 }
 0x1bc   : > { %v1282_v47 = vpop.f32.mrf.mxu0  ;;  %2449 = vmatmul.mubr.bf16.gmra.mxu1 %v1477_v46 }
 0x1bd   : > { %v1411_v61 = vadd.f32 %v3248_v29, %v1386_v33  ;;  %v1323_v50 = vadd.f32 %v1282_v47, %v3229_v43  ;;  %2452 = vmatprep.mubr.msk.bf16.mxu1 %vm2892_vm0, %v2891_v0  ;;  %v1464_v57 = vsel %vm1428_vm10, %v1410_v41, %v1446_v49 }
 0x1be   : > { %v2406_v51 = vpop.f32.mrf.mxu0 }
 0x1bf   : > { %v1447_v52 = vmul.f32 0.1, %v1411_v61  ;;  %v1387_v38 = vmul.f32 %v3245_v26, %v1323_v50  ;;  %vm1429_vm11 = vcmp.ge.f32.partialorder %v1411_v61, 0.0 }
 0x1c0   : > { %v1285_v54 = vpop.f32.mrf.mxu0 }
 0x1c1   : > { %v1412_v55 = vadd.f32 %v3248_v29, %v1387_v38  ;;  %v1324_v3 = vadd.f32 %v1285_v54, %v3231_v48  ;;  %v1465_v58 = vsel %vm1429_vm11, %v1411_v61, %v1447_v52  ;;  %v2652_v38 = vld [vmem:[#allocation7 + $0x24] ss:$8 sps:$4 sm:$0xff]   ;;  %v3325_v54 = vld [vmem:[#allocation13] ss:$0 sm:$0xff] }
 0x1c2   : > { %v2407_v60 = vpop.f32.mrf.mxu0  ;;  %v1478_v62 = vpack.c.bf16 %v1465_v58, %v1464_v57 }
 0x1c3   : > { %v1388_v43 = vmul.f32 %v3245_v26, %v1324_v3  ;;  %v1448_v8 = vmul.f32 0.1, %v1412_v55  ;;  %vm1430_vm12 = vcmp.ge.f32.partialorder %v1412_v55, 0.0 }
 0x1c4   : > { %v1290_v63 = vpop.f32.mrf.mxu0  ;;  %2453 = vmatmul.mubr.bf16.gmra.mxu1 %v1478_v62 }
 0x1c5   : > { %v1413_v1 = vadd.f32 %v3248_v29, %v1388_v43  ;;  %v1325_v4 = vadd.f32 %v1290_v63, %v3233_v53  ;;  %2456 = vmatprep.mubr.msk.bf16.mxu1 %vm2892_vm0, %v2891_v0  ;;  %v1466_v11 = vsel %vm1430_vm12, %v1412_v55, %v1448_v8 }
 0x1c6   : > { %v2410_v5 = vpop.f32.mrf.mxu0 }
 0x1c7   : > { %v1449_v6 = vmul.f32 0.1, %v1413_v1  ;;  %v1389_v48 = vmul.f32 %v3245_v26, %v1325_v4  ;;  %vm1431_vm13 = vcmp.ge.f32.partialorder %v1413_v1, 0.0 }
 0x1c8   : > { %v1293_v7 = vpop.f32.mrf.mxu0 }
 0x1c9   : > { %v1414_v10 = vadd.f32 %v3248_v29, %v1389_v48  ;;  %v1326_v13 = vadd.f32 %v1293_v7, %v3235_v59  ;;  %v1467_v12 = vsel %vm1431_vm13, %v1413_v1, %v1449_v6 }
 0x1ca   : > { %v2411_v14 = vpop.f32.mrf.mxu0  ;;  %v1479_v16 = vpack.c.bf16 %v1467_v12, %v1466_v11 }
 0x1cb   : > { %v1390_v53 = vmul.f32 %v3245_v26, %v1326_v13  ;;  %v1450_v19 = vmul.f32 0.1, %v1414_v10  ;;  %vm1432_vm14 = vcmp.ge.f32.partialorder %v1414_v10, 0.0 }
 0x1cc   : > { %v1298_v17 = vpop.f32.mrf.mxu0  ;;  %2457 = vmatmul.mubr.bf16.gmra.mxu1 %v1479_v16 }
 0x1cd   : > { %v1415_v18 = vadd.f32 %v3248_v29, %v1390_v53  ;;  %v1327_v20 = vadd.f32 %v1298_v17, %v3237_v2  ;;  %2460 = vmatprep.mubr.msk.bf16.mxu1 %vm2892_vm0, %v2891_v0  ;;  %v1468_v31 = vsel %vm1432_vm14, %v1414_v10, %v1450_v19 }
 0x1ce   : > { %v2414_v22 = vpop.f32.mrf.mxu0 }
 0x1cf   : > { %v1451_v24 = vmul.f32 0.1, %v1415_v18  ;;  %v1391_v59 = vmul.f32 %v3245_v26, %v1327_v20  ;;  %vm1433_vm15 = vcmp.ge.f32.partialorder %v1415_v18, 0.0 }
 0x1d0   : > { %v1301_v25 = vpop.f32.mrf.mxu0 }
 0x1d1   : > { %v1416_v27 = vadd.f32 %v3248_v29, %v1391_v59  ;;  %v1328_v30 = vadd.f32 %v1301_v25, %v3239_v9  ;;  %v1469_v23 = vsel %vm1433_vm15, %v1415_v18, %v1451_v24 }
 0x1d2   : > { %v2415_v32 = vpop.f32.mrf.mxu0  ;;  %v1480_v34 = vpack.c.bf16 %v1469_v23, %v1468_v31 }
 0x1d3   : > { %v1392_v2 = vmul.f32 %v3245_v26, %v1328_v30  ;;  %v1452_v36 = vmul.f32 0.1, %v1416_v27  ;;  %vm1434_vm1 = vcmp.ge.f32.partialorder %v1416_v27, 0.0 }
 0x1d4   : > { %v1306_v35 = vpop.f32.mrf.mxu0  ;;  %2461 = vmatmul.mubr.bf16.gmra.mxu1 %v1480_v34 }
 0x1d5   : > { %v1417_v37 = vadd.f32 %v3248_v29, %v1392_v2  ;;  %v1329_v39 = vadd.f32 %v1306_v35, %v3241_v15  ;;  %2464 = vmatprep.mubr.msk.bf16.mxu1 %vm2892_vm0, %v2891_v0  ;;  %v1470_v44 = vsel %vm1434_vm1, %v1416_v27, %v1452_v36 }
 0x1d6   : > { %v2418_v28 = vpop.f32.mrf.mxu0 }
 0x1d7   : > { %v1453_v40 = vmul.f32 0.1, %v1417_v37  ;;  %v1393_v9 = vmul.f32 %v3245_v26, %v1329_v39  ;;  %vm1435_vm2 = vcmp.ge.f32.partialorder %v1417_v37, 0.0 }
 0x1d8   : > { %v1309_v41 = vpop.f32.mrf.mxu0 }
 0x1d9   : > { %v1418_v42 = vadd.f32 %v3248_v29, %v1393_v9  ;;  %v1330_v56 = vadd.f32 %v1309_v41, %v3243_v21  ;;  %v1471_v45 = vsel %vm1435_vm2, %v1417_v37, %v1453_v40  ;;  %v2893_v21 = vmov 0  }
 0x1da   : > { %v1481_v46 = vpack.c.bf16 %v1471_v45, %v1470_v44  ;;  %v2419_v33 = vpop.f32.mrf.mxu0  ;;  %1818 = vmatprep.subr.bf16.mxu0 %v2893_v21  ;;  %2472 = vmatprep.subr.bf16.mxu1 %v2893_v21 }
 0x1db   : > { %v1394_v15 = vmul.f32 %v3245_v26, %v1330_v56  ;;  %v1454_v47 = vmul.f32 0.1, %v1418_v42  ;;  %vm1436_vm3 = vcmp.ge.f32.partialorder %v1418_v42, 0.0  ;;  %v2649_v26 = vld [vmem:[#allocation7 + $0x4] ss:$8 sps:$4 sm:$0xff]  }
 0x1dc   : > { %2465 = vmatmul.mubr.bf16.gmra.mxu1 %v1481_v46  ;;  %2177 = vmatprep.mubr.msk.bf16.mxu0 %vm1805_vm5, %v2649_v26 }
 0x1dd   : > { %v1419_v49 = vadd.f32 %v3248_v29, %v1394_v15  ;;  %2468 = vmatprep.mubr.msk.bf16.mxu1 %vm2892_vm0, %v2891_v0  ;;  %v1472_v50 = vsel %vm1436_vm3, %v1418_v42, %v1454_v47  ;;  %v3323_v0 = vld [vmem:[#allocation11] ss:$0 sm:$0xff] }
 0x1df   : > { %v1455_v61 = vmul.f32 0.1, %v1419_v49  ;;  %vm1437_vm4 = vcmp.ge.f32.partialorder %v1419_v49, 0.0 }
 0x1e1   : > { %v1473_v51 = vsel %vm1437_vm4, %v1419_v49, %v1455_v61 }
 0x1e2   : > { %v1482_v52 = vpack.c.bf16 %v1473_v51, %v1472_v50 }
 0x1e4   : > { %2469 = vmatmul.mubr.bf16.gmra.mxu1 %v1482_v52 }
 0x1e5   : > { %2179 = vmatprep.mubr.msk.bf16.mxu1 %vm1805_vm5, %v2652_v38 }
 0x264   : > { %v1581_v29 = vpop.f32.mrf.mxu1 }
 0x265   : > { %v1659_v55 = vmul.f32 %v3323_v0, %v1581_v29 }
 0x266   : > { %v2438_v3 = vpop.f32.mrf.mxu1 }
 0x267   : > { %v1684_v57 = vadd.f32 %v3325_v54, %v1659_v55 }
 0x268   : > { %v1584_v58 = vpop.f32.mrf.mxu1 }
 0x269   : > { %v1660_v60 = vmul.f32 %v3323_v0, %v1584_v58  ;;  %v1720_v43 = vmul.f32 0.1, %v1684_v57  ;;  %vm1702_vm0 = vcmp.ge.f32.partialorder %v1684_v57, 0.0 }
 0x26a   : > { %v2439_v62 = vpop.f32.mrf.mxu1 }
 0x26b   : > { %v1685_v63 = vadd.f32 %v3325_v54, %v1660_v60  ;;  %v1738_v6 = vsel %vm1702_vm0, %v1684_v57, %v1720_v43 }
 0x26c   : > { %v1589_v8 = vpop.f32.mrf.mxu1 }
 0x26d   : > { %vm1703_vm6 = vcmp.ge.f32.partialorder %v1685_v63, 0.0  ;;  %v1721_v1 = vmul.f32 0.1, %v1685_v63  ;;  %v1661_v4 = vmul.f32 %v3323_v0, %v1589_v8 }
 0x26e   : > { %v2442_v5 = vpop.f32.mrf.mxu1 }
 0x26f   : > { %v1739_v48 = vsel %vm1703_vm6, %v1685_v63, %v1721_v1  ;;  %v1686_v7 = vadd.f32 %v3325_v54, %v1661_v4 }
 0x270   : > { %v1592_v10 = vpop.f32.mrf.mxu1  ;;  %v3333_v13 = vpack.c.bf16 %v1739_v48, %v1738_v6 }
 0x271   : > { %v1662_v11 = vmul.f32 %v3323_v0, %v1592_v10  ;;  %v1722_v14 = vmul.f32 0.1, %v1686_v7  ;;  %vm1704_vm7 = vcmp.ge.f32.partialorder %v1686_v7, 0.0 }
 0x272   : > { %v2443_v12 = vpop.f32.mrf.mxu1 }
 0x273   : > { %v1687_v16 = vadd.f32 %v3325_v54, %v1662_v11  ;;  %v1740_v18 = vsel %vm1704_vm7, %v1686_v7, %v1722_v14 }
 0x274   : > { %v3337_v53 = vpop.f32.mrf.mxu1 }
 0x275   : > { %vm1705_vm8 = vcmp.ge.f32.partialorder %v1687_v16, 0.0  ;;  %v1723_v17 = vmul.f32 0.1, %v1687_v16 }
 0x276   : > { %v2446_v19 = vpop.f32.mrf.mxu1 }
 0x277   : > { %v1741_v20 = vsel %vm1705_vm8, %v1687_v16, %v1723_v17  ;;  %vm1917_vm8 = vcmask 1040384  }
 0x278   : > { %v3339_v22 = vpop.f32.mrf.mxu1  ;;  %v3341_v24 = vpack.c.bf16 %v1741_v20, %v1740_v18 }
 0x279   : > { %v1664_v18 = vmul.f32 %v3323_v0, %v3339_v22 }
 0x27a   : > { %v2447_v59 = vpop.f32.mrf.mxu1 }
 0x27c   : > { %v1605_v25 = vpop.f32.mrf.mxu1 }
 0x27d   : > { %v1665_v12 = vmul.f32 %v3323_v0, %v1605_v25  ;;  %v1663_v25 = vmul.f32 %v3323_v0, %v3337_v53 }
 0x27e   : > { %v2450_v27 = vpop.f32.mrf.mxu1 }
 0x280   : > { %v1608_v30 = vpop.f32.mrf.mxu1 }
 0x281   : > { %v1666_v6 = vmul.f32 %v3323_v0, %v1608_v30  ;;  %v1690_v30 = vadd.f32 %v3325_v54, %v1665_v12 }
 0x282   : > { %v2451_v31 = vpop.f32.mrf.mxu1 }
 0x283   : > { %v1691_v20 = vadd.f32 %v3325_v54, %v1666_v6  ;;  %v1726_v53 = vmul.f32 0.1, %v1690_v30  ;;  %vm1708_vm3 = vcmp.ge.f32.partialorder %v1690_v30, 0.0 }
 0x284   : > { %v1613_v23 = vpop.f32.mrf.mxu1 }
 0x285   : > { %v1667_v60 = vmul.f32 %v3323_v0, %v1613_v23  ;;  %vm1709_vm2 = vcmp.ge.f32.partialorder %v1691_v20, 0.0 }
 0x286   : > { %v2454_v32 = vpop.f32.mrf.mxu1 }
 0x287   : > { %v1692_v14 = vadd.f32 %v3325_v54, %v1667_v60  ;;  %v1689_v32 = vadd.f32 %v3325_v54, %v1664_v18 }
 0x288   : > { %v1616_v34 = vpop.f32.mrf.mxu1 }
 0x289   : > { %v1668_v29 = vmul.f32 %v3323_v0, %v1616_v34  ;;  %v1728_v31 = vmul.f32 0.1, %v1692_v14  ;;  %vm1710_vm1 = vcmp.ge.f32.partialorder %v1692_v14, 0.0  ;;  %v1727_v34 = vmul.f32 0.1, %v1691_v20 }
 0x28a   : > { %v2455_v2 = vpop.f32.mrf.mxu1  ;;  %vm1707_vm4 = vcmp.ge.f32.partialorder %v1689_v32, 0.0 }
 0x28b   : > { %v1693_v48 = vadd.f32 %v3325_v54, %v1668_v29 }
 0x28c   : > { %v1621_v35 = vpop.f32.mrf.mxu1 }
 0x28d   : > { %v1669_v51 = vmul.f32 %v3323_v0, %v1621_v35  ;;  %v1729_v59 = vmul.f32 0.1, %v1693_v48  ;;  %vm1711_vm15 = vcmp.ge.f32.partialorder %v1693_v48, 0.0  ;;  %v1688_v35 = vadd.f32 %v3325_v54, %v1663_v25 }
 0x28e   : > { %v2458_v36 = vpop.f32.mrf.mxu1 }
 0x28f   : > { %v1694_v43 = vadd.f32 %v3325_v54, %v1669_v51  ;;  %v1747_v2 = vsel %vm1711_vm15, %v1693_v48, %v1729_v59  ;;  %v1746_v36 = vsel %vm1710_vm1, %v1692_v14, %v1728_v31  ;;  %vm1706_vm0 = vcmp.ge.f32.partialorder %v1688_v35, 0.0  ;;  %v2647_v51 = vld [vmem:[#allocation7] ss:$8 sps:$4 sm:$0xff]  }
 0x290   : > { %v1624_v37 = vpop.f32.mrf.mxu1 }
 0x291   : > { %v1670_v47 = vmul.f32 %v3323_v0, %v1624_v37  ;;  %v1730_v16 = vmul.f32 0.1, %v1694_v43  ;;  %vm1712_vm14 = vcmp.ge.f32.partialorder %v1694_v43, 0.0  ;;  %v1767_v37 = vpack.c.bf16 %v1747_v2, %v1746_v36 }
 0x292   : > { %v2459_v39 = vpop.f32.mrf.mxu1 }
 0x293   : > { %v1695_v3 = vadd.f32 %v3325_v54, %v1670_v47  ;;  %v1748_v23 = vsel %vm1712_vm14, %v1694_v43, %v1730_v16  ;;  %v1725_v39 = vmul.f32 0.1, %v1689_v32 }
 0x294   : > { %v1629_v28 = vpop.f32.mrf.mxu1 }
 0x295   : > { %v1671_v46 = vmul.f32 %v3323_v0, %v1629_v28  ;;  %v1731_v7 = vmul.f32 0.1, %v1695_v3  ;;  %vm1713_vm13 = vcmp.ge.f32.partialorder %v1695_v3, 0.0  ;;  %v1745_v28 = vsel %vm1709_vm2, %v1691_v20, %v1727_v34 }
 0x296   : > { %v2462_v40 = vpop.f32.mrf.mxu1 }
 0x297   : > { %v1696_v52 = vadd.f32 %v3325_v54, %v1671_v46  ;;  %v1749_v27 = vsel %vm1713_vm13, %v1695_v3, %v1731_v7  ;;  %v1724_v40 = vmul.f32 0.1, %v1688_v35 }
 0x298   : > { %v1632_v9 = vpop.f32.mrf.mxu1  ;;  %v1768_v22 = vpack.c.bf16 %v1749_v27, %v1748_v23 }
 0x299   : > { %v1672_v56 = vmul.f32 %v3323_v0, %v1632_v9  ;;  %v1732_v63 = vmul.f32 0.1, %v1696_v52  ;;  %vm1714_vm12 = vcmp.ge.f32.partialorder %v1696_v52, 0.0  ;;  %v1744_v9 = vsel %vm1708_vm3, %v1690_v30, %v1726_v53 }
 0x29a   : > { %v2463_v41 = vpop.f32.mrf.mxu1 }
 0x29b   : > { %v1697_v49 = vadd.f32 %v3325_v54, %v1672_v56  ;;  %v1750_v17 = vsel %vm1714_vm12, %v1696_v52, %v1732_v63  ;;  %v1766_v41 = vpack.c.bf16 %v1745_v28, %v1744_v9  ;;  %v2653_v52 = vld [vmem:[#allocation7 + $0x14] ss:$8 sps:$4 sm:$0xff]  }
 0x29c   : > { %v1637_v42 = vpop.f32.mrf.mxu1 }
 0x29d   : > { %v1673_v44 = vmul.f32 %v3323_v0, %v1637_v42  ;;  %v1733_v57 = vmul.f32 0.1, %v1697_v49  ;;  %vm1715_vm11 = vcmp.ge.f32.partialorder %v1697_v49, 0.0  ;;  %v1743_v42 = vsel %vm1707_vm4, %v1689_v32, %v1725_v39 }
 0x29e   : > { %v2466_v45 = vpop.f32.mrf.mxu1 }
 0x29f   : > { %v1698_v33 = vadd.f32 %v3325_v54, %v1673_v44  ;;  %v1751_v10 = vsel %vm1715_vm11, %v1697_v49, %v1733_v57  ;;  %v1742_v44 = vsel %vm1706_vm0, %v1688_v35, %v1724_v40 }
 0x2a0   : > { %v1640_v15 = vpop.f32.mrf.mxu1  ;;  %v1769_v19 = vpack.c.bf16 %v1751_v10, %v1750_v17  ;;  %v1765_v46 = vpack.c.bf16 %v1743_v42, %v1742_v44 }
 0x2a1   : > { %v1674_v61 = vmul.f32 %v3323_v0, %v1640_v15  ;;  %v1734_v26 = vmul.f32 0.1, %v1698_v33  ;;  %vm1716_vm9 = vcmp.ge.f32.partialorder %v1698_v33, 0.0 }
 0x2a2   : > { %v2467_v50 = vpop.f32.mrf.mxu1 }
 0x2a3   : > { %v1699_v38 = vadd.f32 %v3325_v54, %v1674_v61  ;;  %v1752_v8 = vsel %vm1716_vm9, %v1698_v33, %v1734_v26  ;;  %v1762_v61 = vld [vmem:[#allocation7 + $0x30] sm:$0x11]  ;;  %vm1918_vm9 = vsmask.f32 256 }
 0x2a4   : > { %v3354_v55 = vpop.f32.mrf.mxu1  ;;  %v2176_v26 = vcombine.high %v1762_v61, %v1762_v61 }
 0x2a5   : > { %vm1717_vm10 = vcmp.ge.f32.partialorder %v1699_v38, 0.0  ;;  %v1735_v58 = vmul.f32 0.1, %v1699_v38  ;;  %v1675_v45 = vmul.f32 %v3323_v0, %v3354_v55 }
 0x2a6   : > { %v2470_v62 = vpop.f32.mrf.mxu1 }
 0x2a7   : > { %v1753_v1 = vsel %vm1717_vm10, %v1699_v38, %v1735_v58  ;;  %v1700_v15 = vadd.f32 %v3325_v54, %v1675_v45  ;;  %v2175_v38 = vcombine.low %v1762_v61, %v1762_v61 }
 0x2a8   : > { %v1648_v4 = vpop.f32.mrf.mxu1  ;;  %v1770_v5 = vpack.c.bf16 %v1753_v1, %v1752_v8 }
 0x2a9   : > { %v1676_v56 = vmul.f32 %v3323_v0, %v1648_v4  ;;  %v1736_v0 = vmul.f32 0.1, %v1700_v15  ;;  %vm1718_vm7 = vcmp.ge.f32.partialorder %v1700_v15, 0.0  ;;  %v1920_v4 = vld [vmem:[%s431_s16 + $0x18] sm:$0x1] }
 0x2aa   : > { %v2471_v11 = vpop.f32.mrf.mxu1  ;;  %1819 = vmatpush1.bf16.msra.mxu0 %v1770_v5  ;;  %2481 = vmatpush1.bf16.msra.mxu1 %v1770_v5 }
 0x2ab   : > { %1820 = vmatprep.subr.bf16.mxu0 %v2893_v21  ;;  %2473 = vmatprep.subr.bf16.mxu1 %v2893_v21  ;;  %v1701_v33 = vadd.f32 %v3325_v54, %v1676_v56  ;;  %v1754_v54 = vsel %vm1718_vm7, %v1700_v15, %v1736_v0 }
 0x2ad   : > { %v1737_v47 = vmul.f32 0.1, %v1701_v33  ;;  %vm1719_vm6 = vcmp.ge.f32.partialorder %v1701_v33, 0.0 }
 0x2ae   : > { %1821 = vmatpush1.bf16.msra.mxu0 %v1769_v19  ;;  %2482 = vmatpush1.bf16.msra.mxu1 %v1769_v19 }
 0x2af   : > { %1822 = vmatprep.subr.bf16.mxu0 %v2893_v21  ;;  %2474 = vmatprep.subr.bf16.mxu1 %v2893_v21  ;;  %v1755_v49 = vsel %vm1719_vm6, %v1701_v33, %v1737_v47 }
 0x2b0   : > { %v1771_v50 = vpack.c.bf16 %v1755_v49, %v1754_v54 }
 0x2b2   : > { %1823 = vmatpush1.bf16.msra.mxu0 %v1768_v22  ;;  %2483 = vmatpush1.bf16.msra.mxu1 %v1768_v22 }
 0x2b3   : > { %1824 = vmatprep.subr.bf16.mxu0 %v2893_v21  ;;  %2475 = vmatprep.subr.bf16.mxu1 %v2893_v21 }
 0x2b6   : > { %1825 = vmatpush1.bf16.msra.mxu0 %v1767_v37  ;;  %2484 = vmatpush1.bf16.msra.mxu1 %v1767_v37 }
 0x2b7   : > { %1826 = vmatprep.subr.bf16.mxu0 %v2893_v21  ;;  %2476 = vmatprep.subr.bf16.mxu1 %v2893_v21 }
 0x2ba   : > { %1827 = vmatpush1.bf16.msra.mxu0 %v1766_v41  ;;  %2485 = vmatpush1.bf16.msra.mxu1 %v1766_v41 }
 0x2bb   : > { %1828 = vmatprep.subr.bf16.mxu0 %v2893_v21  ;;  %2477 = vmatprep.subr.bf16.mxu1 %v2893_v21 }
 0x2be   : > { %1829 = vmatpush1.bf16.msra.mxu0 %v1765_v46  ;;  %2486 = vmatpush1.bf16.msra.mxu1 %v1765_v46 }
 0x2bf   : > { %1830 = vmatprep.subr.bf16.mxu0 %v2893_v21  ;;  %2478 = vmatprep.subr.bf16.mxu1 %v2893_v21 }
 0x2c2   : > { %1831 = vmatpush1.bf16.msra.mxu0 %v3341_v24  ;;  %2487 = vmatpush1.bf16.msra.mxu1 %v3341_v24  ;;  %v2650_v24 = vld [vmem:[#allocation7 + $0x20] ss:$8 sps:$4 sm:$0xff]  }
 0x2c3   : > { %1832 = vmatprep.subr.bf16.mxu0 %v2893_v21  ;;  %2479 = vmatprep.subr.bf16.mxu1 %v2893_v21 }
 0x2c6   : > { %1833 = vmatpush1.bf16.msra.mxu0 %v3333_v13  ;;  %2488 = vmatpush1.bf16.msra.mxu1 %v3333_v13  ;;  %v2655_v13 = vld [vmem:[#allocation7 + $0x10] ss:$8 sps:$4 sm:$0xff]  }
 0x2c7   : > { %1848 = vmatprep.subr.bf16.mxu0 %v2893_v21  ;;  %2480 = vmatprep.subr.bf16.mxu1 %v2893_v21 }
 0x2ca   : > { %1849 = vmatpush2.bf16.msra.mxu0 %v1771_v50  ;;  %2489 = vmatpush2.bf16.msra.mxu1 %v1771_v50 }
 0x2cd   : > { %1851 = vmatmul.mubr.bf16.vlgmr.msra.gmra.mxu0 %v2647_v51  ;;  %1867 = vmatmul.mubr.bf16.vlgmr.msra.gmra.mxu1 %v2650_v24 }
 0x2ce   : > { %2178 = vmatprep.mubr.msk.bf16.mxu0 %vm1805_vm5, %v2653_v52  ;;  %2180 = vmatprep.mubr.msk.bf16.mxu1 %vm1805_vm5, %v2176_v26  ;;  %vm1919_vm5 = vmand %vm1917_vm8, %vm1918_vm9 }
 0x2d5   : > { %1859 = vmatmul.mubr.bf16.gmra.mxu0 %v2655_v13  ;;  %1875 = vmatmul.mubr.bf16.gmra.mxu1 %v2175_v38 }
 0x38d   : > { %v1852_v21 = vpop.f32.mrf.mxu0  ;;  %v1868_v29 = vpop.f32.mrf.mxu1 }
 0x38f   : > { %v1854_v55 = vpop.f32.mrf.mxu0  ;;  %v1870_v3 = vpop.f32.mrf.mxu1 }
 0x391   : > { %v1855_v57 = vpop.f32.mrf.mxu0  ;;  %v1871_v58 = vpop.f32.mrf.mxu1 }
 0x392   : > { %v2200_v60 = vpack.c.bf16 %v1855_v57, %v1852_v21  ;;  %v2210_v62 = vpack.c.bf16 %v1871_v58, %v1868_v29 }
 0x393   : > { %v1857_v43 = vpop.f32.mrf.mxu0  ;;  %v1873_v63 = vpop.f32.mrf.mxu1 }
 0x394   : > { %2201 = vst [vmem:[%s431_s16] sm:$0xff] %v2200_v60   ;;  %2213 = vst [vmem:[%s431_s16 + $0x10] sm:$0xff] %v2210_v62  }
 0x395   : > { %v1860_v8 = vpop.f32.mrf.mxu0  ;;  %v1876_v1 = vpop.f32.mrf.mxu1 }
 0x396   : > { %v2196_v5 = vpack.c.bf16 %v1876_v1, %v1876_v1 }
 0x397   : > { %v1862_v6 = vpop.f32.mrf.mxu0  ;;  %v1878_v48 = vpop.f32.mrf.mxu1 }
 0x398   : > { %v1921_v7 = vsel %vm1919_vm5, %v2196_v5, %v1920_v4 }
 0x399   : > { %1922 = vst [vmem:[%s431_s16 + $0x18] sm:$0x1] %v1921_v7  ;;  %v1863_v10 = vpop.f32.mrf.mxu0  ;;  %v1879_v11 = vpop.f32.mrf.mxu1 }
 0x39a   : > { %v2205_v12 = vpack.c.bf16 %v1863_v10, %v1860_v8 }
 0x39b   : > { %v1865_v14 = vpop.f32.mrf.mxu0  ;;  %v1880_v16 = vpop.f32.mrf.mxu1 }
 0x39c   : > { %2212 = vst [vmem:[%s431_s16 + $0x8] sm:$0xff] %v2205_v12  }
 0x39d PF: > { %s22_s29 = sadd.s32 1, %s2878_s29   ;;  %s3429_s27 = smov %s2874_s28 }
 0x39e   : > { %p19_p3 = scmp.ge.s32.totalorder %s22_s29, 4   ;;  %s3430_s28 = smov %s3432_s14 }
 0x3a0   :  { %21 = sbr.rel (!%p19_p3) target bundleno = 5 (0x5), region = 122 }
 0x3a5   :  { %1944 = vsyncpa [#allocation4], 1 }
 0x3a6   :  { %1946 = vsyncpa [#allocation4 + $0x1], 1 }
 0x3a7   :  { %1947 = vsyncpa [#allocation6], 1 }
 0x3a8   :  { %1948 = vsyncpa [#allocation9], 1 }
 0x3a9   :  { %1949 = vsyncpa [#allocation12], 1 }

</bundles_post_ra>
